<compile_context>
chip_gen: v7x
topology: tpu7x:2x2x1
jax: 0.10.0
libtpu: 0.0.40
codegen_flags: <defaults>
</compile_context>

<pallas_src>
import functools

import jax
import jax.numpy as jnp
from jax.experimental import pallas as pl
from jax.experimental.pallas import tpu as pltpu

_VMEM_LIMIT = 32 * 1024 * 1024  # explicit scoped-VMEM cap, safe on v5e/v6e/v7x
_COMPILER_PARAMS = pltpu.CompilerParams(
    dimension_semantics=("parallel",),
    vmem_limit_bytes=_VMEM_LIMIT,
)


def _pick_row_tile(rows, row_bytes, target_bytes=2 * 1024 * 1024):
    """Largest row tile (full extent, or a multiple of 8) giving ~target-sized
    blocks, so the ~0.35us per-grid-step overhead is amortized while the
    double-buffered in+out tiles stay well inside the 32 MiB VMEM limit."""
    if rows * row_bytes <= target_bytes:
        return rows
    rt = max(8, (target_bytes // max(1, row_bytes)) // 8 * 8)
    return min(rt, rows)


# ----------------------------------------------------------------------------
# Linear (X @ W + b) kernel — used for patch-embed proj, proj_q/k/v, attention
# out-proj and the MLP fc1/fc2.
# ----------------------------------------------------------------------------
def _linear_kernel(x_ref, w_ref, b_ref, o_ref):
    acc = jnp.dot(x_ref[...], w_ref[...], preferred_element_type=jnp.float32)
    o_ref[...] = (acc + b_ref[...]).astype(o_ref.dtype)


def linear(x, w, b=None):
    """x: (M, K), w: (K, N), b: (N,) or None -> (M, N)."""
    M, K = x.shape
    _, N = w.shape
    if b is None:
        b = jnp.zeros((N,), x.dtype)
    b2 = jnp.reshape(b, (1, N)).astype(x.dtype)
    tm = _pick_row_tile(M, (K + N) * x.dtype.itemsize)
    grid = (pl.cdiv(M, tm),)
    return pl.pallas_call(
        _linear_kernel,
        out_shape=jax.ShapeDtypeStruct((M, N), x.dtype),
        grid_spec=pltpu.PrefetchScalarGridSpec(
            num_scalar_prefetch=0,
            grid=grid,
            in_specs=[
                pl.BlockSpec((tm, K), lambda i: (i, 0)),
                pl.BlockSpec((K, N), lambda i: (0, 0)),
                pl.BlockSpec((1, N), lambda i: (0, 0)),
            ],
            out_specs=pl.BlockSpec((tm, N), lambda i: (i, 0)),
        ),
        compiler_params=_COMPILER_PARAMS,
    )(x, w, b2)


# ----------------------------------------------------------------------------
# LayerNorm kernel (row-wise, affine), channels on lanes.
# ----------------------------------------------------------------------------
def _layer_norm_kernel(x_ref, g_ref, b_ref, o_ref, *, eps):
    x = x_ref[...].astype(jnp.float32)
    mu = jnp.mean(x, axis=-1, keepdims=True)
    xc = x - mu
    var = jnp.mean(xc * xc, axis=-1, keepdims=True)
    y = xc * jax.lax.rsqrt(var + eps)
    o_ref[...] = (y * g_ref[...] + b_ref[...]).astype(o_ref.dtype)


def layer_norm(x2d, gamma, beta, eps=1e-5):
    M, C = x2d.shape
    g2 = gamma.reshape(1, C).astype(x2d.dtype)
    b2 = beta.reshape(1, C).astype(x2d.dtype)
    tm = _pick_row_tile(M, 2 * C * x2d.dtype.itemsize)
    grid = (pl.cdiv(M, tm),)
    return pl.pallas_call(
        functools.partial(_layer_norm_kernel, eps=eps),
        out_shape=jax.ShapeDtypeStruct((M, C), x2d.dtype),
        grid_spec=pltpu.PrefetchScalarGridSpec(
            num_scalar_prefetch=0,
            grid=grid,
            in_specs=[
                pl.BlockSpec((tm, C), lambda i: (i, 0)),
                pl.BlockSpec((1, C), lambda i: (0, 0)),
                pl.BlockSpec((1, C), lambda i: (0, 0)),
            ],
            out_specs=pl.BlockSpec((tm, C), lambda i: (i, 0)),
        ),
        compiler_params=_COMPILER_PARAMS,
    )(x2d, g2, b2)


# ----------------------------------------------------------------------------
# FrozenBatchNorm2d kernel: per-channel affine with PRECOMPUTED scale/shift
# (two (1, C) parameter rows instead of four (N*C, 1) streams), channels on
# the lane axis, large cdiv-tiled row blocks.
# ----------------------------------------------------------------------------
def _frozen_bn_kernel(x_ref, s_ref, t_ref, o_ref):
    o_ref[...] = (x_ref[...] * s_ref[...] + t_ref[...]).astype(o_ref.dtype)


def frozen_batch_norm(x2d, weight, bias, running_mean, running_var, eps=1e-5):
    """x2d: (rows, C) channels-last slab; params: (C,)."""
    M, C = x2d.shape
    scale = weight * jax.lax.rsqrt(running_var + eps)
    shift = bias - running_mean * scale
    s2 = scale.reshape(1, C).astype(x2d.dtype)
    t2 = shift.reshape(1, C).astype(x2d.dtype)
    tm = _pick_row_tile(M, 2 * C * x2d.dtype.itemsize)
    grid = (pl.cdiv(M, tm),)
    return pl.pallas_call(
        _frozen_bn_kernel,
        out_shape=jax.ShapeDtypeStruct((M, C), x2d.dtype),
        grid_spec=pltpu.PrefetchScalarGridSpec(
            num_scalar_prefetch=0,
            grid=grid,
            in_specs=[
                pl.BlockSpec((tm, C), lambda i: (i, 0)),
                pl.BlockSpec((1, C), lambda i: (0, 0)),
                pl.BlockSpec((1, C), lambda i: (0, 0)),
            ],
            out_specs=pl.BlockSpec((tm, C), lambda i: (i, 0)),
        ),
        compiler_params=_COMPILER_PARAMS,
    )(x2d, s2, t2)


# ----------------------------------------------------------------------------
# Depthwise 3x3 conv kernel (channels-last, padding=1). Stride-2 projections
# reuse the stride-1 output and subsample (identical math).
# ----------------------------------------------------------------------------
def _dwconv3x3_kernel(x_ref, w_ref, o_ref, *, out_h, out_w):
    x = x_ref[0]            # (H+2, W+2, C) padded image, channels-last
    w = w_ref[...]          # (9, C) depthwise taps
    c = x.shape[-1]
    acc = jnp.zeros((out_h, out_w, c), jnp.float32)
    for tap in range(9):
        dy, dx = tap // 3, tap % 3
        acc = acc + w[tap:tap + 1].reshape(1, 1, c) * x[dy:dy + out_h, dx:dx + out_w, :]
    o_ref[0] = acc.astype(o_ref.dtype)


def dwconv3x3(x_nhwc, w9c, stride):
    """Depthwise 3x3 conv, padding=1. x: (B, H, W, C); w9c: (9, C)."""
    B, H, W, C = x_nhwc.shape
    xp = jnp.pad(x_nhwc, ((0, 0), (1, 1), (1, 1), (0, 0)))
    out = pl.pallas_call(
        functools.partial(_dwconv3x3_kernel, out_h=H, out_w=W),
        out_shape=jax.ShapeDtypeStruct((B, H, W, C), x_nhwc.dtype),
        grid_spec=pltpu.PrefetchScalarGridSpec(
            num_scalar_prefetch=0,
            grid=(B,),
            in_specs=[
                pl.BlockSpec((1, H + 2, W + 2, C), lambda b: (b, 0, 0, 0)),
                pl.BlockSpec((9, C), lambda b: (0, 0)),
            ],
            out_specs=pl.BlockSpec((1, H, W, C), lambda b: (b, 0, 0, 0)),
        ),
        compiler_params=_COMPILER_PARAMS,
    )(xp, w9c)
    if stride > 1:
        # stride-s conv (pad 1, k=3) == stride-1 conv subsampled at [::s, ::s]
        # TODO(synk): true strided depthwise conv (skip redundant taps) for large maps.
        out = out[:, ::stride, ::stride, :]
    return out


# ----------------------------------------------------------------------------
# Softmax attention kernel: one (batch*head) slice per grid step.
# ----------------------------------------------------------------------------
def _attention_kernel(q_ref, k_ref, v_ref, o_ref, *, scale):
    q = q_ref[...].astype(jnp.float32)   # (1, Tq, D)
    k = k_ref[...].astype(jnp.float32)   # (1, Tk, D)
    v = v_ref[...].astype(jnp.float32)   # (1, Tk, D)
    s = jnp.einsum("bqd,bkd->bqk", q, k, preferred_element_type=jnp.float32) * scale
    s = s - jnp.max(s, axis=-1, keepdims=True)
    p = jnp.exp(s)
    p = p / jnp.sum(p, axis=-1, keepdims=True)
    o_ref[...] = jnp.einsum("bqk,bkd->bqd", p, v,
                            preferred_element_type=jnp.float32).astype(o_ref.dtype)


def attention(q, k, v, scale):
    """q: (BH, Tq, D), k/v: (BH, Tk, D) -> (BH, Tq, D)."""
    BH, Tq, D = q.shape
    _, Tk, _ = k.shape
    return pl.pallas_call(
        functools.partial(_attention_kernel, scale=scale),
        out_shape=jax.ShapeDtypeStruct((BH, Tq, D), q.dtype),
        grid_spec=pltpu.PrefetchScalarGridSpec(
            num_scalar_prefetch=0,
            grid=(BH,),
            in_specs=[
                pl.BlockSpec((1, Tq, D), lambda i: (i, 0, 0)),
                pl.BlockSpec((1, Tk, D), lambda i: (i, 0, 0)),
                pl.BlockSpec((1, Tk, D), lambda i: (i, 0, 0)),
            ],
            out_specs=pl.BlockSpec((1, Tq, D), lambda i: (i, 0, 0)),
        ),
        compiler_params=_COMPILER_PARAMS,
    )(q, k, v)


# ----------------------------------------------------------------------------
# Model modules built from the kernels above (channels-last tokens).
# ----------------------------------------------------------------------------
def conv_embed(params, x_nchw, cfg):
    """ConvEmbed: non-overlapping patchify + linear proj + LayerNorm.
    Returns channels-last tokens (B, Ho*Wo, E) plus (Ho, Wo)."""
    P = cfg["patch_size"]
    pad = cfg["patch_padding"]
    E = cfg["embed_dim"]
    # TODO(synk): overlapping ConvEmbed patches (patch_size != patch_stride) not supported.
    assert cfg["patch_stride"] == P
    if pad:
        x_nchw = jnp.pad(x_nchw, ((0, 0), (0, 0), (pad, pad), (pad, pad)))
    B, C, Hi, Wi = x_nchw.shape
    Ho, Wo = Hi // P, Wi // P
    patches = x_nchw.reshape(B, C, Ho, P, Wo, P)
    patches = patches.transpose(0, 2, 4, 1, 3, 5).reshape(B * Ho * Wo, C * P * P)
    w = params["patch_proj_w"].reshape(E, C * P * P).T
    y = linear(patches, w, params["patch_proj_b"])
    y = layer_norm(y, params["patch_norm_g"], params["patch_norm_b"])
    return y.reshape(B, Ho * Wo, E), Ho, Wo


def conv_proj(x_tokens, h, w, dw_w, bn, stride):
    """dw_bn projection: depthwise 3x3 conv + FrozenBatchNorm2d (channels-last)."""
    B, L, C = x_tokens.shape
    x = x_tokens.reshape(B, h, w, C)
    y = dwconv3x3(x, dw_w.reshape(C, 9).T, stride)           # (B, h', w', C)
    Bo, ho, wo, _ = y.shape
    y = frozen_batch_norm(y.reshape(Bo * ho * wo, C),
                          bn["w"], bn["b"], bn["rm"], bn["rv"])
    return y.reshape(Bo, ho * wo, C)


def attention_block(blk, x, t_K, t_h, t_w, s_h, s_w, cfg):
    """Asymmetric mixed attention (Attention.forward)."""
    B, L, C = x.shape
    H = cfg["num_heads"]
    D = C // H
    scale = C ** (-0.5)
    lt = t_K * t_h * t_w

    tmpl = x[:, :lt].reshape(B * t_K, t_h * t_w, C)
    srch = x[:, lt:]

    def project(dw_w, bn, stride):
        t = conv_proj(tmpl, t_h, t_w, dw_w, bn, stride)       # (B*K, T', C)
        t = t.reshape(B, -1, C)                               # b (k t') c
        s = conv_proj(srch, s_h, s_w, dw_w, bn, stride)       # (B, S', C)
        return jnp.concatenate([t, s], axis=1)

    q = project(blk["conv_q_w"], blk["bn_q"], cfg["stride_q"])
    k = project(blk["conv_k_w"], blk["bn_k"], cfg["stride_kv"])
    v = project(blk["conv_v_w"], blk["bn_v"], cfg["stride_kv"])

    def to_heads(z, w):
        B_, L_, _ = z.shape
        zh = linear(z.reshape(B_ * L_, C), w, None).reshape(B_, L_, H, D)
        return zh.transpose(0, 2, 1, 3)                        # b h t d

    qh = to_heads(q, blk["proj_q_w"])
    kh = to_heads(k, blk["proj_k_w"])
    vh = to_heads(v, blk["proj_v_w"])

    lt_kv = ((t_h + 1) // 2) ** 2 * t_K
    q_mt, q_s = qh[:, :, :lt], qh[:, :, lt:]
    k_mt, v_mt = kh[:, :, :lt_kv], vh[:, :, :lt_kv]

    def run_attn(qq, kk, vv):
        B_, H_, Tq, D_ = qq.shape
        Tk = kk.shape[2]
        o = attention(qq.reshape(B_ * H_, Tq, D_),
                      kk.reshape(B_ * H_, Tk, D_),
                      vv.reshape(B_ * H_, Tk, D_), scale)
        return o.reshape(B_, H_, Tq, D_).transpose(0, 2, 1, 3).reshape(B_, Tq, H_ * D_)

    x_mt = run_attn(q_mt, k_mt, v_mt)   # template queries attend to template k/v
    x_s = run_attn(q_s, kh, vh)         # search queries attend to all k/v
    xo = jnp.concatenate([x_mt, x_s], axis=1)                  # (B, L, C)
    xo = linear(xo.reshape(B * L, C), blk["proj_w"], blk["proj_b"]).reshape(B, L, C)
    return xo                                                   # attn_drop/proj_drop = 0


def block_forward(blk, x, t_K, t_h, t_w, s_h, s_w, cfg):
    B, L, C = x.shape
    res = x
    xn = layer_norm(x.reshape(B * L, C), blk["norm1_g"], blk["norm1_b"]).reshape(B, L, C)
    x = res + attention_block(blk, xn, t_K, t_h, t_w, s_h, s_w, cfg)
    xn = layer_norm(x.reshape(B * L, C), blk["norm2_g"], blk["norm2_b"]).reshape(B * L, C)
    h = linear(xn, blk["fc1_w"], blk["fc1_b"])
    # TODO(synk): exact erf-GELU (nn.GELU default) kept outside the kernels.
    h = jax.nn.gelu(h, approximate=False)
    h = linear(h, blk["fc2_w"], blk["fc2_b"]).reshape(B, L, C)
    return x + h                                                # drop_path = 0


def vision_transformer_forward(params, templates, search, cfg):
    """templates: (B, K, Cin, Ht, Wt); search: (B, Cin, Hs, Ws).
    Returns (templates_out (B,K,E,t_H,t_W), search_out (B,E,s_H,s_W))."""
    B, K, Ci, Ht, Wt = templates.shape
    E = cfg["embed_dim"]
    tmpl_tok, t_H, t_W = conv_embed(params, templates.reshape(B * K, Ci, Ht, Wt), cfg)
    tmpl_tok = tmpl_tok.reshape(B, K * t_H * t_W, E)
    srch_tok, s_H, s_W = conv_embed(params, search, cfg)
    x = jnp.concatenate([tmpl_tok, srch_tok], axis=1)           # pos_drop = 0
    for blk in params["blocks"]:
        x = block_forward(blk, x, K, t_H, t_W, s_H, s_W, cfg)
    lt = K * t_H * t_W
    tmpl_out = x[:, :lt].reshape(B, K, t_H, t_W, E).transpose(0, 1, 4, 2, 3)
    srch_out = x[:, lt:].reshape(B, s_H, s_W, E).transpose(0, 3, 1, 2)
    return tmpl_out, srch_out


# ----------------------------------------------------------------------------
# Parameter construction (deterministic).
# ----------------------------------------------------------------------------
def init_params(key, cfg):
    E = cfg["embed_dim"]
    P = cfg["patch_size"]
    Ci = cfg["in_chans"]
    hidden = int(E * cfg["mlp_ratio"])
    depth = cfg["depth"]

    def tn(k, shape, std=0.02):
        return (std * jax.random.truncated_normal(k, -2.0, 2.0, shape)).astype(jnp.float32)

    k_pe, k_blocks = jax.random.split(key)
    kpw, kpb = jax.random.split(k_pe)
    params = {
        "patch_proj_w": tn(kpw, (E, Ci, P, P)),       # PyTorch Conv2d OIHW layout
        "patch_proj_b": tn(kpb, (E,)),
        "patch_norm_g": jnp.ones((E,), jnp.float32),
        "patch_norm_b": jnp.zeros((E,), jnp.float32),
        "blocks": [],
    }
    for kb in jax.random.split(k_blocks, depth):
        ks = jax.random.split(kb, 20)

        def bn_params(k):
            k1, k2, k3, k4 = jax.random.split(k, 4)
            return {"w": 1.0 + 0.1 * jax.random.normal(k1, (E,)),
                    "b": 0.1 * jax.random.normal(k2, (E,)),
                    "rm": 0.05 * jax.random.normal(k3, (E,)),
                    "rv": 1.0 + 0.1 * jax.random.uniform(k4, (E,))}

        blk = {
            "norm1_g": 1.0 + 0.05 * jax.random.normal(ks[0], (E,)),
            "norm1_b": 0.02 * jax.random.normal(ks[1], (E,)),
            "norm2_g": 1.0 + 0.05 * jax.random.normal(ks[2], (E,)),
            "norm2_b": 0.02 * jax.random.normal(ks[3], (E,)),
            "conv_q_w": tn(ks[4], (E, 3, 3), std=0.1),
            "conv_k_w": tn(ks[5], (E, 3, 3), std=0.1),
            "conv_v_w": tn(ks[6], (E, 3, 3), std=0.1),
            "bn_q": bn_params(ks[7]),
            "bn_k": bn_params(ks[8]),
            "bn_v": bn_params(ks[9]),
            "proj_q_w": tn(ks[10], (E, E)),           # stored (in, out)
            "proj_k_w": tn(ks[11], (E, E)),
            "proj_v_w": tn(ks[12], (E, E)),
            "proj_w": tn(ks[13], (E, E)),
            "proj_b": 0.02 * jax.random.normal(ks[14], (E,)),
            "fc1_w": tn(ks[15], (E, hidden)),
            "fc1_b": 0.02 * jax.random.normal(ks[16], (hidden,)),
            "fc2_w": tn(ks[17], (hidden, E)),
            "fc2_b": 0.02 * jax.random.normal(ks[18], (E,)),
        }
        params["blocks"].append(blk)
    return params


# ----------------------------------------------------------------------------
# Pure-JAX reference (literal NCHW translation of the PyTorch forward).
# ----------------------------------------------------------------------------
_HP = jax.lax.Precision.HIGHEST


def _ref_layer_norm(x, g, b, eps=1e-5):
    mu = jnp.mean(x, axis=-1, keepdims=True)
    var = jnp.mean((x - mu) ** 2, axis=-1, keepdims=True)
    return (x - mu) * jax.lax.rsqrt(var + eps) * g + b


def _ref_frozen_bn(x_nchw, p, eps=1e-5):
    w = p["w"].reshape(1, -1, 1, 1)
    b = p["b"].reshape(1, -1, 1, 1)
    rv = p["rv"].reshape(1, -1, 1, 1)
    rm = p["rm"].reshape(1, -1, 1, 1)
    scale = w * jax.lax.rsqrt(rv + eps)
    return x_nchw * scale + (b - rm * scale)


def _ref_dwconv(x_nchw, w_c33, stride):
    C = x_nchw.shape[1]
    return jax.lax.conv_general_dilated(
        x_nchw, w_c33[:, None, :, :], (stride, stride), ((1, 1), (1, 1)),
        feature_group_count=C, dimension_numbers=("NCHW", "OIHW", "NCHW"),
        precision=_HP)


def _ref_patch_embed(params, x_nchw, cfg):
    pad = cfg["patch_padding"]
    y = jax.lax.conv_general_dilated(
        x_nchw, params["patch_proj_w"], (cfg["patch_stride"],) * 2,
        ((pad, pad), (pad, pad)), dimension_numbers=("NCHW", "OIHW", "NCHW"),
        precision=_HP)
    y = y + params["patch_proj_b"].reshape(1, -1, 1, 1)
    B, C, H, W = y.shape
    t = y.transpose(0, 2, 3, 1).reshape(B, H * W, C)
    t = _ref_layer_norm(t, params["patch_norm_g"], params["patch_norm_b"])
    return t.reshape(B, H, W, C).transpose(0, 3, 1, 2)


def _ref_conv_proj(x_nchw, dw_w, bn, stride):
    y = _ref_frozen_bn(_ref_dwconv(x_nchw, dw_w, stride), bn)
    B, C, H, W = y.shape
    return y.transpose(0, 2, 3, 1).reshape(B, H * W, C)


def _ref_attention(blk, x, t_K, t_h, t_w, s_h, s_w, cfg):
    B, L, C = x.shape
    Hh = cfg["num_heads"]
    D = C // Hh
    scale = C ** (-0.5)
    lt = t_K * t_h * t_w
    tmpl = x[:, :lt].reshape(B * t_K, t_h, t_w, C).transpose(0, 3, 1, 2)
    srch = x[:, lt:].reshape(B, s_h, s_w, C).transpose(0, 3, 1, 2)

    def project(dw_w, bn, stride):
        t = _ref_conv_proj(tmpl, dw_w, bn, stride).reshape(B, -1, C)
        s = _ref_conv_proj(srch, dw_w, bn, stride)
        return jnp.concatenate([t, s], axis=1)

    q = project(blk["conv_q_w"], blk["bn_q"], cfg["stride_q"])
    k = project(blk["conv_k_w"], blk["bn_k"], cfg["stride_kv"])
    v = project(blk["conv_v_w"], blk["bn_v"], cfg["stride_kv"])

    def heads(z, w):
        z = jnp.matmul(z, w, precision=_HP)
        B_, L_, _ = z.shape
        return z.reshape(B_, L_, Hh, D).transpose(0, 2, 1, 3)

    qh, kh, vh = heads(q, blk["proj_q_w"]), heads(k, blk["proj_k_w"]), heads(v, blk["proj_v_w"])
    lt_kv = ((t_h + 1) // 2) ** 2 * t_K
    q_mt, q_s = qh[:, :, :lt], qh[:, :, lt:]
    k_mt, v_mt = kh[:, :, :lt_kv], vh[:, :, :lt_kv]

    def attn(qq, kk, vv):
        s = jnp.einsum("bhld,bhtd->bhlt", qq, kk, precision=_HP) * scale
        p = jax.nn.softmax(s, axis=-1)
        o = jnp.einsum("bhlt,bhtd->bhld", p, vv, precision=_HP)
        B_, H_, T_, D_ = o.shape
        return o.transpose(0, 2, 1, 3).reshape(B_, T_, H_ * D_)

    xo = jnp.concatenate([attn(q_mt, k_mt, v_mt), attn(q_s, kh, vh)], axis=1)
    return jnp.matmul(xo, blk["proj_w"], precision=_HP) + blk["proj_b"]


def _ref_block(blk, x, t_K, t_h, t_w, s_h, s_w, cfg):
    res = x
    xn = _ref_layer_norm(x, blk["norm1_g"], blk["norm1_b"])
    x = res + _ref_attention(blk, xn, t_K, t_h, t_w, s_h, s_w, cfg)
    xn = _ref_layer_norm(x, blk["norm2_g"], blk["norm2_b"])
    h = jnp.matmul(xn, blk["fc1_w"], precision=_HP) + blk["fc1_b"]
    h = jax.nn.gelu(h, approximate=False)
    h = jnp.matmul(h, blk["fc2_w"], precision=_HP) + blk["fc2_b"]
    return x + h


def vision_transformer_ref(params, templates, search, cfg):
    B, K, Ci, Ht, Wt = templates.shape
    E = cfg["embed_dim"]
    t = _ref_patch_embed(params, templates.reshape(B * K, Ci, Ht, Wt), cfg)
    _, _, t_H, t_W = t.shape
    t = t.transpose(0, 2, 3, 1).reshape(B, K * t_H * t_W, E)
    s = _ref_patch_embed(params, search, cfg)
    _, _, s_H, s_W = s.shape
    s = s.transpose(0, 2, 3, 1).reshape(B, s_H * s_W, E)
    x = jnp.concatenate([t, s], axis=1)
    for blk in params["blocks"]:
        x = _ref_block(blk, x, K, t_H, t_W, s_H, s_W, cfg)
    lt = K * t_H * t_W
    tmpl_out = x[:, :lt].reshape(B, K, t_H, t_W, E).transpose(0, 1, 4, 2, 3)
    srch_out = x[:, lt:].reshape(B, s_H, s_W, E).transpose(0, 3, 1, 2)
    return tmpl_out, srch_out


# ----------------------------------------------------------------------------
if __name__ == "__main__":
    cfg = dict(patch_size=4, patch_stride=4, patch_padding=0, in_chans=3,
               embed_dim=32, depth=2, num_heads=2, mlp_ratio=2.0,
               stride_q=1, stride_kv=2)

    key = jax.random.PRNGKey(0)
    kp, kt, ks = jax.random.split(key, 3)
    params = init_params(kp, cfg)

    B, K = 1, 2
    templates = jax.random.normal(kt, (B, K, 3, 16, 16), jnp.float32)
    search = jax.random.normal(ks, (B, 3, 32, 32), jnp.float32)

    fwd = jax.jit(lambda p, t, s: vision_transformer_forward(p, t, s, cfg))
    tmpl_out, srch_out = jax.block_until_ready(fwd(params, templates, search))

    tmpl_ref, srch_ref = vision_transformer_ref(params, templates, search, cfg)

    assert tmpl_out.shape == (B, K, cfg["embed_dim"], 4, 4)
    assert srch_out.shape == (B, cfg["embed_dim"], 8, 8)
    assert jnp.allclose(tmpl_out, tmpl_ref, atol=2e-2, rtol=2e-2), "template mismatch"
    assert jnp.allclose(srch_out, srch_ref, atol=2e-2, rtol=2e-2), "search mismatch"

    print("KERNEL_OK")
</pallas_src>

<mosaic_0001>
module attributes {stable_mosaic.version = 11 : i64} {
  func.func @_layer_norm_kernel(%arg0: i32, %arg1: memref<64x32xf32, #tpu.memory_space<vmem>>, %arg2: memref<1x32xf32, #tpu.memory_space<vmem>>, %arg3: memref<1x32xf32, #tpu.memory_space<vmem>>, %arg4: memref<64x32xf32, #tpu.memory_space<vmem>>) attributes {dimension_semantics = [#tpu.dimension_semantics<parallel>], iteration_bounds = array<i64: 1>, scalar_prefetch = 0 : i64, scratch_operands = 0 : i64, tpu.core_type = #tpu.core_type<tc>, window_params = [{transform_indices = @transform_0, window_bounds = array<i64: 64, 32>}, {pipeline_mode = #tpu.pipeline_mode<synchronous>, transform_indices = @transform_1, window_bounds = array<i64: 1, 32>}, {pipeline_mode = #tpu.pipeline_mode<synchronous>, transform_indices = @transform_2, window_bounds = array<i64: 1, 32>}, {transform_indices = @transform_3, window_bounds = array<i64: 64, 32>}]} {
    %c0 = arith.constant 0 : index
    %c0_0 = arith.constant 0 : index
    %0 = vector.load %arg1[%c0, %c0_0] : memref<64x32xf32, #tpu.memory_space<vmem>>, vector<64x32xf32>
    %cst = arith.constant dense<0.000000e+00> : vector<64xf32>
    %1 = vector.multi_reduction <add>, %0, %cst [1] : vector<64x32xf32> to vector<64xf32>
    %2 = vector.shape_cast %1 : vector<64xf32> to vector<64x1xf32>
    %cst_1 = arith.constant 3.200000e+01 : f32
    %3 = vector.broadcast %cst_1 : f32 to vector<64x1xf32>
    %4 = arith.divf %2, %3 : vector<64x1xf32>
    %5 = vector.broadcast %4 : vector<64x1xf32> to vector<64x32xf32>
    %6 = arith.subf %0, %5 : vector<64x32xf32>
    %7 = arith.mulf %6, %6 : vector<64x32xf32>
    %cst_2 = arith.constant dense<0.000000e+00> : vector<64xf32>
    %8 = vector.multi_reduction <add>, %7, %cst_2 [1] : vector<64x32xf32> to vector<64xf32>
    %9 = vector.shape_cast %8 : vector<64xf32> to vector<64x1xf32>
    %cst_3 = arith.constant 3.200000e+01 : f32
    %10 = vector.broadcast %cst_3 : f32 to vector<64x1xf32>
    %11 = arith.divf %9, %10 : vector<64x1xf32>
    %cst_4 = arith.constant 9.99999974E-6 : f32
    %12 = vector.broadcast %cst_4 : f32 to vector<64x1xf32>
    %13 = arith.addf %11, %12 : vector<64x1xf32>
    %14 = math.rsqrt %13 : vector<64x1xf32>
    %15 = vector.broadcast %14 : vector<64x1xf32> to vector<64x32xf32>
    %16 = arith.mulf %6, %15 : vector<64x32xf32>
    %c0_5 = arith.constant 0 : index
    %c0_6 = arith.constant 0 : index
    %17 = vector.load %arg2[%c0_5, %c0_6] : memref<1x32xf32, #tpu.memory_space<vmem>>, vector<1x32xf32>
    %18 = vector.broadcast %17 : vector<1x32xf32> to vector<64x32xf32>
    %19 = arith.mulf %16, %18 : vector<64x32xf32>
    %c0_7 = arith.constant 0 : index
    %c0_8 = arith.constant 0 : index
    %20 = vector.load %arg3[%c0_7, %c0_8] : memref<1x32xf32, #tpu.memory_space<vmem>>, vector<1x32xf32>
    %21 = vector.broadcast %20 : vector<1x32xf32> to vector<64x32xf32>
    %22 = arith.addf %19, %21 : vector<64x32xf32>
    %c0_9 = arith.constant 0 : index
    %c0_10 = arith.constant 0 : index
    %23 = vector.load %arg4[%c0_9, %c0_10] : memref<64x32xf32, #tpu.memory_space<vmem>>, vector<64x32xf32>
    tpu.vector_store %arg4[%c0_9, %c0_10], %22 {strides = array<i32>} : memref<64x32xf32, #tpu.memory_space<vmem>>, vector<64x32xf32>,
    return
  }
  func.func @transform_0(%arg0: i32) -> (i32, i32) {
    %c0_i32 = arith.constant 0 : i32
    %c0_i32_0 = arith.constant 0 : i32
    return %arg0, %c0_i32 : i32, i32
  }
  func.func @transform_1(%arg0: i32) -> (i32, i32) {
    %c0_i32 = arith.constant 0 : i32
    %c0_i32_0 = arith.constant 0 : i32
    %c0_i32_1 = arith.constant 0 : i32
    return %c0_i32, %c0_i32_0 : i32, i32
  }
  func.func @transform_2(%arg0: i32) -> (i32, i32) {
    %c0_i32 = arith.constant 0 : i32
    %c0_i32_0 = arith.constant 0 : i32
    %c0_i32_1 = arith.constant 0 : i32
    return %c0_i32, %c0_i32_0 : i32, i32
  }
  func.func @transform_3(%arg0: i32) -> (i32, i32) {
    %c0_i32 = arith.constant 0 : i32
    %c0_i32_0 = arith.constant 0 : i32
    return %arg0, %c0_i32 : i32, i32
  }
}

module attributes {stable_mosaic.version = 11 : i64} {
  func.func @_linear_kernel(%arg0: i32, %arg1: memref<64x48xf32, #tpu.memory_space<vmem>>, %arg2: memref<48x32xf32, #tpu.memory_space<vmem>>, %arg3: memref<1x32xf32, #tpu.memory_space<vmem>>, %arg4: memref<64x32xf32, #tpu.memory_space<vmem>>) attributes {dimension_semantics = [#tpu.dimension_semantics<parallel>], iteration_bounds = array<i64: 1>, scalar_prefetch = 0 : i64, scratch_operands = 0 : i64, tpu.core_type = #tpu.core_type<tc>, window_params = [{transform_indices = @transform_0, window_bounds = array<i64: 64, 48>}, {pipeline_mode = #tpu.pipeline_mode<synchronous>, transform_indices = @transform_1, window_bounds = array<i64: 48, 32>}, {pipeline_mode = #tpu.pipeline_mode<synchronous>, transform_indices = @transform_2, window_bounds = array<i64: 1, 32>}, {transform_indices = @transform_3, window_bounds = array<i64: 64, 32>}]} {
    %c0 = arith.constant 0 : index
    %c0_0 = arith.constant 0 : index
    %0 = vector.load %arg1[%c0, %c0_0] : memref<64x48xf32, #tpu.memory_space<vmem>>, vector<64x48xf32>
    %c0_1 = arith.constant 0 : index
    %c0_2 = arith.constant 0 : index
    %1 = vector.load %arg2[%c0_1, %c0_2] : memref<48x32xf32, #tpu.memory_space<vmem>>, vector<48x32xf32>
    %cst = arith.constant dense<0.000000e+00> : vector<64x32xf32>
    %2 = tpu.matmul %0, %1, %cst {dimension_numbers = #tpu.dot_dimension_numbers<[1], [0], [0], [1], [0, 0, 1, 1], [], []>} : vector<64x48xf32>, vector<48x32xf32>, vector<64x32xf32> -> vector<64x32xf32>
    %c0_3 = arith.constant 0 : index
    %c0_4 = arith.constant 0 : index
    %3 = vector.load %arg3[%c0_3, %c0_4] : memref<1x32xf32, #tpu.memory_space<vmem>>, vector<1x32xf32>
    %4 = vector.broadcast %3 : vector<1x32xf32> to vector<64x32xf32>
    %5 = arith.addf %2, %4 : vector<64x32xf32>
    %c0_5 = arith.constant 0 : index
    %c0_6 = arith.constant 0 : index
    %6 = vector.load %arg4[%c0_5, %c0_6] : memref<64x32xf32, #tpu.memory_space<vmem>>, vector<64x32xf32>
    tpu.vector_store %arg4[%c0_5, %c0_6], %5 {strides = array<i32>} : memref<64x32xf32, #tpu.memory_space<vmem>>, vector<64x32xf32>,
    return
  }
  func.func @transform_0(%arg0: i32) -> (i32, i32) {
    %c0_i32 = arith.constant 0 : i32
    %c0_i32_0 = arith.constant 0 : i32
    return %arg0, %c0_i32 : i32, i32
  }
  func.func @transform_1(%arg0: i32) -> (i32, i32) {
    %c0_i32 = arith.constant 0 : i32
    %c0_i32_0 = arith.constant 0 : i32
    %c0_i32_1 = arith.constant 0 : i32
    return %c0_i32, %c0_i32_0 : i32, i32
  }
  func.func @transform_2(%arg0: i32) -> (i32, i32) {
    %c0_i32 = arith.constant 0 : i32
    %c0_i32_0 = arith.constant 0 : i32
    %c0_i32_1 = arith.constant 0 : i32
    return %c0_i32, %c0_i32_0 : i32, i32
  }
  func.func @transform_3(%arg0: i32) -> (i32, i32) {
    %c0_i32 = arith.constant 0 : i32
    %c0_i32_0 = arith.constant 0 : i32
    return %arg0, %c0_i32 : i32, i32
  }
}

module attributes {stable_mosaic.version = 11 : i64} {
  func.func @_linear_kernel(%arg0: i32, %arg1: memref<32x48xf32, #tpu.memory_space<vmem>>, %arg2: memref<48x32xf32, #tpu.memory_space<vmem>>, %arg3: memref<1x32xf32, #tpu.memory_space<vmem>>, %arg4: memref<32x32xf32, #tpu.memory_space<vmem>>) attributes {dimension_semantics = [#tpu.dimension_semantics<parallel>], iteration_bounds = array<i64: 1>, scalar_prefetch = 0 : i64, scratch_operands = 0 : i64, tpu.core_type = #tpu.core_type<tc>, window_params = [{transform_indices = @transform_0, window_bounds = array<i64: 32, 48>}, {pipeline_mode = #tpu.pipeline_mode<synchronous>, transform_indices = @transform_1, window_bounds = array<i64: 48, 32>}, {pipeline_mode = #tpu.pipeline_mode<synchronous>, transform_indices = @transform_2, window_bounds = array<i64: 1, 32>}, {transform_indices = @transform_3, window_bounds = array<i64: 32, 32>}]} {
    %c0 = arith.constant 0 : index
    %c0_0 = arith.constant 0 : index
    %0 = vector.load %arg1[%c0, %c0_0] : memref<32x48xf32, #tpu.memory_space<vmem>>, vector<32x48xf32>
    %c0_1 = arith.constant 0 : index
    %c0_2 = arith.constant 0 : index
    %1 = vector.load %arg2[%c0_1, %c0_2] : memref<48x32xf32, #tpu.memory_space<vmem>>, vector<48x32xf32>
    %cst = arith.constant dense<0.000000e+00> : vector<32x32xf32>
    %2 = tpu.matmul %0, %1, %cst {dimension_numbers = #tpu.dot_dimension_numbers<[1], [0], [0], [1], [0, 0, 1, 1], [], []>} : vector<32x48xf32>, vector<48x32xf32>, vector<32x32xf32> -> vector<32x32xf32>
    %c0_3 = arith.constant 0 : index
    %c0_4 = arith.constant 0 : index
    %3 = vector.load %arg3[%c0_3, %c0_4] : memref<1x32xf32, #tpu.memory_space<vmem>>, vector<1x32xf32>
    %4 = vector.broadcast %3 : vector<1x32xf32> to vector<32x32xf32>
    %5 = arith.addf %2, %4 : vector<32x32xf32>
    %c0_5 = arith.constant 0 : index
    %c0_6 = arith.constant 0 : index
    %6 = vector.load %arg4[%c0_5, %c0_6] : memref<32x32xf32, #tpu.memory_space<vmem>>, vector<32x32xf32>
    tpu.vector_store %arg4[%c0_5, %c0_6], %5 {strides = array<i32>} : memref<32x32xf32, #tpu.memory_space<vmem>>, vector<32x32xf32>,
    return
  }
  func.func @transform_0(%arg0: i32) -> (i32, i32) {
    %c0_i32 = arith.constant 0 : i32
    %c0_i32_0 = arith.constant 0 : i32
    return %arg0, %c0_i32 : i32, i32
  }
  func.func @transform_1(%arg0: i32) -> (i32, i32) {
    %c0_i32 = arith.constant 0 : i32
    %c0_i32_0 = arith.constant 0 : i32
    %c0_i32_1 = arith.constant 0 : i32
    return %c0_i32, %c0_i32_0 : i32, i32
  }
  func.func @transform_2(%arg0: i32) -> (i32, i32) {
    %c0_i32 = arith.constant 0 : i32
    %c0_i32_0 = arith.constant 0 : i32
    %c0_i32_1 = arith.constant 0 : i32
    return %c0_i32, %c0_i32_0 : i32, i32
  }
  func.func @transform_3(%arg0: i32) -> (i32, i32) {
    %c0_i32 = arith.constant 0 : i32
    %c0_i32_0 = arith.constant 0 : i32
    return %arg0, %c0_i32 : i32, i32
  }
}

module attributes {stable_mosaic.version = 11 : i64} {
  func.func @_layer_norm_kernel(%arg0: i32, %arg1: memref<32x32xf32, #tpu.memory_space<vmem>>, %arg2: memref<1x32xf32, #tpu.memory_space<vmem>>, %arg3: memref<1x32xf32, #tpu.memory_space<vmem>>, %arg4: memref<32x32xf32, #tpu.memory_space<vmem>>) attributes {dimension_semantics = [#tpu.dimension_semantics<parallel>], iteration_bounds = array<i64: 1>, scalar_prefetch = 0 : i64, scratch_operands = 0 : i64, tpu.core_type = #tpu.core_type<tc>, window_params = [{transform_indices = @transform_0, window_bounds = array<i64: 32, 32>}, {pipeline_mode = #tpu.pipeline_mode<synchronous>, transform_indices = @transform_1, window_bounds = array<i64: 1, 32>}, {pipeline_mode = #tpu.pipeline_mode<synchronous>, transform_indices = @transform_2, window_bounds = array<i64: 1, 32>}, {transform_indices = @transform_3, window_bounds = array<i64: 32, 32>}]} {
    %c0 = arith.constant 0 : index
    %c0_0 = arith.constant 0 : index
    %0 = vector.load %arg1[%c0, %c0_0] : memref<32x32xf32, #tpu.memory_space<vmem>>, vector<32x32xf32>
    %cst = arith.constant dense<0.000000e+00> : vector<32xf32>
    %1 = vector.multi_reduction <add>, %0, %cst [1] : vector<32x32xf32> to vector<32xf32>
    %2 = vector.shape_cast %1 : vector<32xf32> to vector<32x1xf32>
    %cst_1 = arith.constant 3.200000e+01 : f32
    %3 = vector.broadcast %cst_1 : f32 to vector<32x1xf32>
    %4 = arith.divf %2, %3 : vector<32x1xf32>
    %5 = vector.broadcast %4 : vector<32x1xf32> to vector<32x32xf32>
    %6 = arith.subf %0, %5 : vector<32x32xf32>
    %7 = arith.mulf %6, %6 : vector<32x32xf32>
    %cst_2 = arith.constant dense<0.000000e+00> : vector<32xf32>
    %8 = vector.multi_reduction <add>, %7, %cst_2 [1] : vector<32x32xf32> to vector<32xf32>
    %9 = vector.shape_cast %8 : vector<32xf32> to vector<32x1xf32>
    %cst_3 = arith.constant 3.200000e+01 : f32
    %10 = vector.broadcast %cst_3 : f32 to vector<32x1xf32>
    %11 = arith.divf %9, %10 : vector<32x1xf32>
    %cst_4 = arith.constant 9.99999974E-6 : f32
    %12 = vector.broadcast %cst_4 : f32 to vector<32x1xf32>
    %13 = arith.addf %11, %12 : vector<32x1xf32>
    %14 = math.rsqrt %13 : vector<32x1xf32>
    %15 = vector.broadcast %14 : vector<32x1xf32> to vector<32x32xf32>
    %16 = arith.mulf %6, %15 : vector<32x32xf32>
    %c0_5 = arith.constant 0 : index
    %c0_6 = arith.constant 0 : index
    %17 = vector.load %arg2[%c0_5, %c0_6] : memref<1x32xf32, #tpu.memory_space<vmem>>, vector<1x32xf32>
    %18 = vector.broadcast %17 : vector<1x32xf32> to vector<32x32xf32>
    %19 = arith.mulf %16, %18 : vector<32x32xf32>
    %c0_7 = arith.constant 0 : index
    %c0_8 = arith.constant 0 : index
    %20 = vector.load %arg3[%c0_7, %c0_8] : memref<1x32xf32, #tpu.memory_space<vmem>>, vector<1x32xf32>
    %21 = vector.broadcast %20 : vector<1x32xf32> to vector<32x32xf32>
    %22 = arith.addf %19, %21 : vector<32x32xf32>
    %c0_9 = arith.constant 0 : index
    %c0_10 = arith.constant 0 : index
    %23 = vector.load %arg4[%c0_9, %c0_10] : memref<32x32xf32, #tpu.memory_space<vmem>>, vector<32x32xf32>
    tpu.vector_store %arg4[%c0_9, %c0_10], %22 {strides = array<i32>} : memref<32x32xf32, #tpu.memory_space<vmem>>, vector<32x32xf32>,
    return
  }
  func.func @transform_0(%arg0: i32) -> (i32, i32) {
    %c0_i32 = arith.constant 0 : i32
    %c0_i32_0 = arith.constant 0 : i32
    return %arg0, %c0_i32 : i32, i32
  }
  func.func @transform_1(%arg0: i32) -> (i32, i32) {
    %c0_i32 = arith.constant 0 : i32
    %c0_i32_0 = arith.constant 0 : i32
    %c0_i32_1 = arith.constant 0 : i32
    return %c0_i32, %c0_i32_0 : i32, i32
  }
  func.func @transform_2(%arg0: i32) -> (i32, i32) {
    %c0_i32 = arith.constant 0 : i32
    %c0_i32_0 = arith.constant 0 : i32
    %c0_i32_1 = arith.constant 0 : i32
    return %c0_i32, %c0_i32_0 : i32, i32
  }
  func.func @transform_3(%arg0: i32) -> (i32, i32) {
    %c0_i32 = arith.constant 0 : i32
    %c0_i32_0 = arith.constant 0 : i32
    return %arg0, %c0_i32 : i32, i32
  }
}

module attributes {stable_mosaic.version = 11 : i64} {
  func.func @_layer_norm_kernel(%arg0: i32, %arg1: memref<96x32xf32, #tpu.memory_space<vmem>>, %arg2: memref<1x32xf32, #tpu.memory_space<vmem>>, %arg3: memref<1x32xf32, #tpu.memory_space<vmem>>, %arg4: memref<96x32xf32, #tpu.memory_space<vmem>>) attributes {dimension_semantics = [#tpu.dimension_semantics<parallel>], iteration_bounds = array<i64: 1>, scalar_prefetch = 0 : i64, scratch_operands = 0 : i64, tpu.core_type = #tpu.core_type<tc>, window_params = [{transform_indices = @transform_0, window_bounds = array<i64: 96, 32>}, {pipeline_mode = #tpu.pipeline_mode<synchronous>, transform_indices = @transform_1, window_bounds = array<i64: 1, 32>}, {pipeline_mode = #tpu.pipeline_mode<synchronous>, transform_indices = @transform_2, window_bounds = array<i64: 1, 32>}, {transform_indices = @transform_3, window_bounds = array<i64: 96, 32>}]} {
    %c0 = arith.constant 0 : index
    %c0_0 = arith.constant 0 : index
    %0 = vector.load %arg1[%c0, %c0_0] : memref<96x32xf32, #tpu.memory_space<vmem>>, vector<96x32xf32>
    %cst = arith.constant dense<0.000000e+00> : vector<96xf32>
    %1 = vector.multi_reduction <add>, %0, %cst [1] : vector<96x32xf32> to vector<96xf32>
    %2 = vector.shape_cast %1 : vector<96xf32> to vector<96x1xf32>
    %cst_1 = arith.constant 3.200000e+01 : f32
    %3 = vector.broadcast %cst_1 : f32 to vector<96x1xf32>
    %4 = arith.divf %2, %3 : vector<96x1xf32>
    %5 = vector.broadcast %4 : vector<96x1xf32> to vector<96x32xf32>
    %6 = arith.subf %0, %5 : vector<96x32xf32>
    %7 = arith.mulf %6, %6 : vector<96x32xf32>
    %cst_2 = arith.constant dense<0.000000e+00> : vector<96xf32>
    %8 = vector.multi_reduction <add>, %7, %cst_2 [1] : vector<96x32xf32> to vector<96xf32>
    %9 = vector.shape_cast %8 : vector<96xf32> to vector<96x1xf32>
    %cst_3 = arith.constant 3.200000e+01 : f32
    %10 = vector.broadcast %cst_3 : f32 to vector<96x1xf32>
    %11 = arith.divf %9, %10 : vector<96x1xf32>
    %cst_4 = arith.constant 9.99999974E-6 : f32
    %12 = vector.broadcast %cst_4 : f32 to vector<96x1xf32>
    %13 = arith.addf %11, %12 : vector<96x1xf32>
    %14 = math.rsqrt %13 : vector<96x1xf32>
    %15 = vector.broadcast %14 : vector<96x1xf32> to vector<96x32xf32>
    %16 = arith.mulf %6, %15 : vector<96x32xf32>
    %c0_5 = arith.constant 0 : index
    %c0_6 = arith.constant 0 : index
    %17 = vector.load %arg2[%c0_5, %c0_6] : memref<1x32xf32, #tpu.memory_space<vmem>>, vector<1x32xf32>
    %18 = vector.broadcast %17 : vector<1x32xf32> to vector<96x32xf32>
    %19 = arith.mulf %16, %18 : vector<96x32xf32>
    %c0_7 = arith.constant 0 : index
    %c0_8 = arith.constant 0 : index
    %20 = vector.load %arg3[%c0_7, %c0_8] : memref<1x32xf32, #tpu.memory_space<vmem>>, vector<1x32xf32>
    %21 = vector.broadcast %20 : vector<1x32xf32> to vector<96x32xf32>
    %22 = arith.addf %19, %21 : vector<96x32xf32>
    %c0_9 = arith.constant 0 : index
    %c0_10 = arith.constant 0 : index
    %23 = vector.load %arg4[%c0_9, %c0_10] : memref<96x32xf32, #tpu.memory_space<vmem>>, vector<96x32xf32>
    tpu.vector_store %arg4[%c0_9, %c0_10], %22 {strides = array<i32>} : memref<96x32xf32, #tpu.memory_space<vmem>>, vector<96x32xf32>,
    return
  }
  func.func @transform_0(%arg0: i32) -> (i32, i32) {
    %c0_i32 = arith.constant 0 : i32
    %c0_i32_0 = arith.constant 0 : i32
    return %arg0, %c0_i32 : i32, i32
  }
  func.func @transform_1(%arg0: i32) -> (i32, i32) {
    %c0_i32 = arith.constant 0 : i32
    %c0_i32_0 = arith.constant 0 : i32
    %c0_i32_1 = arith.constant 0 : i32
    return %c0_i32, %c0_i32_0 : i32, i32
  }
  func.func @transform_2(%arg0: i32) -> (i32, i32) {
    %c0_i32 = arith.constant 0 : i32
    %c0_i32_0 = arith.constant 0 : i32
    %c0_i32_1 = arith.constant 0 : i32
    return %c0_i32, %c0_i32_0 : i32, i32
  }
  func.func @transform_3(%arg0: i32) -> (i32, i32) {
    %c0_i32 = arith.constant 0 : i32
    %c0_i32_0 = arith.constant 0 : i32
    return %arg0, %c0_i32 : i32, i32
  }
}

module attributes {stable_mosaic.version = 11 : i64} {
  func.func @_dwconv3x3_kernel(%arg0: i32, %arg1: memref<1x10x10x32xf32, #tpu.memory_space<vmem>>, %arg2: memref<9x32xf32, #tpu.memory_space<vmem>>, %arg3: memref<1x8x8x32xf32, #tpu.memory_space<vmem>>) attributes {dimension_semantics = [#tpu.dimension_semantics<parallel>], iteration_bounds = array<i64: 1>, scalar_prefetch = 0 : i64, scratch_operands = 0 : i64, tpu.core_type = #tpu.core_type<tc>, window_params = [{transform_indices = @transform_0, window_bounds = array<i64: 1, 10, 10, 32>}, {pipeline_mode = #tpu.pipeline_mode<synchronous>, transform_indices = @transform_1, window_bounds = array<i64: 9, 32>}, {transform_indices = @transform_2, window_bounds = array<i64: 1, 8, 8, 32>}]} {
    %c0 = arith.constant 0 : index
    %c0_0 = arith.constant 0 : index
    %c0_1 = arith.constant 0 : index
    %c0_2 = arith.constant 0 : index
    %0 = vector.load %arg1[%c0, %c0_0, %c0_1, %c0_2] : memref<1x10x10x32xf32, #tpu.memory_space<vmem>>, vector<1x10x10x32xf32>
    %1 = vector.shape_cast %0 : vector<1x10x10x32xf32> to vector<10x10x32xf32>
    %c0_3 = arith.constant 0 : index
    %c0_4 = arith.constant 0 : index
    %2 = vector.load %arg2[%c0_3, %c0_4] : memref<9x32xf32, #tpu.memory_space<vmem>>, vector<9x32xf32>
    %cst = arith.constant 0.000000e+00 : f32
    %3 = vector.broadcast %cst : f32 to vector<8x8x32xf32>
    %4 = vector.extract_strided_slice %2 {offsets = [0, 0], sizes = [1, 32], strides = [1, 1]} : vector<9x32xf32> to vector<1x32xf32>
    %5 = vector.shape_cast %4 : vector<1x32xf32> to vector<1x1x32xf32>
    %6 = vector.extract_strided_slice %1 {offsets = [0, 0, 0], sizes = [8, 8, 32], strides = [1, 1, 1]} : vector<10x10x32xf32> to vector<8x8x32xf32>
    %7 = vector.broadcast %5 : vector<1x1x32xf32> to vector<8x8x32xf32>
    %8 = arith.mulf %7, %6 : vector<8x8x32xf32>
    %9 = arith.addf %3, %8 : vector<8x8x32xf32>
    %10 = vector.extract_strided_slice %2 {offsets = [1, 0], sizes = [1, 32], strides = [1, 1]} : vector<9x32xf32> to vector<1x32xf32>
    %11 = vector.shape_cast %10 : vector<1x32xf32> to vector<1x1x32xf32>
    %12 = vector.extract_strided_slice %1 {offsets = [0, 1, 0], sizes = [8, 8, 32], strides = [1, 1, 1]} : vector<10x10x32xf32> to vector<8x8x32xf32>
    %13 = vector.broadcast %11 : vector<1x1x32xf32> to vector<8x8x32xf32>
    %14 = arith.mulf %13, %12 : vector<8x8x32xf32>
    %15 = arith.addf %9, %14 : vector<8x8x32xf32>
    %16 = vector.extract_strided_slice %2 {offsets = [2, 0], sizes = [1, 32], strides = [1, 1]} : vector<9x32xf32> to vector<1x32xf32>
    %17 = vector.shape_cast %16 : vector<1x32xf32> to vector<1x1x32xf32>
    %18 = vector.extract_strided_slice %1 {offsets = [0, 2, 0], sizes = [8, 8, 32], strides = [1, 1, 1]} : vector<10x10x32xf32> to vector<8x8x32xf32>
    %19 = vector.broadcast %17 : vector<1x1x32xf32> to vector<8x8x32xf32>
    %20 = arith.mulf %19, %18 : vector<8x8x32xf32>
    %21 = arith.addf %15, %20 : vector<8x8x32xf32>
    %22 = vector.extract_strided_slice %2 {offsets = [3, 0], sizes = [1, 32], strides = [1, 1]} : vector<9x32xf32> to vector<1x32xf32>
    %23 = vector.shape_cast %22 : vector<1x32xf32> to vector<1x1x32xf32>
    %24 = vector.extract_strided_slice %1 {offsets = [1, 0, 0], sizes = [8, 8, 32], strides = [1, 1, 1]} : vector<10x10x32xf32> to vector<8x8x32xf32>
    %25 = vector.broadcast %23 : vector<1x1x32xf32> to vector<8x8x32xf32>
    %26 = arith.mulf %25, %24 : vector<8x8x32xf32>
    %27 = arith.addf %21, %26 : vector<8x8x32xf32>
    %28 = vector.extract_strided_slice %2 {offsets = [4, 0], sizes = [1, 32], strides = [1, 1]} : vector<9x32xf32> to vector<1x32xf32>
    %29 = vector.shape_cast %28 : vector<1x32xf32> to vector<1x1x32xf32>
    %30 = vector.extract_strided_slice %1 {offsets = [1, 1, 0], sizes = [8, 8, 32], strides = [1, 1, 1]} : vector<10x10x32xf32> to vector<8x8x32xf32>
    %31 = vector.broadcast %29 : vector<1x1x32xf32> to vector<8x8x32xf32>
    %32 = arith.mulf %31, %30 : vector<8x8x32xf32>
    %33 = arith.addf %27, %32 : vector<8x8x32xf32>
    %34 = vector.extract_strided_slice %2 {offsets = [5, 0], sizes = [1, 32], strides = [1, 1]} : vector<9x32xf32> to vector<1x32xf32>
    %35 = vector.shape_cast %34 : vector<1x32xf32> to vector<1x1x32xf32>
    %36 = vector.extract_strided_slice %1 {offsets = [1, 2, 0], sizes = [8, 8, 32], strides = [1, 1, 1]} : vector<10x10x32xf32> to vector<8x8x32xf32>
    %37 = vector.broadcast %35 : vector<1x1x32xf32> to vector<8x8x32xf32>
    %38 = arith.mulf %37, %36 : vector<8x8x32xf32>
    %39 = arith.addf %33, %38 : vector<8x8x32xf32>
    %40 = vector.extract_strided_slice %2 {offsets = [6, 0], sizes = [1, 32], strides = [1, 1]} : vector<9x32xf32> to vector<1x32xf32>
    %41 = vector.shape_cast %40 : vector<1x32xf32> to vector<1x1x32xf32>
    %42 = vector.extract_strided_slice %1 {offsets = [2, 0, 0], sizes = [8, 8, 32], strides = [1, 1, 1]} : vector<10x10x32xf32> to vector<8x8x32xf32>
    %43 = vector.broadcast %41 : vector<1x1x32xf32> to vector<8x8x32xf32>
    %44 = arith.mulf %43, %42 : vector<8x8x32xf32>
    %45 = arith.addf %39, %44 : vector<8x8x32xf32>
    %46 = vector.extract_strided_slice %2 {offsets = [7, 0], sizes = [1, 32], strides = [1, 1]} : vector<9x32xf32> to vector<1x32xf32>
    %47 = vector.shape_cast %46 : vector<1x32xf32> to vector<1x1x32xf32>
    %48 = vector.extract_strided_slice %1 {offsets = [2, 1, 0], sizes = [8, 8, 32], strides = [1, 1, 1]} : vector<10x10x32xf32> to vector<8x8x32xf32>
    %49 = vector.broadcast %47 : vector<1x1x32xf32> to vector<8x8x32xf32>
    %50 = arith.mulf %49, %48 : vector<8x8x32xf32>
    %51 = arith.addf %45, %50 : vector<8x8x32xf32>
    %52 = vector.extract_strided_slice %2 {offsets = [8, 0], sizes = [1, 32], strides = [1, 1]} : vector<9x32xf32> to vector<1x32xf32>
    %53 = vector.shape_cast %52 : vector<1x32xf32> to vector<1x1x32xf32>
    %54 = vector.extract_strided_slice %1 {offsets = [2, 2, 0], sizes = [8, 8, 32], strides = [1, 1, 1]} : vector<10x10x32xf32> to vector<8x8x32xf32>
    %55 = vector.broadcast %53 : vector<1x1x32xf32> to vector<8x8x32xf32>
    %56 = arith.mulf %55, %54 : vector<8x8x32xf32>
    %57 = arith.addf %51, %56 : vector<8x8x32xf32>
    %c0_5 = arith.constant 0 : index
    %c0_6 = arith.constant 0 : index
    %c0_7 = arith.constant 0 : index
    %c0_8 = arith.constant 0 : index
    %58 = vector.load %arg3[%c0_5, %c0_6, %c0_7, %c0_8] : memref<1x8x8x32xf32, #tpu.memory_space<vmem>>, vector<1x8x8x32xf32>
    %59 = vector.shape_cast %58 : vector<1x8x8x32xf32> to vector<8x8x32xf32>
    %60 = vector.shape_cast %57 : vector<8x8x32xf32> to vector<1x8x8x32xf32>
    tpu.vector_store %arg3[%c0_5, %c0_6, %c0_7, %c0_8], %60 {strides = array<i32>} : memref<1x8x8x32xf32, #tpu.memory_space<vmem>>, vector<1x8x8x32xf32>,
    return
  }
  func.func @transform_0(%arg0: i32) -> (i32, i32, i32, i32) {
    %c0_i32 = arith.constant 0 : i32
    %c0_i32_0 = arith.constant 0 : i32
    %c0_i32_1 = arith.constant 0 : i32
    %c0_i32_2 = arith.constant 0 : i32
    return %arg0, %c0_i32, %c0_i32_0, %c0_i32_1 : i32, i32, i32, i32
  }
  func.func @transform_1(%arg0: i32) -> (i32, i32) {
    %c0_i32 = arith.constant 0 : i32
    %c0_i32_0 = arith.constant 0 : i32
    %c0_i32_1 = arith.constant 0 : i32
    return %c0_i32, %c0_i32_0 : i32, i32
  }
  func.func @transform_2(%arg0: i32) -> (i32, i32, i32, i32) {
    %c0_i32 = arith.constant 0 : i32
    %c0_i32_0 = arith.constant 0 : i32
    %c0_i32_1 = arith.constant 0 : i32
    %c0_i32_2 = arith.constant 0 : i32
    return %arg0, %c0_i32, %c0_i32_0, %c0_i32_1 : i32, i32, i32, i32
  }
}

module attributes {stable_mosaic.version = 11 : i64} {
  func.func @_frozen_bn_kernel(%arg0: i32, %arg1: memref<16x32xf32, #tpu.memory_space<vmem>>, %arg2: memref<1x32xf32, #tpu.memory_space<vmem>>, %arg3: memref<1x32xf32, #tpu.memory_space<vmem>>, %arg4: memref<16x32xf32, #tpu.memory_space<vmem>>) attributes {dimension_semantics = [#tpu.dimension_semantics<parallel>], iteration_bounds = array<i64: 1>, scalar_prefetch = 0 : i64, scratch_operands = 0 : i64, tpu.core_type = #tpu.core_type<tc>, window_params = [{transform_indices = @transform_0, window_bounds = array<i64: 16, 32>}, {pipeline_mode = #tpu.pipeline_mode<synchronous>, transform_indices = @transform_1, window_bounds = array<i64: 1, 32>}, {pipeline_mode = #tpu.pipeline_mode<synchronous>, transform_indices = @transform_2, window_bounds = array<i64: 1, 32>}, {transform_indices = @transform_3, window_bounds = array<i64: 16, 32>}]} {
    %c0 = arith.constant 0 : index
    %c0_0 = arith.constant 0 : index
    %0 = vector.load %arg1[%c0, %c0_0] : memref<16x32xf32, #tpu.memory_space<vmem>>, vector<16x32xf32>
    %c0_1 = arith.constant 0 : index
    %c0_2 = arith.constant 0 : index
    %1 = vector.load %arg2[%c0_1, %c0_2] : memref<1x32xf32, #tpu.memory_space<vmem>>, vector<1x32xf32>
    %2 = vector.broadcast %1 : vector<1x32xf32> to vector<16x32xf32>
    %3 = arith.mulf %0, %2 : vector<16x32xf32>
    %c0_3 = arith.constant 0 : index
    %c0_4 = arith.constant 0 : index
    %4 = vector.load %arg3[%c0_3, %c0_4] : memref<1x32xf32, #tpu.memory_space<vmem>>, vector<1x32xf32>
    %5 = vector.broadcast %4 : vector<1x32xf32> to vector<16x32xf32>
    %6 = arith.addf %3, %5 : vector<16x32xf32>
    %c0_5 = arith.constant 0 : index
    %c0_6 = arith.constant 0 : index
    %7 = vector.load %arg4[%c0_5, %c0_6] : memref<16x32xf32, #tpu.memory_space<vmem>>, vector<16x32xf32>
    tpu.vector_store %arg4[%c0_5, %c0_6], %6 {strides = array<i32>} : memref<16x32xf32, #tpu.memory_space<vmem>>, vector<16x32xf32>,
    return
  }
  func.func @transform_0(%arg0: i32) -> (i32, i32) {
    %c0_i32 = arith.constant 0 : i32
    %c0_i32_0 = arith.constant 0 : i32
    return %arg0, %c0_i32 : i32, i32
  }
  func.func @transform_1(%arg0: i32) -> (i32, i32) {
    %c0_i32 = arith.constant 0 : i32
    %c0_i32_0 = arith.constant 0 : i32
    %c0_i32_1 = arith.constant 0 : i32
    return %c0_i32, %c0_i32_0 : i32, i32
  }
  func.func @transform_2(%arg0: i32) -> (i32, i32) {
    %c0_i32 = arith.constant 0 : i32
    %c0_i32_0 = arith.constant 0 : i32
    %c0_i32_1 = arith.constant 0 : i32
    return %c0_i32, %c0_i32_0 : i32, i32
  }
  func.func @transform_3(%arg0: i32) -> (i32, i32) {
    %c0_i32 = arith.constant 0 : i32
    %c0_i32_0 = arith.constant 0 : i32
    return %arg0, %c0_i32 : i32, i32
  }
}

module attributes {stable_mosaic.version = 11 : i64} {
  func.func @_dwconv3x3_kernel(%arg0: i32, %arg1: memref<1x6x6x32xf32, #tpu.memory_space<vmem>>, %arg2: memref<9x32xf32, #tpu.memory_space<vmem>>, %arg3: memref<1x4x4x32xf32, #tpu.memory_space<vmem>>) attributes {dimension_semantics = [#tpu.dimension_semantics<parallel>], iteration_bounds = array<i64: 2>, scalar_prefetch = 0 : i64, scratch_operands = 0 : i64, tpu.core_type = #tpu.core_type<tc>, window_params = [{transform_indices = @transform_0, window_bounds = array<i64: 1, 6, 6, 32>}, {pipeline_mode = #tpu.pipeline_mode<synchronous>, transform_indices = @transform_1, window_bounds = array<i64: 9, 32>}, {transform_indices = @transform_2, window_bounds = array<i64: 1, 4, 4, 32>}]} {
    %c0 = arith.constant 0 : index
    %c0_0 = arith.constant 0 : index
    %c0_1 = arith.constant 0 : index
    %c0_2 = arith.constant 0 : index
    %0 = vector.load %arg1[%c0, %c0_0, %c0_1, %c0_2] : memref<1x6x6x32xf32, #tpu.memory_space<vmem>>, vector<1x6x6x32xf32>
    %1 = vector.shape_cast %0 : vector<1x6x6x32xf32> to vector<6x6x32xf32>
    %c0_3 = arith.constant 0 : index
    %c0_4 = arith.constant 0 : index
    %2 = vector.load %arg2[%c0_3, %c0_4] : memref<9x32xf32, #tpu.memory_space<vmem>>, vector<9x32xf32>
    %cst = arith.constant 0.000000e+00 : f32
    %3 = vector.broadcast %cst : f32 to vector<4x4x32xf32>
    %4 = vector.extract_strided_slice %2 {offsets = [0, 0], sizes = [1, 32], strides = [1, 1]} : vector<9x32xf32> to vector<1x32xf32>
    %5 = vector.shape_cast %4 : vector<1x32xf32> to vector<1x1x32xf32>
    %6 = vector.extract_strided_slice %1 {offsets = [0, 0, 0], sizes = [4, 4, 32], strides = [1, 1, 1]} : vector<6x6x32xf32> to vector<4x4x32xf32>
    %7 = vector.broadcast %5 : vector<1x1x32xf32> to vector<4x4x32xf32>
    %8 = arith.mulf %7, %6 : vector<4x4x32xf32>
    %9 = arith.addf %3, %8 : vector<4x4x32xf32>
    %10 = vector.extract_strided_slice %2 {offsets = [1, 0], sizes = [1, 32], strides = [1, 1]} : vector<9x32xf32> to vector<1x32xf32>
    %11 = vector.shape_cast %10 : vector<1x32xf32> to vector<1x1x32xf32>
    %12 = vector.extract_strided_slice %1 {offsets = [0, 1, 0], sizes = [4, 4, 32], strides = [1, 1, 1]} : vector<6x6x32xf32> to vector<4x4x32xf32>
    %13 = vector.broadcast %11 : vector<1x1x32xf32> to vector<4x4x32xf32>
    %14 = arith.mulf %13, %12 : vector<4x4x32xf32>
    %15 = arith.addf %9, %14 : vector<4x4x32xf32>
    %16 = vector.extract_strided_slice %2 {offsets = [2, 0], sizes = [1, 32], strides = [1, 1]} : vector<9x32xf32> to vector<1x32xf32>
    %17 = vector.shape_cast %16 : vector<1x32xf32> to vector<1x1x32xf32>
    %18 = vector.extract_strided_slice %1 {offsets = [0, 2, 0], sizes = [4, 4, 32], strides = [1, 1, 1]} : vector<6x6x32xf32> to vector<4x4x32xf32>
    %19 = vector.broadcast %17 : vector<1x1x32xf32> to vector<4x4x32xf32>
    %20 = arith.mulf %19, %18 : vector<4x4x32xf32>
    %21 = arith.addf %15, %20 : vector<4x4x32xf32>
    %22 = vector.extract_strided_slice %2 {offsets = [3, 0], sizes = [1, 32], strides = [1, 1]} : vector<9x32xf32> to vector<1x32xf32>
    %23 = vector.shape_cast %22 : vector<1x32xf32> to vector<1x1x32xf32>
    %24 = vector.extract_strided_slice %1 {offsets = [1, 0, 0], sizes = [4, 4, 32], strides = [1, 1, 1]} : vector<6x6x32xf32> to vector<4x4x32xf32>
    %25 = vector.broadcast %23 : vector<1x1x32xf32> to vector<4x4x32xf32>
    %26 = arith.mulf %25, %24 : vector<4x4x32xf32>
    %27 = arith.addf %21, %26 : vector<4x4x32xf32>
    %28 = vector.extract_strided_slice %2 {offsets = [4, 0], sizes = [1, 32], strides = [1, 1]} : vector<9x32xf32> to vector<1x32xf32>
    %29 = vector.shape_cast %28 : vector<1x32xf32> to vector<1x1x32xf32>
    %30 = vector.extract_strided_slice %1 {offsets = [1, 1, 0], sizes = [4, 4, 32], strides = [1, 1, 1]} : vector<6x6x32xf32> to vector<4x4x32xf32>
    %31 = vector.broadcast %29 : vector<1x1x32xf32> to vector<4x4x32xf32>
    %32 = arith.mulf %31, %30 : vector<4x4x32xf32>
    %33 = arith.addf %27, %32 : vector<4x4x32xf32>
    %34 = vector.extract_strided_slice %2 {offsets = [5, 0], sizes = [1, 32], strides = [1, 1]} : vector<9x32xf32> to vector<1x32xf32>
    %35 = vector.shape_cast %34 : vector<1x32xf32> to vector<1x1x32xf32>
    %36 = vector.extract_strided_slice %1 {offsets = [1, 2, 0], sizes = [4, 4, 32], strides = [1, 1, 1]} : vector<6x6x32xf32> to vector<4x4x32xf32>
    %37 = vector.broadcast %35 : vector<1x1x32xf32> to vector<4x4x32xf32>
    %38 = arith.mulf %37, %36 : vector<4x4x32xf32>
    %39 = arith.addf %33, %38 : vector<4x4x32xf32>
    %40 = vector.extract_strided_slice %2 {offsets = [6, 0], sizes = [1, 32], strides = [1, 1]} : vector<9x32xf32> to vector<1x32xf32>
    %41 = vector.shape_cast %40 : vector<1x32xf32> to vector<1x1x32xf32>
    %42 = vector.extract_strided_slice %1 {offsets = [2, 0, 0], sizes = [4, 4, 32], strides = [1, 1, 1]} : vector<6x6x32xf32> to vector<4x4x32xf32>
    %43 = vector.broadcast %41 : vector<1x1x32xf32> to vector<4x4x32xf32>
    %44 = arith.mulf %43, %42 : vector<4x4x32xf32>
    %45 = arith.addf %39, %44 : vector<4x4x32xf32>
    %46 = vector.extract_strided_slice %2 {offsets = [7, 0], sizes = [1, 32], strides = [1, 1]} : vector<9x32xf32> to vector<1x32xf32>
    %47 = vector.shape_cast %46 : vector<1x32xf32> to vector<1x1x32xf32>
    %48 = vector.extract_strided_slice %1 {offsets = [2, 1, 0], sizes = [4, 4, 32], strides = [1, 1, 1]} : vector<6x6x32xf32> to vector<4x4x32xf32>
    %49 = vector.broadcast %47 : vector<1x1x32xf32> to vector<4x4x32xf32>
    %50 = arith.mulf %49, %48 : vector<4x4x32xf32>
    %51 = arith.addf %45, %50 : vector<4x4x32xf32>
    %52 = vector.extract_strided_slice %2 {offsets = [8, 0], sizes = [1, 32], strides = [1, 1]} : vector<9x32xf32> to vector<1x32xf32>
    %53 = vector.shape_cast %52 : vector<1x32xf32> to vector<1x1x32xf32>
    %54 = vector.extract_strided_slice %1 {offsets = [2, 2, 0], sizes = [4, 4, 32], strides = [1, 1, 1]} : vector<6x6x32xf32> to vector<4x4x32xf32>
    %55 = vector.broadcast %53 : vector<1x1x32xf32> to vector<4x4x32xf32>
    %56 = arith.mulf %55, %54 : vector<4x4x32xf32>
    %57 = arith.addf %51, %56 : vector<4x4x32xf32>
    %c0_5 = arith.constant 0 : index
    %c0_6 = arith.constant 0 : index
    %c0_7 = arith.constant 0 : index
    %c0_8 = arith.constant 0 : index
    %58 = vector.load %arg3[%c0_5, %c0_6, %c0_7, %c0_8] : memref<1x4x4x32xf32, #tpu.memory_space<vmem>>, vector<1x4x4x32xf32>
    %59 = vector.shape_cast %58 : vector<1x4x4x32xf32> to vector<4x4x32xf32>
    %60 = vector.shape_cast %57 : vector<4x4x32xf32> to vector<1x4x4x32xf32>
    tpu.vector_store %arg3[%c0_5, %c0_6, %c0_7, %c0_8], %60 {strides = array<i32>} : memref<1x4x4x32xf32, #tpu.memory_space<vmem>>, vector<1x4x4x32xf32>,
    return
  }
  func.func @transform_0(%arg0: i32) -> (i32, i32, i32, i32) {
    %c0_i32 = arith.constant 0 : i32
    %c0_i32_0 = arith.constant 0 : i32
    %c0_i32_1 = arith.constant 0 : i32
    %c0_i32_2 = arith.constant 0 : i32
    return %arg0, %c0_i32, %c0_i32_0, %c0_i32_1 : i32, i32, i32, i32
  }
  func.func @transform_1(%arg0: i32) -> (i32, i32) {
    %c0_i32 = arith.constant 0 : i32
    %c0_i32_0 = arith.constant 0 : i32
    %c0_i32_1 = arith.constant 0 : i32
    return %c0_i32, %c0_i32_0 : i32, i32
  }
  func.func @transform_2(%arg0: i32) -> (i32, i32, i32, i32) {
    %c0_i32 = arith.constant 0 : i32
    %c0_i32_0 = arith.constant 0 : i32
    %c0_i32_1 = arith.constant 0 : i32
    %c0_i32_2 = arith.constant 0 : i32
    return %arg0, %c0_i32, %c0_i32_0, %c0_i32_1 : i32, i32, i32, i32
  }
}

module attributes {stable_mosaic.version = 11 : i64} {
  func.func @_frozen_bn_kernel(%arg0: i32, %arg1: memref<8x32xf32, #tpu.memory_space<vmem>>, %arg2: memref<1x32xf32, #tpu.memory_space<vmem>>, %arg3: memref<1x32xf32, #tpu.memory_space<vmem>>, %arg4: memref<8x32xf32, #tpu.memory_space<vmem>>) attributes {dimension_semantics = [#tpu.dimension_semantics<parallel>], iteration_bounds = array<i64: 1>, scalar_prefetch = 0 : i64, scratch_operands = 0 : i64, tpu.core_type = #tpu.core_type<tc>, window_params = [{transform_indices = @transform_0, window_bounds = array<i64: 8, 32>}, {pipeline_mode = #tpu.pipeline_mode<synchronous>, transform_indices = @transform_1, window_bounds = array<i64: 1, 32>}, {pipeline_mode = #tpu.pipeline_mode<synchronous>, transform_indices = @transform_2, window_bounds = array<i64: 1, 32>}, {transform_indices = @transform_3, window_bounds = array<i64: 8, 32>}]} {
    %c0 = arith.constant 0 : index
    %c0_0 = arith.constant 0 : index
    %0 = vector.load %arg1[%c0, %c0_0] : memref<8x32xf32, #tpu.memory_space<vmem>>, vector<8x32xf32>
    %c0_1 = arith.constant 0 : index
    %c0_2 = arith.constant 0 : index
    %1 = vector.load %arg2[%c0_1, %c0_2] : memref<1x32xf32, #tpu.memory_space<vmem>>, vector<1x32xf32>
    %2 = vector.broadcast %1 : vector<1x32xf32> to vector<8x32xf32>
    %3 = arith.mulf %0, %2 : vector<8x32xf32>
    %c0_3 = arith.constant 0 : index
    %c0_4 = arith.constant 0 : index
    %4 = vector.load %arg3[%c0_3, %c0_4] : memref<1x32xf32, #tpu.memory_space<vmem>>, vector<1x32xf32>
    %5 = vector.broadcast %4 : vector<1x32xf32> to vector<8x32xf32>
    %6 = arith.addf %3, %5 : vector<8x32xf32>
    %c0_5 = arith.constant 0 : index
    %c0_6 = arith.constant 0 : index
    %7 = vector.load %arg4[%c0_5, %c0_6] : memref<8x32xf32, #tpu.memory_space<vmem>>, vector<8x32xf32>
    tpu.vector_store %arg4[%c0_5, %c0_6], %6 {strides = array<i32>} : memref<8x32xf32, #tpu.memory_space<vmem>>, vector<8x32xf32>,
    return
  }
  func.func @transform_0(%arg0: i32) -> (i32, i32) {
    %c0_i32 = arith.constant 0 : i32
    %c0_i32_0 = arith.constant 0 : i32
    return %arg0, %c0_i32 : i32, i32
  }
  func.func @transform_1(%arg0: i32) -> (i32, i32) {
    %c0_i32 = arith.constant 0 : i32
    %c0_i32_0 = arith.constant 0 : i32
    %c0_i32_1 = arith.constant 0 : i32
    return %c0_i32, %c0_i32_0 : i32, i32
  }
  func.func @transform_2(%arg0: i32) -> (i32, i32) {
    %c0_i32 = arith.constant 0 : i32
    %c0_i32_0 = arith.constant 0 : i32
    %c0_i32_1 = arith.constant 0 : i32
    return %c0_i32, %c0_i32_0 : i32, i32
  }
  func.func @transform_3(%arg0: i32) -> (i32, i32) {
    %c0_i32 = arith.constant 0 : i32
    %c0_i32_0 = arith.constant 0 : i32
    return %arg0, %c0_i32 : i32, i32
  }
}

module attributes {stable_mosaic.version = 11 : i64} {
  func.func @_linear_kernel(%arg0: i32, %arg1: memref<24x32xf32, #tpu.memory_space<vmem>>, %arg2: memref<32x32xf32, #tpu.memory_space<vmem>>, %arg3: memref<1x32xf32, #tpu.memory_space<vmem>>, %arg4: memref<24x32xf32, #tpu.memory_space<vmem>>) attributes {dimension_semantics = [#tpu.dimension_semantics<parallel>], iteration_bounds = array<i64: 1>, scalar_prefetch = 0 : i64, scratch_operands = 0 : i64, tpu.core_type = #tpu.core_type<tc>, window_params = [{transform_indices = @transform_0, window_bounds = array<i64: 24, 32>}, {pipeline_mode = #tpu.pipeline_mode<synchronous>, transform_indices = @transform_1, window_bounds = array<i64: 32, 32>}, {pipeline_mode = #tpu.pipeline_mode<synchronous>, transform_indices = @transform_2, window_bounds = array<i64: 1, 32>}, {transform_indices = @transform_3, window_bounds = array<i64: 24, 32>}]} {
    %c0 = arith.constant 0 : index
    %c0_0 = arith.constant 0 : index
    %0 = vector.load %arg1[%c0, %c0_0] : memref<24x32xf32, #tpu.memory_space<vmem>>, vector<24x32xf32>
    %c0_1 = arith.constant 0 : index
    %c0_2 = arith.constant 0 : index
    %1 = vector.load %arg2[%c0_1, %c0_2] : memref<32x32xf32, #tpu.memory_space<vmem>>, vector<32x32xf32>
    %cst = arith.constant dense<0.000000e+00> : vector<24x32xf32>
    %2 = tpu.matmul %0, %1, %cst {dimension_numbers = #tpu.dot_dimension_numbers<[1], [0], [0], [1], [0, 0, 1, 1], [], []>} : vector<24x32xf32>, vector<32x32xf32>, vector<24x32xf32> -> vector<24x32xf32>
    %c0_3 = arith.constant 0 : index
    %c0_4 = arith.constant 0 : index
    %3 = vector.load %arg3[%c0_3, %c0_4] : memref<1x32xf32, #tpu.memory_space<vmem>>, vector<1x32xf32>
    %4 = vector.broadcast %3 : vector<1x32xf32> to vector<24x32xf32>
    %5 = arith.addf %2, %4 : vector<24x32xf32>
    %c0_5 = arith.constant 0 : index
    %c0_6 = arith.constant 0 : index
    %6 = vector.load %arg4[%c0_5, %c0_6] : memref<24x32xf32, #tpu.memory_space<vmem>>, vector<24x32xf32>
    tpu.vector_store %arg4[%c0_5, %c0_6], %5 {strides = array<i32>} : memref<24x32xf32, #tpu.memory_space<vmem>>, vector<24x32xf32>,
    return
  }
  func.func @transform_0(%arg0: i32) -> (i32, i32) {
    %c0_i32 = arith.constant 0 : i32
    %c0_i32_0 = arith.constant 0 : i32
    return %arg0, %c0_i32 : i32, i32
  }
  func.func @transform_1(%arg0: i32) -> (i32, i32) {
    %c0_i32 = arith.constant 0 : i32
    %c0_i32_0 = arith.constant 0 : i32
    %c0_i32_1 = arith.constant 0 : i32
    return %c0_i32, %c0_i32_0 : i32, i32
  }
  func.func @transform_2(%arg0: i32) -> (i32, i32) {
    %c0_i32 = arith.constant 0 : i32
    %c0_i32_0 = arith.constant 0 : i32
    %c0_i32_1 = arith.constant 0 : i32
    return %c0_i32, %c0_i32_0 : i32, i32
  }
  func.func @transform_3(%arg0: i32) -> (i32, i32) {
    %c0_i32 = arith.constant 0 : i32
    %c0_i32_0 = arith.constant 0 : i32
    return %arg0, %c0_i32 : i32, i32
  }
}

module attributes {stable_mosaic.version = 11 : i64} {
  func.func @_frozen_bn_kernel(%arg0: i32, %arg1: memref<64x32xf32, #tpu.memory_space<vmem>>, %arg2: memref<1x32xf32, #tpu.memory_space<vmem>>, %arg3: memref<1x32xf32, #tpu.memory_space<vmem>>, %arg4: memref<64x32xf32, #tpu.memory_space<vmem>>) attributes {dimension_semantics = [#tpu.dimension_semantics<parallel>], iteration_bounds = array<i64: 1>, scalar_prefetch = 0 : i64, scratch_operands = 0 : i64, tpu.core_type = #tpu.core_type<tc>, window_params = [{transform_indices = @transform_0, window_bounds = array<i64: 64, 32>}, {pipeline_mode = #tpu.pipeline_mode<synchronous>, transform_indices = @transform_1, window_bounds = array<i64: 1, 32>}, {pipeline_mode = #tpu.pipeline_mode<synchronous>, transform_indices = @transform_2, window_bounds = array<i64: 1, 32>}, {transform_indices = @transform_3, window_bounds = array<i64: 64, 32>}]} {
    %c0 = arith.constant 0 : index
    %c0_0 = arith.constant 0 : index
    %0 = vector.load %arg1[%c0, %c0_0] : memref<64x32xf32, #tpu.memory_space<vmem>>, vector<64x32xf32>
    %c0_1 = arith.constant 0 : index
    %c0_2 = arith.constant 0 : index
    %1 = vector.load %arg2[%c0_1, %c0_2] : memref<1x32xf32, #tpu.memory_space<vmem>>, vector<1x32xf32>
    %2 = vector.broadcast %1 : vector<1x32xf32> to vector<64x32xf32>
    %3 = arith.mulf %0, %2 : vector<64x32xf32>
    %c0_3 = arith.constant 0 : index
    %c0_4 = arith.constant 0 : index
    %4 = vector.load %arg3[%c0_3, %c0_4] : memref<1x32xf32, #tpu.memory_space<vmem>>, vector<1x32xf32>
    %5 = vector.broadcast %4 : vector<1x32xf32> to vector<64x32xf32>
    %6 = arith.addf %3, %5 : vector<64x32xf32>
    %c0_5 = arith.constant 0 : index
    %c0_6 = arith.constant 0 : index
    %7 = vector.load %arg4[%c0_5, %c0_6] : memref<64x32xf32, #tpu.memory_space<vmem>>, vector<64x32xf32>
    tpu.vector_store %arg4[%c0_5, %c0_6], %6 {strides = array<i32>} : memref<64x32xf32, #tpu.memory_space<vmem>>, vector<64x32xf32>,
    return
  }
  func.func @transform_0(%arg0: i32) -> (i32, i32) {
    %c0_i32 = arith.constant 0 : i32
    %c0_i32_0 = arith.constant 0 : i32
    return %arg0, %c0_i32 : i32, i32
  }
  func.func @transform_1(%arg0: i32) -> (i32, i32) {
    %c0_i32 = arith.constant 0 : i32
    %c0_i32_0 = arith.constant 0 : i32
    %c0_i32_1 = arith.constant 0 : i32
    return %c0_i32, %c0_i32_0 : i32, i32
  }
  func.func @transform_2(%arg0: i32) -> (i32, i32) {
    %c0_i32 = arith.constant 0 : i32
    %c0_i32_0 = arith.constant 0 : i32
    %c0_i32_1 = arith.constant 0 : i32
    return %c0_i32, %c0_i32_0 : i32, i32
  }
  func.func @transform_3(%arg0: i32) -> (i32, i32) {
    %c0_i32 = arith.constant 0 : i32
    %c0_i32_0 = arith.constant 0 : i32
    return %arg0, %c0_i32 : i32, i32
  }
}

module attributes {stable_mosaic.version = 11 : i64} {
  func.func @_frozen_bn_kernel(%arg0: i32, %arg1: memref<32x32xf32, #tpu.memory_space<vmem>>, %arg2: memref<1x32xf32, #tpu.memory_space<vmem>>, %arg3: memref<1x32xf32, #tpu.memory_space<vmem>>, %arg4: memref<32x32xf32, #tpu.memory_space<vmem>>) attributes {dimension_semantics = [#tpu.dimension_semantics<parallel>], iteration_bounds = array<i64: 1>, scalar_prefetch = 0 : i64, scratch_operands = 0 : i64, tpu.core_type = #tpu.core_type<tc>, window_params = [{transform_indices = @transform_0, window_bounds = array<i64: 32, 32>}, {pipeline_mode = #tpu.pipeline_mode<synchronous>, transform_indices = @transform_1, window_bounds = array<i64: 1, 32>}, {pipeline_mode = #tpu.pipeline_mode<synchronous>, transform_indices = @transform_2, window_bounds = array<i64: 1, 32>}, {transform_indices = @transform_3, window_bounds = array<i64: 32, 32>}]} {
    %c0 = arith.constant 0 : index
    %c0_0 = arith.constant 0 : index
    %0 = vector.load %arg1[%c0, %c0_0] : memref<32x32xf32, #tpu.memory_space<vmem>>, vector<32x32xf32>
    %c0_1 = arith.constant 0 : index
    %c0_2 = arith.constant 0 : index
    %1 = vector.load %arg2[%c0_1, %c0_2] : memref<1x32xf32, #tpu.memory_space<vmem>>, vector<1x32xf32>
    %2 = vector.broadcast %1 : vector<1x32xf32> to vector<32x32xf32>
    %3 = arith.mulf %0, %2 : vector<32x32xf32>
    %c0_3 = arith.constant 0 : index
    %c0_4 = arith.constant 0 : index
    %4 = vector.load %arg3[%c0_3, %c0_4] : memref<1x32xf32, #tpu.memory_space<vmem>>, vector<1x32xf32>
    %5 = vector.broadcast %4 : vector<1x32xf32> to vector<32x32xf32>
    %6 = arith.addf %3, %5 : vector<32x32xf32>
    %c0_5 = arith.constant 0 : index
    %c0_6 = arith.constant 0 : index
    %7 = vector.load %arg4[%c0_5, %c0_6] : memref<32x32xf32, #tpu.memory_space<vmem>>, vector<32x32xf32>
    tpu.vector_store %arg4[%c0_5, %c0_6], %6 {strides = array<i32>} : memref<32x32xf32, #tpu.memory_space<vmem>>, vector<32x32xf32>,
    return
  }
  func.func @transform_0(%arg0: i32) -> (i32, i32) {
    %c0_i32 = arith.constant 0 : i32
    %c0_i32_0 = arith.constant 0 : i32
    return %arg0, %c0_i32 : i32, i32
  }
  func.func @transform_1(%arg0: i32) -> (i32, i32) {
    %c0_i32 = arith.constant 0 : i32
    %c0_i32_0 = arith.constant 0 : i32
    %c0_i32_1 = arith.constant 0 : i32
    return %c0_i32, %c0_i32_0 : i32, i32
  }
  func.func @transform_2(%arg0: i32) -> (i32, i32) {
    %c0_i32 = arith.constant 0 : i32
    %c0_i32_0 = arith.constant 0 : i32
    %c0_i32_1 = arith.constant 0 : i32
    return %c0_i32, %c0_i32_0 : i32, i32
  }
  func.func @transform_3(%arg0: i32) -> (i32, i32) {
    %c0_i32 = arith.constant 0 : i32
    %c0_i32_0 = arith.constant 0 : i32
    return %arg0, %c0_i32 : i32, i32
  }
}

module attributes {stable_mosaic.version = 11 : i64} {
  func.func @_linear_kernel(%arg0: i32, %arg1: memref<96x32xf32, #tpu.memory_space<vmem>>, %arg2: memref<32x32xf32, #tpu.memory_space<vmem>>, %arg3: memref<1x32xf32, #tpu.memory_space<vmem>>, %arg4: memref<96x32xf32, #tpu.memory_space<vmem>>) attributes {dimension_semantics = [#tpu.dimension_semantics<parallel>], iteration_bounds = array<i64: 1>, scalar_prefetch = 0 : i64, scratch_operands = 0 : i64, tpu.core_type = #tpu.core_type<tc>, window_params = [{transform_indices = @transform_0, window_bounds = array<i64: 96, 32>}, {pipeline_mode = #tpu.pipeline_mode<synchronous>, transform_indices = @transform_1, window_bounds = array<i64: 32, 32>}, {pipeline_mode = #tpu.pipeline_mode<synchronous>, transform_indices = @transform_2, window_bounds = array<i64: 1, 32>}, {transform_indices = @transform_3, window_bounds = array<i64: 96, 32>}]} {
    %c0 = arith.constant 0 : index
    %c0_0 = arith.constant 0 : index
    %0 = vector.load %arg1[%c0, %c0_0] : memref<96x32xf32, #tpu.memory_space<vmem>>, vector<96x32xf32>
    %c0_1 = arith.constant 0 : index
    %c0_2 = arith.constant 0 : index
    %1 = vector.load %arg2[%c0_1, %c0_2] : memref<32x32xf32, #tpu.memory_space<vmem>>, vector<32x32xf32>
    %cst = arith.constant dense<0.000000e+00> : vector<96x32xf32>
    %2 = tpu.matmul %0, %1, %cst {dimension_numbers = #tpu.dot_dimension_numbers<[1], [0], [0], [1], [0, 0, 1, 1], [], []>} : vector<96x32xf32>, vector<32x32xf32>, vector<96x32xf32> -> vector<96x32xf32>
    %c0_3 = arith.constant 0 : index
    %c0_4 = arith.constant 0 : index
    %3 = vector.load %arg3[%c0_3, %c0_4] : memref<1x32xf32, #tpu.memory_space<vmem>>, vector<1x32xf32>
    %4 = vector.broadcast %3 : vector<1x32xf32> to vector<96x32xf32>
    %5 = arith.addf %2, %4 : vector<96x32xf32>
    %c0_5 = arith.constant 0 : index
    %c0_6 = arith.constant 0 : index
    %6 = vector.load %arg4[%c0_5, %c0_6] : memref<96x32xf32, #tpu.memory_space<vmem>>, vector<96x32xf32>
    tpu.vector_store %arg4[%c0_5, %c0_6], %5 {strides = array<i32>} : memref<96x32xf32, #tpu.memory_space<vmem>>, vector<96x32xf32>,
    return
  }
  func.func @transform_0(%arg0: i32) -> (i32, i32) {
    %c0_i32 = arith.constant 0 : i32
    %c0_i32_0 = arith.constant 0 : i32
    return %arg0, %c0_i32 : i32, i32
  }
  func.func @transform_1(%arg0: i32) -> (i32, i32) {
    %c0_i32 = arith.constant 0 : i32
    %c0_i32_0 = arith.constant 0 : i32
    %c0_i32_1 = arith.constant 0 : i32
    return %c0_i32, %c0_i32_0 : i32, i32
  }
  func.func @transform_2(%arg0: i32) -> (i32, i32) {
    %c0_i32 = arith.constant 0 : i32
    %c0_i32_0 = arith.constant 0 : i32
    %c0_i32_1 = arith.constant 0 : i32
    return %c0_i32, %c0_i32_0 : i32, i32
  }
  func.func @transform_3(%arg0: i32) -> (i32, i32) {
    %c0_i32 = arith.constant 0 : i32
    %c0_i32_0 = arith.constant 0 : i32
    return %arg0, %c0_i32 : i32, i32
  }
}

module attributes {stable_mosaic.version = 11 : i64} {
  func.func @_attention_kernel(%arg0: i32, %arg1: memref<1x64x16xf32, #tpu.memory_space<vmem>>, %arg2: memref<1x24x16xf32, #tpu.memory_space<vmem>>, %arg3: memref<1x24x16xf32, #tpu.memory_space<vmem>>, %arg4: memref<1x64x16xf32, #tpu.memory_space<vmem>>) attributes {dimension_semantics = [#tpu.dimension_semantics<parallel>], iteration_bounds = array<i64: 2>, scalar_prefetch = 0 : i64, scratch_operands = 0 : i64, tpu.core_type = #tpu.core_type<tc>, window_params = [{transform_indices = @transform_0, window_bounds = array<i64: 1, 64, 16>}, {transform_indices = @transform_1, window_bounds = array<i64: 1, 24, 16>}, {transform_indices = @transform_2, window_bounds = array<i64: 1, 24, 16>}, {transform_indices = @transform_3, window_bounds = array<i64: 1, 64, 16>}]} {
    %c0 = arith.constant 0 : index
    %c0_0 = arith.constant 0 : index
    %c0_1 = arith.constant 0 : index
    %0 = vector.load %arg1[%c0, %c0_0, %c0_1] : memref<1x64x16xf32, #tpu.memory_space<vmem>>, vector<1x64x16xf32>
    %c0_2 = arith.constant 0 : index
    %c0_3 = arith.constant 0 : index
    %c0_4 = arith.constant 0 : index
    %1 = vector.load %arg2[%c0_2, %c0_3, %c0_4] : memref<1x24x16xf32, #tpu.memory_space<vmem>>, vector<1x24x16xf32>
    %c0_5 = arith.constant 0 : index
    %c0_6 = arith.constant 0 : index
    %c0_7 = arith.constant 0 : index
    %2 = vector.load %arg3[%c0_5, %c0_6, %c0_7] : memref<1x24x16xf32, #tpu.memory_space<vmem>>, vector<1x24x16xf32>
    "tpu.trace_start"() <{level = 10 : i32, message = "bqd,bkd->bqk"}> : () -> ()
    %cst = arith.constant dense<0.000000e+00> : vector<1x64x24xf32>
    %3 = tpu.matmul %0, %1, %cst {dimension_numbers = #tpu.dot_dimension_numbers<[2], [2], [1], [1], [0, 0, 0, 1, 1, 1], [0], [0]>} : vector<1x64x16xf32>, vector<1x24x16xf32>, vector<1x64x24xf32> -> vector<1x64x24xf32>
    "tpu.trace_stop"() : () -> ()
    %cst_8 = arith.constant 0.176776692 : f32
    %4 = vector.broadcast %cst_8 : f32 to vector<1x64x24xf32>
    %5 = arith.mulf %3, %4 : vector<1x64x24xf32>
    %cst_9 = arith.constant dense<0xFF800000> : vector<1x64xf32>
    %6 = vector.multi_reduction <maximumf>, %5, %cst_9 [2] : vector<1x64x24xf32> to vector<1x64xf32>
    %7 = vector.shape_cast %6 : vector<1x64xf32> to vector<1x64x1xf32>
    %8 = vector.broadcast %7 : vector<1x64x1xf32> to vector<1x64x24xf32>
    %9 = arith.subf %5, %8 : vector<1x64x24xf32>
    %10 = math.exp %9 : vector<1x64x24xf32>
    %cst_10 = arith.constant dense<0.000000e+00> : vector<1x64xf32>
    %11 = vector.multi_reduction <add>, %10, %cst_10 [2] : vector<1x64x24xf32> to vector<1x64xf32>
    %12 = vector.shape_cast %11 : vector<1x64xf32> to vector<1x64x1xf32>
    %13 = vector.broadcast %12 : vector<1x64x1xf32> to vector<1x64x24xf32>
    %14 = arith.divf %10, %13 : vector<1x64x24xf32>
    "tpu.trace_start"() <{level = 10 : i32, message = "bqk,bkd->bqd"}> : () -> ()
    %cst_11 = arith.constant dense<0.000000e+00> : vector<1x64x16xf32>
    %15 = tpu.matmul %14, %2, %cst_11 {dimension_numbers = #tpu.dot_dimension_numbers<[2], [1], [1], [2], [0, 0, 0, 1, 1, 2], [0], [0]>} : vector<1x64x24xf32>, vector<1x24x16xf32>, vector<1x64x16xf32> -> vector<1x64x16xf32>
    "tpu.trace_stop"() : () -> ()
    %c0_12 = arith.constant 0 : index
    %c0_13 = arith.constant 0 : index
    %c0_14 = arith.constant 0 : index
    %16 = vector.load %arg4[%c0_12, %c0_13, %c0_14] : memref<1x64x16xf32, #tpu.memory_space<vmem>>, vector<1x64x16xf32>
    tpu.vector_store %arg4[%c0_12, %c0_13, %c0_14], %15 {strides = array<i32>} : memref<1x64x16xf32, #tpu.memory_space<vmem>>, vector<1x64x16xf32>,
    return
  }
  func.func @transform_0(%arg0: i32) -> (i32, i32, i32) {
    %c0_i32 = arith.constant 0 : i32
    %c0_i32_0 = arith.constant 0 : i32
    %c0_i32_1 = arith.constant 0 : i32
    return %arg0, %c0_i32, %c0_i32_0 : i32, i32, i32
  }
  func.func @transform_1(%arg0: i32) -> (i32, i32, i32) {
    %c0_i32 = arith.constant 0 : i32
    %c0_i32_0 = arith.constant 0 : i32
    %c0_i32_1 = arith.constant 0 : i32
    return %arg0, %c0_i32, %c0_i32_0 : i32, i32, i32
  }
  func.func @transform_2(%arg0: i32) -> (i32, i32, i32) {
    %c0_i32 = arith.constant 0 : i32
    %c0_i32_0 = arith.constant 0 : i32
    %c0_i32_1 = arith.constant 0 : i32
    return %arg0, %c0_i32, %c0_i32_0 : i32, i32, i32
  }
  func.func @transform_3(%arg0: i32) -> (i32, i32, i32) {
    %c0_i32 = arith.constant 0 : i32
    %c0_i32_0 = arith.constant 0 : i32
    %c0_i32_1 = arith.constant 0 : i32
    return %arg0, %c0_i32, %c0_i32_0 : i32, i32, i32
  }
}

module attributes {stable_mosaic.version = 11 : i64} {
  func.func @_attention_kernel(%arg0: i32, %arg1: memref<1x32x16xf32, #tpu.memory_space<vmem>>, %arg2: memref<1x8x16xf32, #tpu.memory_space<vmem>>, %arg3: memref<1x8x16xf32, #tpu.memory_space<vmem>>, %arg4: memref<1x32x16xf32, #tpu.memory_space<vmem>>) attributes {dimension_semantics = [#tpu.dimension_semantics<parallel>], iteration_bounds = array<i64: 2>, scalar_prefetch = 0 : i64, scratch_operands = 0 : i64, tpu.core_type = #tpu.core_type<tc>, window_params = [{transform_indices = @transform_0, window_bounds = array<i64: 1, 32, 16>}, {transform_indices = @transform_1, window_bounds = array<i64: 1, 8, 16>}, {transform_indices = @transform_2, window_bounds = array<i64: 1, 8, 16>}, {transform_indices = @transform_3, window_bounds = array<i64: 1, 32, 16>}]} {
    %c0 = arith.constant 0 : index
    %c0_0 = arith.constant 0 : index
    %c0_1 = arith.constant 0 : index
    %0 = vector.load %arg1[%c0, %c0_0, %c0_1] : memref<1x32x16xf32, #tpu.memory_space<vmem>>, vector<1x32x16xf32>
    %c0_2 = arith.constant 0 : index
    %c0_3 = arith.constant 0 : index
    %c0_4 = arith.constant 0 : index
    %1 = vector.load %arg2[%c0_2, %c0_3, %c0_4] : memref<1x8x16xf32, #tpu.memory_space<vmem>>, vector<1x8x16xf32>
    %c0_5 = arith.constant 0 : index
    %c0_6 = arith.constant 0 : index
    %c0_7 = arith.constant 0 : index
    %2 = vector.load %arg3[%c0_5, %c0_6, %c0_7] : memref<1x8x16xf32, #tpu.memory_space<vmem>>, vector<1x8x16xf32>
    "tpu.trace_start"() <{level = 10 : i32, message = "bqd,bkd->bqk"}> : () -> ()
    %cst = arith.constant dense<0.000000e+00> : vector<1x32x8xf32>
    %3 = tpu.matmul %0, %1, %cst {dimension_numbers = #tpu.dot_dimension_numbers<[2], [2], [1], [1], [0, 0, 0, 1, 1, 1], [0], [0]>} : vector<1x32x16xf32>, vector<1x8x16xf32>, vector<1x32x8xf32> -> vector<1x32x8xf32>
    "tpu.trace_stop"() : () -> ()
    %cst_8 = arith.constant 0.176776692 : f32
    %4 = vector.broadcast %cst_8 : f32 to vector<1x32x8xf32>
    %5 = arith.mulf %3, %4 : vector<1x32x8xf32>
    %cst_9 = arith.constant dense<0xFF800000> : vector<1x32xf32>
    %6 = vector.multi_reduction <maximumf>, %5, %cst_9 [2] : vector<1x32x8xf32> to vector<1x32xf32>
    %7 = vector.shape_cast %6 : vector<1x32xf32> to vector<1x32x1xf32>
    %8 = vector.broadcast %7 : vector<1x32x1xf32> to vector<1x32x8xf32>
    %9 = arith.subf %5, %8 : vector<1x32x8xf32>
    %10 = math.exp %9 : vector<1x32x8xf32>
    %cst_10 = arith.constant dense<0.000000e+00> : vector<1x32xf32>
    %11 = vector.multi_reduction <add>, %10, %cst_10 [2] : vector<1x32x8xf32> to vector<1x32xf32>
    %12 = vector.shape_cast %11 : vector<1x32xf32> to vector<1x32x1xf32>
    %13 = vector.broadcast %12 : vector<1x32x1xf32> to vector<1x32x8xf32>
    %14 = arith.divf %10, %13 : vector<1x32x8xf32>
    "tpu.trace_start"() <{level = 10 : i32, message = "bqk,bkd->bqd"}> : () -> ()
    %cst_11 = arith.constant dense<0.000000e+00> : vector<1x32x16xf32>
    %15 = tpu.matmul %14, %2, %cst_11 {dimension_numbers = #tpu.dot_dimension_numbers<[2], [1], [1], [2], [0, 0, 0, 1, 1, 2], [0], [0]>} : vector<1x32x8xf32>, vector<1x8x16xf32>, vector<1x32x16xf32> -> vector<1x32x16xf32>
    "tpu.trace_stop"() : () -> ()
    %c0_12 = arith.constant 0 : index
    %c0_13 = arith.constant 0 : index
    %c0_14 = arith.constant 0 : index
    %16 = vector.load %arg4[%c0_12, %c0_13, %c0_14] : memref<1x32x16xf32, #tpu.memory_space<vmem>>, vector<1x32x16xf32>
    tpu.vector_store %arg4[%c0_12, %c0_13, %c0_14], %15 {strides = array<i32>} : memref<1x32x16xf32, #tpu.memory_space<vmem>>, vector<1x32x16xf32>,
    return
  }
  func.func @transform_0(%arg0: i32) -> (i32, i32, i32) {
    %c0_i32 = arith.constant 0 : i32
    %c0_i32_0 = arith.constant 0 : i32
    %c0_i32_1 = arith.constant 0 : i32
    return %arg0, %c0_i32, %c0_i32_0 : i32, i32, i32
  }
  func.func @transform_1(%arg0: i32) -> (i32, i32, i32) {
    %c0_i32 = arith.constant 0 : i32
    %c0_i32_0 = arith.constant 0 : i32
    %c0_i32_1 = arith.constant 0 : i32
    return %arg0, %c0_i32, %c0_i32_0 : i32, i32, i32
  }
  func.func @transform_2(%arg0: i32) -> (i32, i32, i32) {
    %c0_i32 = arith.constant 0 : i32
    %c0_i32_0 = arith.constant 0 : i32
    %c0_i32_1 = arith.constant 0 : i32
    return %arg0, %c0_i32, %c0_i32_0 : i32, i32, i32
  }
  func.func @transform_3(%arg0: i32) -> (i32, i32, i32) {
    %c0_i32 = arith.constant 0 : i32
    %c0_i32_0 = arith.constant 0 : i32
    %c0_i32_1 = arith.constant 0 : i32
    return %arg0, %c0_i32, %c0_i32_0 : i32, i32, i32
  }
}

module attributes {stable_mosaic.version = 11 : i64} {
  func.func @_linear_kernel(%arg0: i32, %arg1: memref<96x32xf32, #tpu.memory_space<vmem>>, %arg2: memref<32x64xf32, #tpu.memory_space<vmem>>, %arg3: memref<1x64xf32, #tpu.memory_space<vmem>>, %arg4: memref<96x64xf32, #tpu.memory_space<vmem>>) attributes {dimension_semantics = [#tpu.dimension_semantics<parallel>], iteration_bounds = array<i64: 1>, scalar_prefetch = 0 : i64, scratch_operands = 0 : i64, tpu.core_type = #tpu.core_type<tc>, window_params = [{transform_indices = @transform_0, window_bounds = array<i64: 96, 32>}, {pipeline_mode = #tpu.pipeline_mode<synchronous>, transform_indices = @transform_1, window_bounds = array<i64: 32, 64>}, {pipeline_mode = #tpu.pipeline_mode<synchronous>, transform_indices = @transform_2, window_bounds = array<i64: 1, 64>}, {transform_indices = @transform_3, window_bounds = array<i64: 96, 64>}]} {
    %c0 = arith.constant 0 : index
    %c0_0 = arith.constant 0 : index
    %0 = vector.load %arg1[%c0, %c0_0] : memref<96x32xf32, #tpu.memory_space<vmem>>, vector<96x32xf32>
    %c0_1 = arith.constant 0 : index
    %c0_2 = arith.constant 0 : index
    %1 = vector.load %arg2[%c0_1, %c0_2] : memref<32x64xf32, #tpu.memory_space<vmem>>, vector<32x64xf32>
    %cst = arith.constant dense<0.000000e+00> : vector<96x64xf32>
    %2 = tpu.matmul %0, %1, %cst {dimension_numbers = #tpu.dot_dimension_numbers<[1], [0], [0], [1], [0, 0, 1, 1], [], []>} : vector<96x32xf32>, vector<32x64xf32>, vector<96x64xf32> -> vector<96x64xf32>
    %c0_3 = arith.constant 0 : index
    %c0_4 = arith.constant 0 : index
    %3 = vector.load %arg3[%c0_3, %c0_4] : memref<1x64xf32, #tpu.memory_space<vmem>>, vector<1x64xf32>
    %4 = vector.broadcast %3 : vector<1x64xf32> to vector<96x64xf32>
    %5 = arith.addf %2, %4 : vector<96x64xf32>
    %c0_5 = arith.constant 0 : index
    %c0_6 = arith.constant 0 : index
    %6 = vector.load %arg4[%c0_5, %c0_6] : memref<96x64xf32, #tpu.memory_space<vmem>>, vector<96x64xf32>
    tpu.vector_store %arg4[%c0_5, %c0_6], %5 {strides = array<i32>} : memref<96x64xf32, #tpu.memory_space<vmem>>, vector<96x64xf32>,
    return
  }
  func.func @transform_0(%arg0: i32) -> (i32, i32) {
    %c0_i32 = arith.constant 0 : i32
    %c0_i32_0 = arith.constant 0 : i32
    return %arg0, %c0_i32 : i32, i32
  }
  func.func @transform_1(%arg0: i32) -> (i32, i32) {
    %c0_i32 = arith.constant 0 : i32
    %c0_i32_0 = arith.constant 0 : i32
    %c0_i32_1 = arith.constant 0 : i32
    return %c0_i32, %c0_i32_0 : i32, i32
  }
  func.func @transform_2(%arg0: i32) -> (i32, i32) {
    %c0_i32 = arith.constant 0 : i32
    %c0_i32_0 = arith.constant 0 : i32
    %c0_i32_1 = arith.constant 0 : i32
    return %c0_i32, %c0_i32_0 : i32, i32
  }
  func.func @transform_3(%arg0: i32) -> (i32, i32) {
    %c0_i32 = arith.constant 0 : i32
    %c0_i32_0 = arith.constant 0 : i32
    return %arg0, %c0_i32 : i32, i32
  }
}

module attributes {stable_mosaic.version = 11 : i64} {
  func.func @_linear_kernel(%arg0: i32, %arg1: memref<96x64xf32, #tpu.memory_space<vmem>>, %arg2: memref<64x32xf32, #tpu.memory_space<vmem>>, %arg3: memref<1x32xf32, #tpu.memory_space<vmem>>, %arg4: memref<96x32xf32, #tpu.memory_space<vmem>>) attributes {dimension_semantics = [#tpu.dimension_semantics<parallel>], iteration_bounds = array<i64: 1>, scalar_prefetch = 0 : i64, scratch_operands = 0 : i64, tpu.core_type = #tpu.core_type<tc>, window_params = [{transform_indices = @transform_0, window_bounds = array<i64: 96, 64>}, {pipeline_mode = #tpu.pipeline_mode<synchronous>, transform_indices = @transform_1, window_bounds = array<i64: 64, 32>}, {pipeline_mode = #tpu.pipeline_mode<synchronous>, transform_indices = @transform_2, window_bounds = array<i64: 1, 32>}, {transform_indices = @transform_3, window_bounds = array<i64: 96, 32>}]} {
    %c0 = arith.constant 0 : index
    %c0_0 = arith.constant 0 : index
    %0 = vector.load %arg1[%c0, %c0_0] : memref<96x64xf32, #tpu.memory_space<vmem>>, vector<96x64xf32>
    %c0_1 = arith.constant 0 : index
    %c0_2 = arith.constant 0 : index
    %1 = vector.load %arg2[%c0_1, %c0_2] : memref<64x32xf32, #tpu.memory_space<vmem>>, vector<64x32xf32>
    %cst = arith.constant dense<0.000000e+00> : vector<96x32xf32>
    %2 = tpu.matmul %0, %1, %cst {dimension_numbers = #tpu.dot_dimension_numbers<[1], [0], [0], [1], [0, 0, 1, 1], [], []>} : vector<96x64xf32>, vector<64x32xf32>, vector<96x32xf32> -> vector<96x32xf32>
    %c0_3 = arith.constant 0 : index
    %c0_4 = arith.constant 0 : index
    %3 = vector.load %arg3[%c0_3, %c0_4] : memref<1x32xf32, #tpu.memory_space<vmem>>, vector<1x32xf32>
    %4 = vector.broadcast %3 : vector<1x32xf32> to vector<96x32xf32>
    %5 = arith.addf %2, %4 : vector<96x32xf32>
    %c0_5 = arith.constant 0 : index
    %c0_6 = arith.constant 0 : index
    %6 = vector.load %arg4[%c0_5, %c0_6] : memref<96x32xf32, #tpu.memory_space<vmem>>, vector<96x32xf32>
    tpu.vector_store %arg4[%c0_5, %c0_6], %5 {strides = array<i32>} : memref<96x32xf32, #tpu.memory_space<vmem>>, vector<96x32xf32>,
    return
  }
  func.func @transform_0(%arg0: i32) -> (i32, i32) {
    %c0_i32 = arith.constant 0 : i32
    %c0_i32_0 = arith.constant 0 : i32
    return %arg0, %c0_i32 : i32, i32
  }
  func.func @transform_1(%arg0: i32) -> (i32, i32) {
    %c0_i32 = arith.constant 0 : i32
    %c0_i32_0 = arith.constant 0 : i32
    %c0_i32_1 = arith.constant 0 : i32
    return %c0_i32, %c0_i32_0 : i32, i32
  }
  func.func @transform_2(%arg0: i32) -> (i32, i32) {
    %c0_i32 = arith.constant 0 : i32
    %c0_i32_0 = arith.constant 0 : i32
    %c0_i32_1 = arith.constant 0 : i32
    return %c0_i32, %c0_i32_0 : i32, i32
  }
  func.func @transform_3(%arg0: i32) -> (i32, i32) {
    %c0_i32 = arith.constant 0 : i32
    %c0_i32_0 = arith.constant 0 : i32
    return %arg0, %c0_i32 : i32, i32
  }
}

</mosaic_0001>

<bundles_post_ra>
// kernel: _lambda_.50
= control target key start
LH: loop header
LB: loop body
LE: loop exit
PB: predicated region body
PF: predicated region fallthrough
CT: control target
= control target key end

     0   :  { %vm35_vm0 = vcmask 392192   ;;  %vm165_vm1 = vcmask 261120   ;;  %s348_s1 = inlined_call_operand.vmem [shape: f32[48,32], index: 1, kind: input, shape index: {}]   ;;  %s349_s0 = inlined_call_operand.vmem [shape: f32[64,48], index: 0, kind: input, shape index: {}]   ;;  %s350_s2 = inlined_call_operand.vmem [shape: f32[1,32], index: 2, kind: input, shape index: {}]   ;;  %s351_s3 = inlined_call_operand.vmem [shape: f32[64,32], index: 3, kind: output, shape index: {}]  }
   0x1   :  { %v22_v0 = vld [vmem:[%s348_s1] sm:$0xff]  ;;  %v23_v1 = vld [vmem:[%s348_s1 + $0x8] sm:$0xff]  ;;  %v24_v2 = vld [vmem:[%s348_s1 + $0x10] sm:$0xff] }
   0x2   :  { %v225_v3 = vpack.c.bf16 %v23_v1, %v22_v0  ;;  %v25_v4 = vld [vmem:[%s348_s1 + $0x18] sm:$0xff]  ;;  %v26_v6 = vld [vmem:[%s348_s1 + $0x20] sm:$0xff]  ;;  %v27_v7 = vld [vmem:[%s348_s1 + $0x28] sm:$0xff] }
   0x3   :  { %v229_v5 = vpack.c.bf16 %v25_v4, %v24_v2  ;;  %v14_v8 = vld [vmem:[%s349_s0] sm:$0xff]  ;;  %v233_v10 = vpack.c.bf16 %v27_v7, %v26_v6  ;;  %v15_v11 = vld [vmem:[%s349_s0 + $0x8] sm:$0xff]  ;;  %v16_v13 = vld [vmem:[%s349_s0 + $0x10] sm:$0xff] }
   0x4   :  { %226 = vmatprep.subr.bf16.mxu0 %v225_v3  ;;  %237 = vmatprep.subr.bf16.mxu1 %v225_v3  ;;  %v18_v9 = vld [vmem:[%s349_s0 + $0x20] sm:$0xff]  ;;  %v19_v12 = vld [vmem:[%s349_s0 + $0x28] sm:$0xff]  ;;  %v20_v14 = vld [vmem:[%s349_s0 + $0x30] sm:$0xff] }
   0x5   :  { %228 = vmatpush3.bf16.msra.mxu0 %v225_v3  ;;  %240 = vmatpush3.bf16.msra.mxu1 %v225_v3  ;;  %v17_v15 = vld [vmem:[%s349_s0 + $0x18] sm:$0xff]  ;;  %v178_v17 = vld [vmem:[%s350_s2] ss:$0 sm:$0xff] }
   0x6   :  { %230 = vmatprep.subr.bf16.mxu0 %v229_v5  ;;  %238 = vmatprep.subr.bf16.mxu1 %v229_v5  ;;  %v21_v16 = vld [vmem:[%s349_s0 + $0x38] sm:$0xff] }
   0x7   :  { %213 = vmatprep.mubr.msk.f32.mxu0 %vm35_vm0, %v14_v8  ;;  %219 = vmatprep.mubr.msk.f32.mxu1 %vm35_vm0, %v18_v9 }
   0x9   :  { %232 = vmatpush3.bf16.msra.mxu0 %v229_v5  ;;  %241 = vmatpush3.bf16.msra.mxu1 %v229_v5 }
   0xa   :  { %234 = vmatprep.subr.bf16.mxu0 %v233_v10  ;;  %239 = vmatprep.subr.bf16.mxu1 %v233_v10 }
   0xd   :  { %236 = vmatpush3.bf16.msra.mxu0 %v233_v10  ;;  %242 = vmatpush3.bf16.msra.mxu1 %v233_v10 }
  0x10   :  { %214 = vmatmul.mubr.msk.f32.vlgmr.msra.gmra.mrb[0].mxu0 %vm35_vm0, %v15_v11  ;;  %220 = vmatmul.mubr.msk.f32.vlgmr.msra.gmra.mrb[0].mxu1 %vm35_vm0, %v19_v12 }
  0x11   :  { %216 = vmatprep.mubr.msk.f32.mxu0 %vm35_vm0, %v16_v13  ;;  %222 = vmatprep.mubr.msk.f32.mxu1 %vm35_vm0, %v20_v14 }
  0x14   :  { %217 = vmatmul.mubr.msk.f32.gmra.mrb[2].mxu0 %vm35_vm0, %v17_v15  ;;  %223 = vmatmul.mubr.msk.f32.gmra.mrb[2].mxu1 %vm35_vm0, %v21_v16 }
  0xe3   :  { %v215_v18 = vpop.f32.mrb[0].mxu0  ;;  %v221_v19 = vpop.f32.mrb[0].mxu1 }
  0xe4   :  { %v132_v20 = vadd.f32 %v215_v18, %v178_v17  ;;  %v152_v21 = vadd.f32 %v221_v19, %v178_v17  ;;  %v126_v22 = vpop.f32.mrb[1].mxu0  ;;  %v146_v23 = vpop.f32.mrb[1].mxu1 }
  0xe5   :  { %v127_v24 = vadd.f32 %v178_v17, %v126_v22  ;;  %v147_v25 = vadd.f32 %v178_v17, %v146_v23 }
  0xe6   :  { %167 = vst.msk [vmem:[%s351_s3 + $0x8] sm:$0xff] %vm165_vm1, %v132_v20  ;;  %171 = vst.msk [vmem:[%s351_s3 + $0x28] sm:$0xff] %vm165_vm1, %v152_v21 }
  0xe7   :  { %166 = vst.msk [vmem:[%s351_s3] sm:$0xff] %vm165_vm1, %v127_v24  ;;  %170 = vst.msk [vmem:[%s351_s3 + $0x20] sm:$0xff] %vm165_vm1, %v147_v25  ;;  %v218_v26 = vpop.f32.mrb[2].mxu0  ;;  %v224_v27 = vpop.f32.mrb[2].mxu1 }
  0xe8   :  { %v142_v28 = vadd.f32 %v218_v26, %v178_v17  ;;  %v162_v29 = vadd.f32 %v224_v27, %v178_v17  ;;  %v136_v30 = vpop.f32.mrb[3].mxu0  ;;  %v156_v31 = vpop.f32.mrb[3].mxu1 }
  0xe9   :  { %v137_v32 = vadd.f32 %v178_v17, %v136_v30  ;;  %v157_v33 = vadd.f32 %v178_v17, %v156_v31 }
  0xea   :  { %169 = vst.msk [vmem:[%s351_s3 + $0x18] sm:$0xff] %vm165_vm1, %v142_v28  ;;  %173 = vst.msk [vmem:[%s351_s3 + $0x38] sm:$0xff] %vm165_vm1, %v162_v29 }
  0xeb   :  { %168 = vst.msk [vmem:[%s351_s3 + $0x10] sm:$0xff] %vm165_vm1, %v137_v32  ;;  %172 = vst.msk [vmem:[%s351_s3 + $0x30] sm:$0xff] %vm165_vm1, %v157_v33 }

// kernel: _lambda_.48
= control target key start
LH: loop header
LB: loop body
LE: loop exit
PB: predicated region body
PF: predicated region fallthrough
CT: control target
= control target key end

     0   :  { %vm31_vm0 = vcmask 392192   ;;  %vm129_vm1 = vcmask 261120   ;;  %s258_s1 = inlined_call_operand.vmem [shape: f32[48,32], index: 1, kind: input, shape index: {}]   ;;  %s259_s0 = inlined_call_operand.vmem [shape: f32[32,48], index: 0, kind: input, shape index: {}]   ;;  %s260_s2 = inlined_call_operand.vmem [shape: f32[1,32], index: 2, kind: input, shape index: {}]   ;;  %s261_s3 = inlined_call_operand.vmem [shape: f32[32,32], index: 3, kind: output, shape index: {}]  }
   0x1   :  { %v18_v0 = vld [vmem:[%s258_s1] sm:$0xff]  ;;  %v19_v1 = vld [vmem:[%s258_s1 + $0x8] sm:$0xff]  ;;  %v20_v2 = vld [vmem:[%s258_s1 + $0x10] sm:$0xff] }
   0x2   :  { %v171_v3 = vpack.c.bf16 %v19_v1, %v18_v0  ;;  %v21_v4 = vld [vmem:[%s258_s1 + $0x18] sm:$0xff]  ;;  %v22_v6 = vld [vmem:[%s258_s1 + $0x20] sm:$0xff]  ;;  %v23_v7 = vld [vmem:[%s258_s1 + $0x28] sm:$0xff] }
   0x3   :  { %v175_v5 = vpack.c.bf16 %v21_v4, %v20_v2  ;;  %v14_v8 = vld [vmem:[%s259_s0] sm:$0xff]  ;;  %v16_v9 = vld [vmem:[%s259_s0 + $0x10] sm:$0xff]  ;;  %v179_v10 = vpack.c.bf16 %v23_v7, %v22_v6  ;;  %v15_v11 = vld [vmem:[%s259_s0 + $0x8] sm:$0xff] }
   0x4   :  { %172 = vmatprep.subr.bf16.mxu0 %v171_v3  ;;  %183 = vmatprep.subr.bf16.mxu1 %v171_v3  ;;  %v17_v12 = vld [vmem:[%s259_s0 + $0x18] sm:$0xff]  ;;  %v138_v13 = vld [vmem:[%s260_s2] ss:$0 sm:$0xff] }
   0x5   :  { %174 = vmatpush3.bf16.msra.mxu0 %v171_v3  ;;  %186 = vmatpush3.bf16.msra.mxu1 %v171_v3 }
   0x6   :  { %176 = vmatprep.subr.bf16.mxu0 %v175_v5  ;;  %184 = vmatprep.subr.bf16.mxu1 %v175_v5 }
   0x7   :  { %165 = vmatprep.mubr.msk.f32.mxu0 %vm31_vm0, %v14_v8  ;;  %168 = vmatprep.mubr.msk.f32.mxu1 %vm31_vm0, %v16_v9 }
   0x9   :  { %178 = vmatpush3.bf16.msra.mxu0 %v175_v5  ;;  %187 = vmatpush3.bf16.msra.mxu1 %v175_v5 }
   0xa   :  { %180 = vmatprep.subr.bf16.mxu0 %v179_v10  ;;  %185 = vmatprep.subr.bf16.mxu1 %v179_v10 }
   0xd   :  { %182 = vmatpush3.bf16.msra.mxu0 %v179_v10  ;;  %188 = vmatpush3.bf16.msra.mxu1 %v179_v10 }
  0x10   :  { %166 = vmatmul.mubr.msk.f32.vlgmr.msra.gmra.mrb[0].mxu0 %vm31_vm0, %v15_v11  ;;  %169 = vmatmul.mubr.msk.f32.vlgmr.msra.gmra.mrb[0].mxu1 %vm31_vm0, %v17_v12 }
  0xe3   :  { %v167_v14 = vpop.f32.mrb[0].mxu0  ;;  %v170_v15 = vpop.f32.mrb[0].mxu1 }
  0xe4   :  { %v116_v16 = vadd.f32 %v167_v14, %v138_v13  ;;  %v126_v17 = vadd.f32 %v170_v15, %v138_v13  ;;  %v110_v18 = vpop.f32.mrb[1].mxu0  ;;  %v120_v19 = vpop.f32.mrb[1].mxu1 }
  0xe5   :  { %v111_v20 = vadd.f32 %v138_v13, %v110_v18  ;;  %v121_v21 = vadd.f32 %v138_v13, %v120_v19 }
  0xe6   :  { %131 = vst.msk [vmem:[%s261_s3 + $0x8] sm:$0xff] %vm129_vm1, %v116_v16  ;;  %133 = vst.msk [vmem:[%s261_s3 + $0x18] sm:$0xff] %vm129_vm1, %v126_v17 }
  0xe7   :  { %130 = vst.msk [vmem:[%s261_s3] sm:$0xff] %vm129_vm1, %v111_v20  ;;  %132 = vst.msk [vmem:[%s261_s3 + $0x10] sm:$0xff] %vm129_vm1, %v121_v21 }

// kernel: _lambda_.51
= control target key start
LH: loop header
LB: loop body
LE: loop exit
PB: predicated region body
PF: predicated region fallthrough
CT: control target
= control target key end

     0   :  { %vm22_vm0 = vcmask 261120   ;;  %s326_s0 = inlined_call_operand.vmem [shape: f32[64,32], index: 0, kind: input, shape index: {}]   ;;  %s327_s1 = inlined_call_operand.vmem [shape: f32[1,32], index: 1, kind: input, shape index: {}]   ;;  %s328_s2 = inlined_call_operand.vmem [shape: f32[1,32], index: 2, kind: input, shape index: {}]   ;;  %s329_s3 = inlined_call_operand.vmem [shape: f32[64,32], index: 3, kind: output, shape index: {}]  }
   0x1   :  { %v14_v0 = vld [vmem:[%s326_s0] sm:$0xff]  ;;  %v16_v1 = vld [vmem:[%s326_s0 + $0x10] sm:$0xff]  ;;  %v15_v2 = vld [vmem:[%s326_s0 + $0x8] sm:$0xff] }
   0x2   :  { %v23_v3 = vsel %vm22_vm0, %v14_v0, 0.0  ;;  %v29_v4 = vsel %vm22_vm0, %v16_v1, 0.0  ;;  %v17_v5 = vld [vmem:[%s326_s0 + $0x18] sm:$0xff]  ;;  %v26_v6 = vsel %vm22_vm0, %v15_v2, 0.0  ;;  %v18_v8 = vld [vmem:[%s326_s0 + $0x20] sm:$0xff]  ;;  %v19_v9 = vld [vmem:[%s326_s0 + $0x28] sm:$0xff] }
   0x3   :  { %24 = vadd.xlane.f32.xlu0 %v23_v3  ;;  %30 = vadd.xlane.f32.xlu1 %v29_v4  ;;  %v32_v7 = vsel %vm22_vm0, %v17_v5, 0.0  ;;  %v35_v10 = vsel %vm22_vm0, %v18_v8, 0.0  ;;  %v38_v11 = vsel %vm22_vm0, %v19_v9, 0.0  ;;  %v20_v12 = vld [vmem:[%s326_s0 + $0x30] sm:$0xff]  ;;  %v21_v13 = vld [vmem:[%s326_s0 + $0x38] sm:$0xff] }
   0x4   :  { %v41_v14 = vsel %vm22_vm0, %v20_v12, 0.0  ;;  %v44_v15 = vsel %vm22_vm0, %v21_v13, 0.0 }
   0x7   :  { %27 = vadd.xlane.f32.xlu0 %v26_v6  ;;  %33 = vadd.xlane.f32.xlu1 %v32_v7 }
   0xb   :  { %36 = vadd.xlane.f32.xlu0 %v35_v10  ;;  %39 = vadd.xlane.f32.xlu1 %v38_v11 }
   0xf   :  { %42 = vadd.xlane.f32.xlu0 %v41_v14  ;;  %45 = vadd.xlane.f32.xlu1 %v44_v15 }
  0x90   :  { %v25_v16 = vpop.xlane.xlu0 %24  ;;  %v31_v17 = vpop.xlane.xlu1 %30 }
  0x91   :  { %v48_v18 = vmul.f32 0.03125, %v25_v16  ;;  %v50_v19 = vmul.f32 0.03125, %v31_v17  ;;  %v171_v17 = vld [vmem:[%s328_s2] ss:$0 sm:$0xff] }
  0x93   :  { %v240_v20 = vsub.f32 %v14_v0, %v48_v18  ;;  %v242_v21 = vsub.f32 %v16_v1, %v50_v19 }
  0x94   :  { %v28_v22 = vpop.xlane.xlu0 %27  ;;  %v34_v23 = vpop.xlane.xlu1 %33 }
  0x95   :  { %v49_v24 = vmul.f32 0.03125, %v28_v22  ;;  %v51_v25 = vmul.f32 0.03125, %v34_v23  ;;  %v64_v26 = vmul.f32 %v240_v20, %v240_v20  ;;  %v66_v27 = vmul.f32 %v242_v21, %v242_v21 }
  0x97   :  { %v248_v28 = vsub.f32 %v15_v2, %v49_v24  ;;  %v250_v29 = vsub.f32 %v17_v5, %v51_v25  ;;  %v72_v30 = vsel %vm22_vm0, %v64_v26, 0.0  ;;  %v78_v33 = vsel %vm22_vm0, %v66_v27, 0.0 }
  0x98   :  { %73 = vadd.xlane.f32.xlu0 %v72_v30  ;;  %v37_v31 = vpop.xlane.xlu0 %36  ;;  %v40_v32 = vpop.xlane.xlu1 %39 }
  0x99   :  { %v52_v34 = vmul.f32 0.03125, %v37_v31  ;;  %v53_v35 = vmul.f32 0.03125, %v40_v32  ;;  %v65_v36 = vmul.f32 %v248_v28, %v248_v28  ;;  %v67_v37 = vmul.f32 %v250_v29, %v250_v29 }
  0x9b   :  { %v258_v38 = vsub.f32 %v18_v8, %v52_v34  ;;  %v260_v39 = vsub.f32 %v19_v9, %v53_v35  ;;  %v75_v40 = vsel %vm22_vm0, %v65_v36, 0.0  ;;  %v81_v43 = vsel %vm22_vm0, %v67_v37, 0.0 }
  0x9c   :  { %79 = vadd.xlane.f32.xlu0 %v78_v33  ;;  %76 = vadd.xlane.f32.xlu1 %v75_v40  ;;  %v43_v41 = vpop.xlane.xlu0 %42  ;;  %v46_v42 = vpop.xlane.xlu1 %45 }
  0x9d   :  { %v54_v44 = vmul.f32 0.03125, %v43_v41  ;;  %v55_v45 = vmul.f32 0.03125, %v46_v42  ;;  %v68_v46 = vmul.f32 %v258_v38, %v258_v38  ;;  %v69_v47 = vmul.f32 %v260_v39, %v260_v39 }
  0x9f   :  { %v268_v48 = vsub.f32 %v20_v12, %v54_v44  ;;  %v270_v49 = vsub.f32 %v21_v13, %v55_v45  ;;  %v84_v50 = vsel %vm22_vm0, %v68_v46, 0.0  ;;  %v87_v51 = vsel %vm22_vm0, %v69_v47, 0.0  ;;  %v170_v12 = vld [vmem:[%s327_s1] ss:$0 sm:$0xff] }
  0xa0   :  { %82 = vadd.xlane.f32.xlu1 %v81_v43  ;;  %85 = vadd.xlane.f32.xlu0 %v84_v50 }
  0xa1   :  { %v70_v52 = vmul.f32 %v268_v48, %v268_v48  ;;  %v71_v53 = vmul.f32 %v270_v49, %v270_v49 }
  0xa3   :  { %v90_v54 = vsel %vm22_vm0, %v70_v52, 0.0  ;;  %v93_v55 = vsel %vm22_vm0, %v71_v53, 0.0 }
  0xa4   :  { %88 = vadd.xlane.f32.xlu1 %v87_v51  ;;  %91 = vadd.xlane.f32.xlu0 %v90_v54 }
  0xa8   :  { %94 = vadd.xlane.f32.xlu1 %v93_v55 }
 0x125   :  { %v74_v56 = vpop.xlane.xlu0 %73 }
 0x126   :  { %v96_v57 = vmul.f32 0.03125, %v74_v56 }
 0x128   :  { %v104_v58 = vadd.f32 1e-05, %v96_v57 }
 0x129   :  { %v77_v59 = vpop.xlane.xlu1 %76  ;;  %v80_v60 = vpop.xlane.xlu0 %79 }
 0x12a   :  { %172 = vrsqrt.f32 %v104_v58  ;;  %v97_v61 = vmul.f32 0.03125, %v77_v59  ;;  %v98_v62 = vmul.f32 0.03125, %v80_v60 }
 0x12c   :  { %v105_v63 = vadd.f32 1e-05, %v97_v61  ;;  %v106_v0 = vadd.f32 1e-05, %v98_v62 }
 0x12d   :  { %v83_v1 = vpop.xlane.xlu1 %82  ;;  %v86_v2 = vpop.xlane.xlu0 %85 }
 0x12e   :  { %174 = vrsqrt.f32 %v105_v63  ;;  %v99_v3 = vmul.f32 0.03125, %v83_v1  ;;  %v100_v4 = vmul.f32 0.03125, %v86_v2 }
 0x12f   :  { %176 = vrsqrt.f32 %v106_v0 }
 0x130   :  { %v107_v5 = vadd.f32 1e-05, %v99_v3  ;;  %v108_v6 = vadd.f32 1e-05, %v100_v4 }
 0x131   :  { %v89_v7 = vpop.xlane.xlu1 %88  ;;  %v92_v8 = vpop.xlane.xlu0 %91 }
 0x132   :  { %178 = vrsqrt.f32 %v107_v5  ;;  %v101_v9 = vmul.f32 0.03125, %v89_v7  ;;  %v102_v10 = vmul.f32 0.03125, %v92_v8 }
 0x133   :  { %180 = vrsqrt.f32 %v108_v6 }
 0x134   :  { %v173_v11 = vpop.eup %172  ;;  %v109_v13 = vadd.f32 1e-05, %v101_v9  ;;  %v110_v14 = vadd.f32 1e-05, %v102_v10 }
 0x135   :  { %v120_v15 = vmul.f32 %v173_v11, %v240_v20  ;;  %v95_v16 = vpop.xlane.xlu1 %94 }
 0x136   :  { %182 = vrsqrt.f32 %v109_v13  ;;  %v103_v18 = vmul.f32 0.03125, %v95_v16 }
 0x137   :  { %v135_v19 = vmul.f32 %v170_v12, %v120_v15  ;;  %184 = vrsqrt.f32 %v110_v14 }
 0x138   :  { %v175_v22 = vpop.eup %174  ;;  %v111_v23 = vadd.f32 1e-05, %v103_v18 }
 0x139   :  { %v177_v24 = vpop.eup %176  ;;  %v150_v25 = vadd.f32 %v171_v17, %v135_v19  ;;  %v121_v26 = vmul.f32 %v175_v22, %v248_v28 }
 0x13a   :  { %v122_v27 = vmul.f32 %v177_v24, %v242_v21  ;;  %186 = vrsqrt.f32 %v111_v23 }
 0x13b   :  { %158 = vst.msk [vmem:[%s329_s3] sm:$0xff] %vm22_vm0, %v150_v25  ;;  %v136_v20 = vmul.f32 %v170_v12, %v121_v26 }
 0x13c   :  { %v179_v30 = vpop.eup %178  ;;  %v137_v31 = vmul.f32 %v170_v12, %v122_v27 }
 0x13d   :  { %v181_v32 = vpop.eup %180  ;;  %v151_v33 = vadd.f32 %v171_v17, %v136_v20  ;;  %v123_v34 = vmul.f32 %v179_v30, %v250_v29 }
 0x13e   :  { %v152_v35 = vadd.f32 %v171_v17, %v137_v31  ;;  %v124_v36 = vmul.f32 %v181_v32, %v258_v38 }
 0x13f   :  { %159 = vst.msk [vmem:[%s329_s3 + $0x8] sm:$0xff] %vm22_vm0, %v151_v33  ;;  %v138_v21 = vmul.f32 %v170_v12, %v123_v34 }
 0x140   :  { %v183_v28 = vpop.eup %182  ;;  %160 = vst.msk [vmem:[%s329_s3 + $0x10] sm:$0xff] %vm22_vm0, %v152_v35  ;;  %v139_v37 = vmul.f32 %v170_v12, %v124_v36 }
 0x141   :  { %v185_v40 = vpop.eup %184  ;;  %v153_v41 = vadd.f32 %v171_v17, %v138_v21  ;;  %v125_v29 = vmul.f32 %v183_v28, %v260_v39 }
 0x142   :  { %v154_v42 = vadd.f32 %v171_v17, %v139_v37  ;;  %v126_v38 = vmul.f32 %v185_v40, %v268_v48 }
 0x143   :  { %161 = vst.msk [vmem:[%s329_s3 + $0x18] sm:$0xff] %vm22_vm0, %v153_v41  ;;  %v140_v43 = vmul.f32 %v170_v12, %v125_v29 }
 0x144   :  { %v187_v44 = vpop.eup %186  ;;  %162 = vst.msk [vmem:[%s329_s3 + $0x20] sm:$0xff] %vm22_vm0, %v154_v42  ;;  %v141_v45 = vmul.f32 %v170_v12, %v126_v38 }
 0x145   :  { %v155_v46 = vadd.f32 %v171_v17, %v140_v43  ;;  %v127_v47 = vmul.f32 %v187_v44, %v270_v49 }
 0x146   :  { %v156_v39 = vadd.f32 %v171_v17, %v141_v45 }
 0x147   :  { %163 = vst.msk [vmem:[%s329_s3 + $0x28] sm:$0xff] %vm22_vm0, %v155_v46  ;;  %v142_v48 = vmul.f32 %v170_v12, %v127_v47 }
 0x148   :  { %164 = vst.msk [vmem:[%s329_s3 + $0x30] sm:$0xff] %vm22_vm0, %v156_v39 }
 0x149   :  { %v157_v50 = vadd.f32 %v171_v17, %v142_v48 }
 0x14b   :  { %165 = vst.msk [vmem:[%s329_s3 + $0x38] sm:$0xff] %vm22_vm0, %v157_v50 }

// kernel: _lambda_.49
= control target key start
LH: loop header
LB: loop body
LE: loop exit
PB: predicated region body
PF: predicated region fallthrough
CT: control target
= control target key end

     0   :  { %vm18_vm0 = vcmask 261120   ;;  %s174_s0 = inlined_call_operand.vmem [shape: f32[32,32], index: 0, kind: input, shape index: {}]   ;;  %s175_s1 = inlined_call_operand.vmem [shape: f32[1,32], index: 1, kind: input, shape index: {}]   ;;  %s176_s2 = inlined_call_operand.vmem [shape: f32[1,32], index: 2, kind: input, shape index: {}]   ;;  %s177_s3 = inlined_call_operand.vmem [shape: f32[32,32], index: 3, kind: output, shape index: {}]  }
   0x1   :  { %v14_v0 = vld [vmem:[%s174_s0] sm:$0xff]  ;;  %v16_v1 = vld [vmem:[%s174_s0 + $0x10] sm:$0xff]  ;;  %v15_v2 = vld [vmem:[%s174_s0 + $0x8] sm:$0xff] }
   0x2   :  { %v19_v3 = vsel %vm18_vm0, %v14_v0, 0.0  ;;  %v25_v4 = vsel %vm18_vm0, %v16_v1, 0.0  ;;  %v17_v5 = vld [vmem:[%s174_s0 + $0x18] sm:$0xff]  ;;  %v22_v6 = vsel %vm18_vm0, %v15_v2, 0.0  ;;  %v102_v41 = vld [vmem:[%s175_s1] ss:$0 sm:$0xff] }
   0x3   :  { %20 = vadd.xlane.f32.xlu0 %v19_v3  ;;  %26 = vadd.xlane.f32.xlu1 %v25_v4  ;;  %v28_v7 = vsel %vm18_vm0, %v17_v5, 0.0  ;;  %v103_v43 = vld [vmem:[%s176_s2] ss:$0 sm:$0xff] }
   0x7   :  { %23 = vadd.xlane.f32.xlu0 %v22_v6  ;;  %29 = vadd.xlane.f32.xlu1 %v28_v7 }
  0x90   :  { %v21_v8 = vpop.xlane.xlu0 %20  ;;  %v27_v9 = vpop.xlane.xlu1 %26 }
  0x91   :  { %v32_v10 = vmul.f32 0.03125, %v21_v8  ;;  %v34_v11 = vmul.f32 0.03125, %v27_v9 }
  0x93   :  { %v36_v12 = vsub.f32 %v14_v0, %v32_v10  ;;  %v38_v13 = vsub.f32 %v16_v1, %v34_v11 }
  0x94   :  { %v24_v14 = vpop.xlane.xlu0 %23  ;;  %v30_v15 = vpop.xlane.xlu1 %29 }
  0x95   :  { %v33_v16 = vmul.f32 0.03125, %v24_v14  ;;  %v35_v17 = vmul.f32 0.03125, %v30_v15  ;;  %v40_v18 = vmul.f32 %v36_v12, %v36_v12  ;;  %v42_v19 = vmul.f32 %v38_v13, %v38_v13 }
  0x97   :  { %v37_v20 = vsub.f32 %v15_v2, %v33_v16  ;;  %v39_v21 = vsub.f32 %v17_v5, %v35_v17  ;;  %v44_v22 = vsel %vm18_vm0, %v40_v18, 0.0  ;;  %v50_v23 = vsel %vm18_vm0, %v42_v19, 0.0 }
  0x98   :  { %45 = vadd.xlane.f32.xlu0 %v44_v22 }
  0x99   :  { %v41_v24 = vmul.f32 %v37_v20, %v37_v20  ;;  %v43_v25 = vmul.f32 %v39_v21, %v39_v21 }
  0x9b   :  { %v47_v26 = vsel %vm18_vm0, %v41_v24, 0.0  ;;  %v53_v27 = vsel %vm18_vm0, %v43_v25, 0.0 }
  0x9c   :  { %51 = vadd.xlane.f32.xlu0 %v50_v23  ;;  %48 = vadd.xlane.f32.xlu1 %v47_v26 }
  0xa0   :  { %54 = vadd.xlane.f32.xlu1 %v53_v27 }
 0x125   :  { %v46_v28 = vpop.xlane.xlu0 %45 }
 0x126   :  { %v56_v29 = vmul.f32 0.03125, %v46_v28 }
 0x128   :  { %v60_v30 = vadd.f32 1e-05, %v56_v29 }
 0x129   :  { %v49_v31 = vpop.xlane.xlu1 %48  ;;  %v52_v32 = vpop.xlane.xlu0 %51 }
 0x12a   :  { %104 = vrsqrt.f32 %v60_v30  ;;  %v57_v33 = vmul.f32 0.03125, %v49_v31  ;;  %v58_v34 = vmul.f32 0.03125, %v52_v32 }
 0x12c   :  { %v61_v35 = vadd.f32 1e-05, %v57_v33  ;;  %v62_v36 = vadd.f32 1e-05, %v58_v34 }
 0x12d   :  { %v55_v37 = vpop.xlane.xlu1 %54 }
 0x12e   :  { %106 = vrsqrt.f32 %v61_v35  ;;  %v59_v38 = vmul.f32 0.03125, %v55_v37 }
 0x12f   :  { %108 = vrsqrt.f32 %v62_v36 }
 0x130   :  { %v63_v39 = vadd.f32 1e-05, %v59_v38 }
 0x132   :  { %110 = vrsqrt.f32 %v63_v39 }
 0x134   :  { %v105_v40 = vpop.eup %104 }
 0x135   :  { %v68_v42 = vmul.f32 %v105_v40, %v36_v12 }
 0x137   :  { %v79_v44 = vmul.f32 %v102_v41, %v68_v42 }
 0x138   :  { %v107_v45 = vpop.eup %106 }
 0x139   :  { %v109_v46 = vpop.eup %108  ;;  %v90_v47 = vadd.f32 %v103_v43, %v79_v44  ;;  %v69_v48 = vmul.f32 %v107_v45, %v37_v20 }
 0x13a   :  { %v70_v49 = vmul.f32 %v109_v46, %v38_v13 }
 0x13b   :  { %94 = vst.msk [vmem:[%s177_s3] sm:$0xff] %vm18_vm0, %v90_v47  ;;  %v80_v50 = vmul.f32 %v102_v41, %v69_v48 }
 0x13c   :  { %v111_v51 = vpop.eup %110  ;;  %v81_v52 = vmul.f32 %v102_v41, %v70_v49 }
 0x13d   :  { %v91_v53 = vadd.f32 %v103_v43, %v80_v50  ;;  %v71_v54 = vmul.f32 %v111_v51, %v39_v21 }
 0x13e   :  { %v92_v55 = vadd.f32 %v103_v43, %v81_v52 }
 0x13f   :  { %95 = vst.msk [vmem:[%s177_s3 + $0x8] sm:$0xff] %vm18_vm0, %v91_v53  ;;  %v82_v56 = vmul.f32 %v102_v41, %v71_v54 }
 0x140   :  { %96 = vst.msk [vmem:[%s177_s3 + $0x10] sm:$0xff] %vm18_vm0, %v92_v55 }
 0x141   :  { %v93_v57 = vadd.f32 %v103_v43, %v82_v56 }
 0x143   :  { %97 = vst.msk [vmem:[%s177_s3 + $0x18] sm:$0xff] %vm18_vm0, %v93_v57 }

// kernel: _lambda_.52
= control target key start
LH: loop header
LB: loop body
LE: loop exit
PB: predicated region body
PF: predicated region fallthrough
CT: control target
= control target key end

     0   :  { %vm26_vm0 = vcmask 261120   ;;  %s494_s0 = inlined_call_operand.vmem [shape: f32[96,32], index: 0, kind: input, shape index: {}]   ;;  %s495_s1 = inlined_call_operand.vmem [shape: f32[1,32], index: 1, kind: input, shape index: {}]   ;;  %s496_s2 = inlined_call_operand.vmem [shape: f32[1,32], index: 2, kind: input, shape index: {}]   ;;  %s497_s3 = inlined_call_operand.vmem [shape: f32[96,32], index: 3, kind: output, shape index: {}]  }
   0x1   :  { %v14_v0 = vld [vmem:[%s494_s0] sm:$0xff]  ;;  %v16_v1 = vld [vmem:[%s494_s0 + $0x10] sm:$0xff]  ;;  %v15_v2 = vld [vmem:[%s494_s0 + $0x8] sm:$0xff] }
   0x2   :  { %v27_v3 = vsel %vm26_vm0, %v14_v0, 0.0  ;;  %v33_v4 = vsel %vm26_vm0, %v16_v1, 0.0  ;;  %v17_v5 = vld [vmem:[%s494_s0 + $0x18] sm:$0xff]  ;;  %v30_v6 = vsel %vm26_vm0, %v15_v2, 0.0  ;;  %v18_v8 = vld [vmem:[%s494_s0 + $0x20] sm:$0xff]  ;;  %v19_v9 = vld [vmem:[%s494_s0 + $0x28] sm:$0xff] }
   0x3   :  { %28 = vadd.xlane.f32.xlu0 %v27_v3  ;;  %34 = vadd.xlane.f32.xlu1 %v33_v4  ;;  %v36_v7 = vsel %vm26_vm0, %v17_v5, 0.0  ;;  %v39_v10 = vsel %vm26_vm0, %v18_v8, 0.0  ;;  %v42_v11 = vsel %vm26_vm0, %v19_v9, 0.0  ;;  %v20_v12 = vld [vmem:[%s494_s0 + $0x30] sm:$0xff]  ;;  %v21_v13 = vld [vmem:[%s494_s0 + $0x38] sm:$0xff]  ;;  %v22_v16 = vld [vmem:[%s494_s0 + $0x40] sm:$0xff] }
   0x4   :  { %v45_v14 = vsel %vm26_vm0, %v20_v12, 0.0  ;;  %v48_v15 = vsel %vm26_vm0, %v21_v13, 0.0  ;;  %v23_v17 = vld [vmem:[%s494_s0 + $0x48] sm:$0xff]  ;;  %v51_v18 = vsel %vm26_vm0, %v22_v16, 0.0  ;;  %v327_v20 = vld [vmem:[%s494_s0 + $0x50] sm:$0xff]  ;;  %v332_v21 = vld [vmem:[%s494_s0 + $0x58] sm:$0xff] }
   0x5   :  { %v54_v19 = vsel %vm26_vm0, %v23_v17, 0.0  ;;  %v57_v22 = vsel %vm26_vm0, %v327_v20, 0.0  ;;  %v60_v23 = vsel %vm26_vm0, %v332_v21, 0.0 }
   0x7   :  { %31 = vadd.xlane.f32.xlu0 %v30_v6  ;;  %37 = vadd.xlane.f32.xlu1 %v36_v7 }
   0xb   :  { %40 = vadd.xlane.f32.xlu0 %v39_v10  ;;  %43 = vadd.xlane.f32.xlu1 %v42_v11 }
   0xf   :  { %46 = vadd.xlane.f32.xlu0 %v45_v14  ;;  %49 = vadd.xlane.f32.xlu1 %v48_v15 }
  0x13   :  { %52 = vadd.xlane.f32.xlu0 %v51_v18  ;;  %55 = vadd.xlane.f32.xlu1 %v54_v19 }
  0x17   :  { %58 = vadd.xlane.f32.xlu0 %v57_v22  ;;  %61 = vadd.xlane.f32.xlu1 %v60_v23 }
  0x90   :  { %v29_v24 = vpop.xlane.xlu0 %28  ;;  %v35_v25 = vpop.xlane.xlu1 %34 }
  0x91   :  { %v64_v26 = vmul.f32 0.03125, %v29_v24  ;;  %v66_v27 = vmul.f32 0.03125, %v35_v25 }
  0x93   :  { %v338_v28 = vsub.f32 %v14_v0, %v64_v26  ;;  %v340_v29 = vsub.f32 %v16_v1, %v66_v27 }
  0x94   :  { %v32_v30 = vpop.xlane.xlu0 %31  ;;  %v38_v31 = vpop.xlane.xlu1 %37 }
  0x95   :  { %v65_v32 = vmul.f32 0.03125, %v32_v30  ;;  %v67_v33 = vmul.f32 0.03125, %v38_v31  ;;  %v88_v34 = vmul.f32 %v338_v28, %v338_v28  ;;  %v90_v35 = vmul.f32 %v340_v29, %v340_v29 }
  0x97   :  { %v346_v36 = vsub.f32 %v15_v2, %v65_v32  ;;  %v348_v37 = vsub.f32 %v17_v5, %v67_v33  ;;  %v100_v38 = vsel %vm26_vm0, %v88_v34, 0.0  ;;  %v106_v41 = vsel %vm26_vm0, %v90_v35, 0.0 }
  0x98   :  { %101 = vadd.xlane.f32.xlu0 %v100_v38  ;;  %v41_v39 = vpop.xlane.xlu0 %40  ;;  %v44_v40 = vpop.xlane.xlu1 %43 }
  0x99   :  { %v68_v42 = vmul.f32 0.03125, %v41_v39  ;;  %v69_v43 = vmul.f32 0.03125, %v44_v40  ;;  %v89_v44 = vmul.f32 %v346_v36, %v346_v36  ;;  %v91_v45 = vmul.f32 %v348_v37, %v348_v37 }
  0x9b   :  { %v356_v46 = vsub.f32 %v18_v8, %v68_v42  ;;  %v358_v47 = vsub.f32 %v19_v9, %v69_v43  ;;  %v103_v48 = vsel %vm26_vm0, %v89_v44, 0.0  ;;  %v109_v51 = vsel %vm26_vm0, %v91_v45, 0.0  ;;  %v403_v44 = vld [vmem:[%s495_s1] ss:$0 sm:$0xff] }
  0x9c   :  { %107 = vadd.xlane.f32.xlu0 %v106_v41  ;;  %104 = vadd.xlane.f32.xlu1 %v103_v48  ;;  %v47_v49 = vpop.xlane.xlu0 %46  ;;  %v50_v50 = vpop.xlane.xlu1 %49 }
  0x9d   :  { %v70_v52 = vmul.f32 0.03125, %v47_v49  ;;  %v71_v53 = vmul.f32 0.03125, %v50_v50  ;;  %v92_v54 = vmul.f32 %v356_v46, %v356_v46  ;;  %v93_v55 = vmul.f32 %v358_v47, %v358_v47 }
  0x9f   :  { %v366_v56 = vsub.f32 %v20_v12, %v70_v52  ;;  %v368_v57 = vsub.f32 %v21_v13, %v71_v53  ;;  %v112_v58 = vsel %vm26_vm0, %v92_v54, 0.0  ;;  %v115_v61 = vsel %vm26_vm0, %v93_v55, 0.0  ;;  %v409_v52 = vld [vmem:[%s496_s2] ss:$0 sm:$0xff] }
  0xa0   :  { %110 = vadd.xlane.f32.xlu1 %v109_v51  ;;  %113 = vadd.xlane.f32.xlu0 %v112_v58  ;;  %v53_v59 = vpop.xlane.xlu0 %52  ;;  %v56_v60 = vpop.xlane.xlu1 %55 }
  0xa1   :  { %v72_v62 = vmul.f32 0.03125, %v53_v59  ;;  %v73_v63 = vmul.f32 0.03125, %v56_v60  ;;  %v94_v0 = vmul.f32 %v366_v56, %v366_v56  ;;  %v95_v1 = vmul.f32 %v368_v57, %v368_v57 }
  0xa3   :  { %v376_v2 = vsub.f32 %v22_v16, %v72_v62  ;;  %v378_v3 = vsub.f32 %v23_v17, %v73_v63  ;;  %v118_v4 = vsel %vm26_vm0, %v94_v0, 0.0  ;;  %v121_v7 = vsel %vm26_vm0, %v95_v1, 0.0 }
  0xa4   :  { %116 = vadd.xlane.f32.xlu1 %v115_v61  ;;  %119 = vadd.xlane.f32.xlu0 %v118_v4  ;;  %v59_v5 = vpop.xlane.xlu0 %58  ;;  %v62_v6 = vpop.xlane.xlu1 %61 }
  0xa5   :  { %v74_v8 = vmul.f32 0.03125, %v59_v5  ;;  %v75_v9 = vmul.f32 0.03125, %v62_v6  ;;  %v96_v10 = vmul.f32 %v376_v2, %v376_v2  ;;  %v97_v11 = vmul.f32 %v378_v3, %v378_v3 }
  0xa7   :  { %v387_v12 = vsub.f32 %v327_v20, %v74_v8  ;;  %v390_v13 = vsub.f32 %v332_v21, %v75_v9  ;;  %v124_v14 = vsel %vm26_vm0, %v96_v10, 0.0  ;;  %v127_v15 = vsel %vm26_vm0, %v97_v11, 0.0 }
  0xa8   :  { %122 = vadd.xlane.f32.xlu1 %v121_v7  ;;  %125 = vadd.xlane.f32.xlu0 %v124_v14 }
  0xa9   :  { %v98_v16 = vmul.f32 %v387_v12, %v387_v12  ;;  %v99_v17 = vmul.f32 %v390_v13, %v390_v13 }
  0xab   :  { %v130_v18 = vsel %vm26_vm0, %v98_v16, 0.0  ;;  %v133_v19 = vsel %vm26_vm0, %v99_v17, 0.0 }
  0xac   :  { %128 = vadd.xlane.f32.xlu1 %v127_v15  ;;  %131 = vadd.xlane.f32.xlu0 %v130_v18 }
  0xb0   :  { %134 = vadd.xlane.f32.xlu1 %v133_v19 }
 0x125   :  { %v102_v20 = vpop.xlane.xlu0 %101 }
 0x126   :  { %v136_v21 = vmul.f32 0.03125, %v102_v20 }
 0x128   :  { %v148_v22 = vadd.f32 1e-05, %v136_v21 }
 0x129   :  { %v105_v23 = vpop.xlane.xlu1 %104  ;;  %v108_v24 = vpop.xlane.xlu0 %107 }
 0x12a   :  { %240 = vrsqrt.f32 %v148_v22  ;;  %v137_v25 = vmul.f32 0.03125, %v105_v23  ;;  %v138_v26 = vmul.f32 0.03125, %v108_v24 }
 0x12c   :  { %v149_v27 = vadd.f32 1e-05, %v137_v25  ;;  %v150_v30 = vadd.f32 1e-05, %v138_v26 }
 0x12d   :  { %v111_v31 = vpop.xlane.xlu1 %110  ;;  %v114_v32 = vpop.xlane.xlu0 %113 }
 0x12e   :  { %242 = vrsqrt.f32 %v149_v27  ;;  %v139_v33 = vmul.f32 0.03125, %v111_v31  ;;  %v140_v34 = vmul.f32 0.03125, %v114_v32 }
 0x12f   :  { %244 = vrsqrt.f32 %v150_v30 }
 0x130   :  { %v151_v35 = vadd.f32 1e-05, %v139_v33  ;;  %v152_v38 = vadd.f32 1e-05, %v140_v34 }
 0x131   :  { %v117_v39 = vpop.xlane.xlu1 %116  ;;  %v120_v40 = vpop.xlane.xlu0 %119 }
 0x132   :  { %246 = vrsqrt.f32 %v151_v35  ;;  %v141_v41 = vmul.f32 0.03125, %v117_v39  ;;  %v142_v42 = vmul.f32 0.03125, %v120_v40 }
 0x133   :  { %248 = vrsqrt.f32 %v152_v38 }
 0x134   :  { %v241_v43 = vpop.eup %240  ;;  %v153_v45 = vadd.f32 1e-05, %v141_v41  ;;  %v154_v48 = vadd.f32 1e-05, %v142_v42 }
 0x135   :  { %v172_v49 = vmul.f32 %v241_v43, %v338_v28  ;;  %v123_v50 = vpop.xlane.xlu1 %122  ;;  %v126_v51 = vpop.xlane.xlu0 %125 }
 0x136   :  { %250 = vrsqrt.f32 %v153_v45  ;;  %v143_v53 = vmul.f32 0.03125, %v123_v50  ;;  %v144_v54 = vmul.f32 0.03125, %v126_v51 }
 0x137   :  { %v191_v55 = vmul.f32 %v403_v44, %v172_v49  ;;  %252 = vrsqrt.f32 %v154_v48 }
 0x138   :  { %v243_v58 = vpop.eup %242  ;;  %v155_v59 = vadd.f32 1e-05, %v143_v53  ;;  %v156_v60 = vadd.f32 1e-05, %v144_v54 }
 0x139   :  { %v245_v61 = vpop.eup %244  ;;  %v210_v62 = vadd.f32 %v409_v52, %v191_v55  ;;  %v173_v28 = vmul.f32 %v243_v58, %v346_v36  ;;  %v129_v63 = vpop.xlane.xlu1 %128 }
 0x13a   :  { %v132_v0 = vpop.xlane.xlu0 %131  ;;  %v174_v1 = vmul.f32 %v245_v61, %v340_v29  ;;  %254 = vrsqrt.f32 %v155_v59  ;;  %v145_v4 = vmul.f32 0.03125, %v129_v63 }
 0x13b   :  { %v146_v5 = vmul.f32 0.03125, %v132_v0  ;;  %222 = vst.msk [vmem:[%s497_s3] sm:$0xff] %vm26_vm0, %v210_v62  ;;  %v192_v6 = vmul.f32 %v403_v44, %v173_v28  ;;  %256 = vrsqrt.f32 %v156_v60 }
 0x13c   :  { %v247_v7 = vpop.eup %246  ;;  %v193_v8 = vmul.f32 %v403_v44, %v174_v1  ;;  %v157_v9 = vadd.f32 1e-05, %v145_v4 }
 0x13d   :  { %v158_v36 = vadd.f32 1e-05, %v146_v5  ;;  %v249_v10 = vpop.eup %248  ;;  %v211_v11 = vadd.f32 %v409_v52, %v192_v6  ;;  %v175_v29 = vmul.f32 %v247_v7, %v348_v37  ;;  %v135_v14 = vpop.xlane.xlu1 %134 }
 0x13e   :  { %v212_v15 = vadd.f32 %v409_v52, %v193_v8  ;;  %v176_v16 = vmul.f32 %v249_v10, %v356_v46  ;;  %258 = vrsqrt.f32 %v157_v9  ;;  %v147_v17 = vmul.f32 0.03125, %v135_v14 }
 0x13f   :  { %223 = vst.msk [vmem:[%s497_s3 + $0x8] sm:$0xff] %vm26_vm0, %v211_v11  ;;  %v194_v18 = vmul.f32 %v403_v44, %v175_v29  ;;  %260 = vrsqrt.f32 %v158_v36 }
 0x140   :  { %v251_v19 = vpop.eup %250  ;;  %224 = vst.msk [vmem:[%s497_s3 + $0x10] sm:$0xff] %vm26_vm0, %v212_v15  ;;  %v195_v37 = vmul.f32 %v403_v44, %v176_v16  ;;  %v159_v20 = vadd.f32 1e-05, %v147_v17 }
 0x141   :  { %v253_v46 = vpop.eup %252  ;;  %v213_v21 = vadd.f32 %v409_v52, %v194_v18  ;;  %v177_v22 = vmul.f32 %v251_v19, %v358_v47 }
 0x142   :  { %v214_v23 = vadd.f32 %v409_v52, %v195_v37  ;;  %v178_v24 = vmul.f32 %v253_v46, %v366_v56  ;;  %262 = vrsqrt.f32 %v159_v20 }
 0x143   :  { %225 = vst.msk [vmem:[%s497_s3 + $0x18] sm:$0xff] %vm26_vm0, %v213_v21  ;;  %v196_v25 = vmul.f32 %v403_v44, %v177_v22 }
 0x144   :  { %v255_v26 = vpop.eup %254  ;;  %226 = vst.msk [vmem:[%s497_s3 + $0x20] sm:$0xff] %vm26_vm0, %v214_v23  ;;  %v197_v47 = vmul.f32 %v403_v44, %v178_v24 }
 0x145   :  { %v257_v27 = vpop.eup %256  ;;  %v215_v30 = vadd.f32 %v409_v52, %v196_v25  ;;  %v179_v56 = vmul.f32 %v255_v26, %v368_v57 }
 0x146   :  { %v216_v31 = vadd.f32 %v409_v52, %v197_v47  ;;  %v180_v32 = vmul.f32 %v257_v27, %v376_v2 }
 0x147   :  { %227 = vst.msk [vmem:[%s497_s3 + $0x28] sm:$0xff] %vm26_vm0, %v215_v30  ;;  %v198_v33 = vmul.f32 %v403_v44, %v179_v56 }
 0x148   :  { %v259_v34 = vpop.eup %258  ;;  %228 = vst.msk [vmem:[%s497_s3 + $0x30] sm:$0xff] %vm26_vm0, %v216_v31  ;;  %v199_v35 = vmul.f32 %v403_v44, %v180_v32 }
 0x149   :  { %v261_v57 = vpop.eup %260  ;;  %v217_v38 = vadd.f32 %v409_v52, %v198_v33  ;;  %v181_v2 = vmul.f32 %v259_v34, %v378_v3 }
 0x14a   :  { %v218_v39 = vadd.f32 %v409_v52, %v199_v35  ;;  %v182_v40 = vmul.f32 %v261_v57, %v387_v12 }
 0x14b   :  { %229 = vst.msk [vmem:[%s497_s3 + $0x38] sm:$0xff] %vm26_vm0, %v217_v38  ;;  %v200_v41 = vmul.f32 %v403_v44, %v181_v2 }
 0x14c   :  { %v263_v42 = vpop.eup %262  ;;  %230 = vst.msk [vmem:[%s497_s3 + $0x40] sm:$0xff] %vm26_vm0, %v218_v39  ;;  %v201_v43 = vmul.f32 %v403_v44, %v182_v40 }
 0x14d   :  { %v219_v3 = vadd.f32 %v409_v52, %v200_v41  ;;  %v183_v45 = vmul.f32 %v263_v42, %v390_v13 }
 0x14e   :  { %v220_v12 = vadd.f32 %v409_v52, %v201_v43 }
 0x14f   :  { %231 = vst.msk [vmem:[%s497_s3 + $0x48] sm:$0xff] %vm26_vm0, %v219_v3  ;;  %v202_v48 = vmul.f32 %v403_v44, %v183_v45 }
 0x150   :  { %232 = vst.msk [vmem:[%s497_s3 + $0x50] sm:$0xff] %vm26_vm0, %v220_v12 }
 0x151   :  { %v221_v49 = vadd.f32 %v409_v52, %v202_v48 }
 0x153   :  { %233 = vst.msk [vmem:[%s497_s3 + $0x58] sm:$0xff] %vm26_vm0, %v221_v49 }

// kernel: _lambda_.64
= control target key start
LH: loop header
LB: loop body
LE: loop exit
PB: predicated region body
PF: predicated region fallthrough
CT: control target
= control target key end

     0   :  { %vm34_vm0 = vcmask 261120   ;;  %s81_s0 = inlined_call_operand.vmem [shape: f32[16,32], index: 0, kind: input, shape index: {}]   ;;  %s82_s1 = inlined_call_operand.vmem [shape: f32[1,32], index: 1, kind: input, shape index: {}]   ;;  %s83_s2 = inlined_call_operand.vmem [shape: f32[1,32], index: 2, kind: input, shape index: {}]   ;;  %s84_s3 = inlined_call_operand.vmem [shape: f32[16,32], index: 3, kind: output, shape index: {}]  }
   0x1   :  { %v14_v0 = vld [vmem:[%s81_s0] sm:$0xff]  ;;  %v15_v4 = vld [vmem:[%s81_s0 + $0x8] sm:$0xff] }
   0x2   :  { %v41_v1 = vld [vmem:[%s82_s1] ss:$0 sm:$0xff] }
   0x3   :  { %v42_v2 = vld [vmem:[%s83_s2] ss:$0 sm:$0xff]  ;;  %v23_v3 = vmul.f32 %v41_v1, %v14_v0  ;;  %v24_v5 = vmul.f32 %v41_v1, %v15_v4 }
   0x5   :  { %v32_v6 = vadd.f32 %v42_v2, %v23_v3  ;;  %v33_v7 = vadd.f32 %v42_v2, %v24_v5 }
   0x7   :  { %35 = vst.msk [vmem:[%s84_s3] sm:$0xff] %vm34_vm0, %v32_v6  ;;  %36 = vst.msk [vmem:[%s84_s3 + $0x8] sm:$0xff] %vm34_vm0, %v33_v7 }

// kernel: _lambda_.63
= control target key start
LH: loop header
LB: loop body
LE: loop exit
PB: predicated region body
PF: predicated region fallthrough
CT: control target
= control target key end

     0   :  { %v33_v0 = vlaneseq  ;;  %vm89_vm0 = vcmask 1046528   ;;  %vm166_vm1 = vcmask 1045504   ;;  %vm551_vm2 = vcmask 261120   ;;  %s978_s1 = inlined_call_operand.vmem [shape: f32[9,32], index: 1, kind: input, shape index: {}]   ;;  %s979_s0 = inlined_call_operand.vmem [shape: f32[1,10,10,32], index: 0, kind: input, shape index: {}]   ;;  %s980_s2 = inlined_call_operand.vmem [shape: f32[1,8,8,32], index: 2, kind: output, shape index: {}]  }
   0x1   :  { %v31_v2 = vld [vmem:[%s978_s1] sm:$0xff]  ;;  %v12_v8 = vld [vmem:[%s979_s0 + $0x8] sm:$0x3]  ;;  %v13_v21 = vld [vmem:[%s979_s0 + $0x10] sm:$0xff] }
   0x2   :  { %v34_v1 = vshrl.u32 %v33_v0, 7  ;;  %v11_v3 = vld [vmem:[%s979_s0] sm:$0xff]  ;;  %v14_v22 = vld [vmem:[%s979_s0 + $0x18] sm:$0x3]  ;;  %v628_v36 = vld [vmem:[%s978_s1 + $0x8] ss:$0 sm:$0xff] }
   0x3   :  { %v623_v35 = vld [vmem:[%s979_s0 + $0x20] sm:$0xff]  ;;  %v639_v45 = vld [vmem:[%s979_s0 + $0x28] sm:$0x3] }
   0x4   :  { %v35_v4 = vsub.s32 0, %v34_v1  ;;  %v55_v5 = vsub.s32 1, %v34_v1  ;;  %v132_v6 = vsub.s32 2, %v34_v1  ;;  %v209_v7 = vsub.s32 3, %v34_v1 }
   0x5   :  { %v229_v9 = vsub.s32 4, %v34_v1  ;;  %v305_v10 = vsub.s32 5, %v34_v1  ;;  %v381_v11 = vsub.s32 6, %v34_v1  ;;  %v401_v12 = vsub.s32 7, %v34_v1 }
   0x6   :  { %v589_v13 = vrot.slane %v31_v2, %v35_v4  ;;  %v591_v14 = vrot.slane %v31_v2, %v55_v5  ;;  %v593_v15 = vrot.slane %v31_v2, %v132_v6  ;;  %v595_v16 = vrot.slane %v31_v2, %v209_v7 }
   0x7   :  { %v597_v17 = vrot.slane %v31_v2, %v229_v9  ;;  %v599_v18 = vrot.slane %v31_v2, %v305_v10  ;;  %v601_v19 = vrot.slane %v31_v2, %v381_v11  ;;  %v603_v20 = vrot.slane %v31_v2, %v401_v12 }
   0x8   :  { %v37_v23 = vmul.f32 %v589_v13, %v11_v3  ;;  %v57_v24 = vmul.f32 %v591_v14, %v11_v3  ;;  %v58_v25 = vmul.f32 %v591_v14, %v12_v8  ;;  %v134_v26 = vmul.f32 %v593_v15, %v11_v3 }
   0x9   :  { %v135_v27 = vmul.f32 %v593_v15, %v12_v8  ;;  %v211_v28 = vmul.f32 %v595_v16, %v13_v21  ;;  %v231_v29 = vmul.f32 %v597_v17, %v13_v21  ;;  %v232_v30 = vmul.f32 %v597_v17, %v14_v22 }
   0xa   :  { %v90_v31 = vrot.slane %v57_v24, 1  ;;  %v91_v32 = vrot.slane %v58_v25, 1  ;;  %v167_v33 = vrot.slane %v134_v26, 2  ;;  %v307_v34 = vmul.f32 %v599_v18, %v13_v21 }
   0xb   :  { %v168_v37 = vrot.slane %v135_v27, 2  ;;  %v263_v38 = vrot.slane %v231_v29, 1  ;;  %v264_v39 = vrot.slane %v232_v30, 1  ;;  %v308_v40 = vmul.f32 %v599_v18, %v14_v22  ;;  %v677_v27 = vld [vmem:[%s979_s0 + $0x38] sm:$0x3] }
   0xc   :  { %v92_v41 = vsel %vm89_vm0, %v90_v31, %v91_v32  ;;  %v339_v42 = vrot.slane %v307_v34, 2  ;;  %v383_v43 = vmul.f32 %v601_v19, %v623_v35  ;;  %v403_v44 = vmul.f32 %v603_v20, %v623_v35 }
   0xd   :  { %v122_v46 = vadd.f32 %v92_v41, %v37_v23  ;;  %v169_v47 = vsel %vm166_vm1, %v167_v33, %v168_v37  ;;  %v265_v48 = vsel %vm89_vm0, %v263_v38, %v264_v39  ;;  %v340_v49 = vrot.slane %v308_v40, 2  ;;  %v671_v23 = vld [vmem:[%s979_s0 + $0x30] sm:$0xff] }
   0xe   :  { %v404_v50 = vmul.f32 %v603_v20, %v639_v45  ;;  %v435_v51 = vrot.slane %v403_v44, 1  ;;  %v479_v52 = vmul.f32 %v628_v36, %v623_v35  ;;  %v480_v53 = vmul.f32 %v628_v36, %v639_v45 }
   0xf   :  { %v199_v54 = vadd.f32 %v169_v47, %v122_v46  ;;  %v341_v55 = vsel %vm166_vm1, %v339_v42, %v340_v49  ;;  %v38_v56 = vmul.f32 %v589_v13, %v13_v21  ;;  %v59_v57 = vmul.f32 %v591_v14, %v13_v21 }
  0x10   :  { %v436_v58 = vrot.slane %v404_v50, 1  ;;  %v511_v59 = vrot.slane %v479_v52, 2  ;;  %v512_v60 = vrot.slane %v480_v53, 2  ;;  %v60_v61 = vmul.f32 %v591_v14, %v14_v22 }
  0x11   :  { %v219_v62 = vadd.f32 %v211_v28, %v199_v54  ;;  %v93_v63 = vrot.slane %v59_v57, 1  ;;  %v136_v0 = vmul.f32 %v593_v15, %v13_v21  ;;  %v137_v1 = vmul.f32 %v593_v15, %v14_v22 }
  0x12   :  { %v437_v2 = vsel %vm89_vm0, %v435_v51, %v436_v58  ;;  %v513_v3 = vsel %vm166_vm1, %v511_v59, %v512_v60  ;;  %v94_v4 = vrot.slane %v60_v61, 1  ;;  %v212_v5 = vmul.f32 %v595_v16, %v623_v35 }
  0x13   :  { %v295_v6 = vadd.f32 %v265_v48, %v219_v62  ;;  %v170_v7 = vrot.slane %v136_v0, 2  ;;  %v171_v8 = vrot.slane %v137_v1, 2  ;;  %v233_v9 = vmul.f32 %v597_v17, %v623_v35 }
  0x14   :  { %v95_v10 = vsel %vm89_vm0, %v93_v63, %v94_v4  ;;  %v234_v11 = vmul.f32 %v597_v17, %v639_v45  ;;  %v309_v12 = vmul.f32 %v599_v18, %v623_v35  ;;  %v310_v21 = vmul.f32 %v599_v18, %v639_v45 }
  0x15   :  { %v371_v22 = vadd.f32 %v341_v55, %v295_v6  ;;  %v123_v24 = vadd.f32 %v95_v10, %v38_v56  ;;  %v172_v25 = vsel %vm166_vm1, %v170_v7, %v171_v8  ;;  %v266_v26 = vrot.slane %v233_v9, 1 }
  0x16   :  { %v267_v28 = vrot.slane %v234_v11, 1  ;;  %v342_v29 = vrot.slane %v309_v12, 2  ;;  %v343_v30 = vrot.slane %v310_v21, 2  ;;  %v384_v31 = vmul.f32 %v601_v19, %v671_v23  ;;  %v727_v11 = vld [vmem:[%s979_s0 + $0x48] sm:$0x3] }
  0x17   :  { %v391_v32 = vadd.f32 %v383_v43, %v371_v22  ;;  %v200_v33 = vadd.f32 %v172_v25, %v123_v24  ;;  %v405_v34 = vmul.f32 %v603_v20, %v671_v23  ;;  %v406_v37 = vmul.f32 %v603_v20, %v677_v27 }
  0x18   :  { %v268_v38 = vsel %vm89_vm0, %v266_v26, %v267_v28  ;;  %v344_v39 = vsel %vm166_vm1, %v342_v29, %v343_v30  ;;  %v481_v40 = vmul.f32 %v628_v36, %v671_v23  ;;  %v482_v41 = vmul.f32 %v628_v36, %v677_v27 }
  0x19   :  { %v467_v42 = vadd.f32 %v437_v2, %v391_v32  ;;  %v220_v44 = vadd.f32 %v212_v5, %v200_v33  ;;  %v438_v43 = vrot.slane %v405_v34, 1  ;;  %v439_v46 = vrot.slane %v406_v37, 1  ;;  %v721_v5 = vld [vmem:[%s979_s0 + $0x40] sm:$0xff] }
  0x1a   :  { %v514_v47 = vrot.slane %v481_v40, 2  ;;  %v515_v48 = vrot.slane %v482_v41, 2  ;;  %v39_v49 = vmul.f32 %v589_v13, %v623_v35  ;;  %v61_v50 = vmul.f32 %v591_v14, %v623_v35 }
  0x1b   :  { %v543_v51 = vadd.f32 %v513_v3, %v467_v42  ;;  %v296_v52 = vadd.f32 %v268_v38, %v220_v44  ;;  %v440_v53 = vsel %vm89_vm0, %v438_v43, %v439_v46  ;;  %v62_v54 = vmul.f32 %v591_v14, %v639_v45 }
  0x1c   :  { %v516_v55 = vsel %vm166_vm1, %v514_v47, %v515_v48  ;;  %v96_v56 = vrot.slane %v61_v50, 1  ;;  %v138_v57 = vmul.f32 %v593_v15, %v623_v35  ;;  %v139_v58 = vmul.f32 %v593_v15, %v639_v45 }
  0x1d   :  { %552 = vst.msk [vmem:[%s980_s2] sm:$0xff] %vm551_vm2, %v543_v51  ;;  %v372_v59 = vadd.f32 %v344_v39, %v296_v52  ;;  %v97_v60 = vrot.slane %v62_v54, 1  ;;  %v213_v61 = vmul.f32 %v595_v16, %v671_v23  ;;  %v235_v62 = vmul.f32 %v597_v17, %v671_v23 }
  0x1e   :  { %v173_v63 = vrot.slane %v138_v57, 2  ;;  %v174_v0 = vrot.slane %v139_v58, 2  ;;  %v236_v35 = vmul.f32 %v597_v17, %v677_v27  ;;  %v311_v45 = vmul.f32 %v599_v18, %v671_v23  ;;  %v771_v58 = vld [vmem:[%s979_s0 + $0x50] sm:$0xff] }
  0x1f   :  { %v392_v1 = vadd.f32 %v384_v31, %v372_v59  ;;  %v98_v2 = vsel %vm89_vm0, %v96_v56, %v97_v60  ;;  %v269_v3 = vrot.slane %v235_v62, 1  ;;  %v312_v4 = vmul.f32 %v599_v18, %v677_v27  ;;  %v777_v62 = vld [vmem:[%s979_s0 + $0x58] sm:$0x3] }
  0x20   :  { %v124_v6 = vadd.f32 %v98_v2, %v39_v49  ;;  %v175_v7 = vsel %vm166_vm1, %v173_v63, %v174_v0  ;;  %v270_v8 = vrot.slane %v236_v35, 1  ;;  %v345_v9 = vrot.slane %v311_v45, 2 }
  0x21   :  { %v468_v10 = vadd.f32 %v440_v53, %v392_v1  ;;  %v346_v12 = vrot.slane %v312_v4, 2  ;;  %v407_v21 = vmul.f32 %v603_v20, %v721_v5  ;;  %v385_v24 = vmul.f32 %v601_v19, %v721_v5 }
  0x22   :  { %v201_v22 = vadd.f32 %v175_v7, %v124_v6  ;;  %v408_v25 = vmul.f32 %v603_v20, %v727_v11  ;;  %v483_v26 = vmul.f32 %v628_v36, %v721_v5  ;;  %v271_v29 = vsel %vm89_vm0, %v269_v3, %v270_v8 }
  0x23   :  { %v544_v28 = vadd.f32 %v516_v55, %v468_v10  ;;  %v441_v30 = vrot.slane %v407_v21, 1  ;;  %v484_v31 = vmul.f32 %v628_v36, %v727_v11  ;;  %v347_v33 = vsel %vm166_vm1, %v345_v9, %v346_v12 }
  0x24   :  { %v221_v32 = vadd.f32 %v213_v61, %v201_v22  ;;  %v442_v34 = vrot.slane %v408_v25, 1  ;;  %v517_v37 = vrot.slane %v483_v26, 2  ;;  %v63_v39 = vmul.f32 %v591_v14, %v671_v23 }
  0x25   :  { %553 = vst.msk [vmem:[%s980_s2 + $0x8] sm:$0xff] %vm551_vm2, %v544_v28  ;;  %v518_v38 = vrot.slane %v484_v31, 2  ;;  %v64_v40 = vmul.f32 %v591_v14, %v677_v27  ;;  %v140_v41 = vmul.f32 %v593_v15, %v671_v23  ;;  %v40_v43 = vmul.f32 %v589_v13, %v671_v23 }
  0x26   :  { %v297_v42 = vadd.f32 %v271_v29, %v221_v32  ;;  %v443_v44 = vsel %vm89_vm0, %v441_v30, %v442_v34  ;;  %v141_v46 = vmul.f32 %v593_v15, %v677_v27  ;;  %v99_v47 = vrot.slane %v63_v39, 1 }
  0x27   :  { %v100_v48 = vrot.slane %v64_v40, 1  ;;  %v176_v49 = vrot.slane %v140_v41, 2  ;;  %v214_v50 = vmul.f32 %v595_v16, %v721_v5  ;;  %v237_v53 = vmul.f32 %v597_v17, %v721_v5 }
  0x28   :  { %v373_v51 = vadd.f32 %v347_v33, %v297_v42  ;;  %v177_v52 = vrot.slane %v141_v46, 2  ;;  %v238_v54 = vmul.f32 %v597_v17, %v727_v11  ;;  %v519_v55 = vsel %vm166_vm1, %v517_v37, %v518_v38 }
  0x29   :  { %v101_v23 = vsel %vm89_vm0, %v99_v47, %v100_v48  ;;  %v313_v27 = vmul.f32 %v599_v18, %v721_v5  ;;  %v314_v56 = vmul.f32 %v599_v18, %v727_v11  ;;  %v272_v61 = vrot.slane %v237_v53, 1 }
  0x2a   :  { %v393_v57 = vadd.f32 %v385_v24, %v373_v51  ;;  %v125_v59 = vadd.f32 %v101_v23, %v40_v43  ;;  %v178_v60 = vsel %vm166_vm1, %v176_v49, %v177_v52  ;;  %v273_v63 = vrot.slane %v238_v54, 1  ;;  %v822_v51 = vld [vmem:[%s979_s0 + $0x60] sm:$0xff]  ;;  %v827_v52 = vld [vmem:[%s979_s0 + $0x68] sm:$0x3] }
  0x2b   :  { %v348_v0 = vrot.slane %v313_v27, 2  ;;  %v349_v35 = vrot.slane %v314_v56, 2  ;;  %v409_v45 = vmul.f32 %v603_v20, %v771_v58  ;;  %v410_v3 = vmul.f32 %v603_v20, %v777_v62 }
  0x2c   :  { %v469_v1 = vadd.f32 %v443_v44, %v393_v57  ;;  %v202_v2 = vadd.f32 %v178_v60, %v125_v59  ;;  %v485_v4 = vmul.f32 %v628_v36, %v771_v58  ;;  %v274_v6 = vsel %vm89_vm0, %v272_v61, %v273_v63 }
  0x2d   :  { %v386_v7 = vmul.f32 %v601_v19, %v771_v58  ;;  %v444_v8 = vrot.slane %v409_v45, 1  ;;  %v486_v9 = vmul.f32 %v628_v36, %v777_v62  ;;  %v350_v21 = vsel %vm166_vm1, %v348_v0, %v349_v35 }
  0x2e   :  { %v545_v10 = vadd.f32 %v519_v55, %v469_v1  ;;  %v222_v12 = vadd.f32 %v214_v50, %v202_v2  ;;  %v445_v22 = vrot.slane %v410_v3, 1  ;;  %v520_v24 = vrot.slane %v485_v4, 2 }
  0x2f   :  { %v521_v25 = vrot.slane %v486_v9, 2  ;;  %v65_v26 = vmul.f32 %v591_v14, %v721_v5  ;;  %v66_v28 = vmul.f32 %v591_v14, %v727_v11  ;;  %v41_v30 = vmul.f32 %v589_v13, %v721_v5 }
  0x30   :  { %554 = vst.msk [vmem:[%s980_s2 + $0x10] sm:$0xff] %vm551_vm2, %v545_v10  ;;  %v298_v29 = vadd.f32 %v274_v6, %v222_v12  ;;  %v142_v31 = vmul.f32 %v593_v15, %v721_v5  ;;  %v143_v32 = vmul.f32 %v593_v15, %v727_v11  ;;  %v446_v33 = vsel %vm89_vm0, %v444_v8, %v445_v22 }
  0x31   :  { %v102_v34 = vrot.slane %v65_v26, 1  ;;  %v103_v37 = vrot.slane %v66_v28, 1  ;;  %v215_v38 = vmul.f32 %v595_v16, %v771_v58  ;;  %v239_v42 = vmul.f32 %v597_v17, %v771_v58 }
  0x32   :  { %v374_v39 = vadd.f32 %v350_v21, %v298_v29  ;;  %v179_v40 = vrot.slane %v142_v31, 2  ;;  %v180_v41 = vrot.slane %v143_v32, 2  ;;  %v240_v5 = vmul.f32 %v597_v17, %v777_v62 }
  0x33   :  { %v104_v44 = vsel %vm89_vm0, %v102_v34, %v103_v37  ;;  %v315_v11 = vmul.f32 %v599_v18, %v771_v58  ;;  %v316_v43 = vmul.f32 %v599_v18, %v777_v62  ;;  %v275_v49 = vrot.slane %v239_v42, 1 }
  0x34   :  { %v394_v46 = vadd.f32 %v386_v7, %v374_v39  ;;  %v126_v47 = vadd.f32 %v104_v44, %v41_v30  ;;  %v181_v48 = vsel %vm166_vm1, %v179_v40, %v180_v41  ;;  %v522_v50 = vsel %vm166_vm1, %v520_v24, %v521_v25  ;;  %v876_v39 = vld [vmem:[%s979_s0 + $0x78] sm:$0x3] }
  0x35   :  { %v276_v53 = vrot.slane %v240_v5, 1  ;;  %v351_v54 = vrot.slane %v315_v11, 2  ;;  %v352_v55 = vrot.slane %v316_v43, 2  ;;  %v411_v56 = vmul.f32 %v603_v20, %v822_v51 }
  0x36   :  { %v470_v23 = vadd.f32 %v446_v33, %v394_v46  ;;  %v203_v27 = vadd.f32 %v181_v48, %v126_v47  ;;  %v412_v57 = vmul.f32 %v603_v20, %v827_v52  ;;  %v387_v60 = vmul.f32 %v601_v19, %v822_v51 }
  0x37   :  { %v277_v59 = vsel %vm89_vm0, %v275_v49, %v276_v53  ;;  %v487_v61 = vmul.f32 %v628_v36, %v822_v51  ;;  %v488_v63 = vmul.f32 %v628_v36, %v827_v52  ;;  %v447_v45 = vrot.slane %v411_v56, 1 }
  0x38   :  { %v546_v0 = vadd.f32 %v522_v50, %v470_v23  ;;  %v223_v35 = vadd.f32 %v215_v38, %v203_v27  ;;  %v448_v1 = vrot.slane %v412_v57, 1  ;;  %v353_v2 = vsel %vm166_vm1, %v351_v54, %v352_v55  ;;  %v871_v38 = vld [vmem:[%s979_s0 + $0x70] sm:$0xff] }
  0x39   :  { %v523_v3 = vrot.slane %v487_v61, 2  ;;  %v524_v4 = vrot.slane %v488_v63, 2  ;;  %v67_v6 = vmul.f32 %v591_v14, %v771_v58  ;;  %v42_v8 = vmul.f32 %v589_v13, %v771_v58 }
  0x3a   :  { %555 = vst.msk [vmem:[%s980_s2 + $0x18] sm:$0xff] %vm551_vm2, %v546_v0  ;;  %v299_v7 = vadd.f32 %v277_v59, %v223_v35  ;;  %v68_v9 = vmul.f32 %v591_v14, %v777_v62  ;;  %v144_v10 = vmul.f32 %v593_v15, %v771_v58  ;;  %v449_v12 = vsel %vm89_vm0, %v447_v45, %v448_v1 }
  0x3b   :  { %v525_v21 = vsel %vm166_vm1, %v523_v3, %v524_v4  ;;  %v105_v22 = vrot.slane %v67_v6, 1  ;;  %v145_v24 = vmul.f32 %v593_v15, %v777_v62  ;;  %v241_v29 = vmul.f32 %v597_v17, %v822_v51 }
  0x3c   :  { %v375_v25 = vadd.f32 %v353_v2, %v299_v7  ;;  %v106_v26 = vrot.slane %v68_v9, 1  ;;  %v182_v28 = vrot.slane %v144_v10, 2  ;;  %v242_v31 = vmul.f32 %v597_v17, %v827_v52 }
  0x3d   :  { %v183_v30 = vrot.slane %v145_v24, 2  ;;  %v317_v58 = vmul.f32 %v599_v18, %v822_v51  ;;  %v318_v32 = vmul.f32 %v599_v18, %v827_v52  ;;  %v216_v62 = vmul.f32 %v595_v16, %v822_v51 }
  0x3e   :  { %v395_v33 = vadd.f32 %v387_v60, %v375_v25  ;;  %v107_v34 = vsel %vm89_vm0, %v105_v22, %v106_v26  ;;  %v278_v37 = vrot.slane %v241_v29, 1  ;;  %v279_v42 = vrot.slane %v242_v31, 1  ;;  %v27_v25 = vld [vmem:[%s979_s0 + $0x80] sm:$0xff]  ;;  %v28_v26 = vld [vmem:[%s979_s0 + $0x88] sm:$0x3] }
  0x3f   :  { %v127_v40 = vadd.f32 %v107_v34, %v42_v8  ;;  %v184_v41 = vsel %vm166_vm1, %v182_v28, %v183_v30  ;;  %v354_v44 = vrot.slane %v317_v58, 2  ;;  %v355_v11 = vrot.slane %v318_v32, 2 }
  0x40   :  { %v471_v5 = vadd.f32 %v449_v12, %v395_v33  ;;  %v413_v43 = vmul.f32 %v603_v20, %v871_v38  ;;  %v414_v46 = vmul.f32 %v603_v20, %v876_v39  ;;  %v388_v48 = vmul.f32 %v601_v19, %v871_v38 }
  0x41   :  { %v204_v47 = vadd.f32 %v184_v41, %v127_v40  ;;  %v489_v49 = vmul.f32 %v628_v36, %v871_v38  ;;  %v490_v50 = vmul.f32 %v628_v36, %v876_v39  ;;  %v280_v54 = vsel %vm89_vm0, %v278_v37, %v279_v42 }
  0x42   :  { %v547_v53 = vadd.f32 %v525_v21, %v471_v5  ;;  %v450_v55 = vrot.slane %v413_v43, 1  ;;  %v451_v23 = vrot.slane %v414_v46, 1  ;;  %v356_v56 = vsel %vm166_vm1, %v354_v44, %v355_v11 }
  0x43   :  { %v224_v27 = vadd.f32 %v216_v62, %v204_v47  ;;  %v526_v57 = vrot.slane %v489_v49, 2  ;;  %v527_v59 = vrot.slane %v490_v50, 2  ;;  %v43_v60 = vmul.f32 %v589_v13, %v822_v51 }
  0x44   :  { %556 = vst.msk [vmem:[%s980_s2 + $0x20] sm:$0xff] %vm551_vm2, %v547_v53  ;;  %v69_v61 = vmul.f32 %v591_v14, %v822_v51  ;;  %v70_v63 = vmul.f32 %v591_v14, %v827_v52  ;;  %v146_v0 = vmul.f32 %v593_v15, %v822_v51  ;;  %v452_v45 = vsel %vm89_vm0, %v450_v55, %v451_v23 }
  0x45   :  { %v300_v35 = vadd.f32 %v280_v54, %v224_v27  ;;  %v528_v1 = vsel %vm166_vm1, %v526_v57, %v527_v59  ;;  %v147_v2 = vmul.f32 %v593_v15, %v827_v52  ;;  %v243_v7 = vmul.f32 %v597_v17, %v871_v38 }
  0x46   :  { %v108_v3 = vrot.slane %v69_v61, 1  ;;  %v109_v4 = vrot.slane %v70_v63, 1  ;;  %v185_v6 = vrot.slane %v146_v0, 2  ;;  %v244_v10 = vmul.f32 %v597_v17, %v876_v39 }
  0x47   :  { %v376_v8 = vadd.f32 %v356_v56, %v300_v35  ;;  %v186_v9 = vrot.slane %v147_v2, 2  ;;  %v319_v51 = vmul.f32 %v599_v18, %v871_v38  ;;  %v217_v21 = vmul.f32 %v595_v16, %v871_v38 }
  0x48   :  { %v110_v12 = vsel %vm89_vm0, %v108_v3, %v109_v4  ;;  %v281_v52 = vrot.slane %v243_v7, 1  ;;  %v320_v22 = vmul.f32 %v599_v18, %v876_v39  ;;  %v282_v30 = vrot.slane %v244_v10, 1 }
  0x49   :  { %v396_v24 = vadd.f32 %v388_v48, %v376_v8  ;;  %v128_v28 = vadd.f32 %v110_v12, %v43_v60  ;;  %v187_v29 = vsel %vm166_vm1, %v185_v6, %v186_v9  ;;  %v357_v31 = vrot.slane %v319_v51, 2  ;;  %v29_v60 = vld [vmem:[%s979_s0 + $0x90] sm:$0xff] }
  0x4a   :  { %v358_v58 = vrot.slane %v320_v22, 2  ;;  %v415_v32 = vmul.f32 %v603_v20, %v27_v25  ;;  %v416_v33 = vmul.f32 %v603_v20, %v28_v26  ;;  %v389_v37 = vmul.f32 %v601_v19, %v27_v25 }
  0x4b   :  { %v472_v34 = vadd.f32 %v452_v45, %v396_v24  ;;  %v205_v62 = vadd.f32 %v187_v29, %v128_v28  ;;  %v491_v40 = vmul.f32 %v628_v36, %v27_v25  ;;  %v283_v41 = vsel %vm89_vm0, %v281_v52, %v282_v30 }
  0x4c   :  { %v453_v42 = vrot.slane %v415_v32, 1  ;;  %v454_v44 = vrot.slane %v416_v33, 1  ;;  %v492_v5 = vmul.f32 %v628_v36, %v28_v26  ;;  %v359_v46 = vsel %vm166_vm1, %v357_v31, %v358_v58 }
  0x4d   :  { %v548_v11 = vadd.f32 %v528_v1, %v472_v34  ;;  %v225_v43 = vadd.f32 %v217_v21, %v205_v62  ;;  %v529_v47 = vrot.slane %v491_v40, 2  ;;  %v44_v49 = vmul.f32 %v589_v13, %v871_v38 }
  0x4e   :  { %v455_v48 = vsel %vm89_vm0, %v453_v42, %v454_v44  ;;  %v71_v50 = vmul.f32 %v591_v14, %v871_v38  ;;  %v72_v53 = vmul.f32 %v591_v14, %v876_v39  ;;  %v530_v55 = vrot.slane %v492_v5, 2 }
  0x4f   :  { %557 = vst.msk [vmem:[%s980_s2 + $0x28] sm:$0xff] %vm551_vm2, %v548_v11  ;;  %v301_v54 = vadd.f32 %v283_v41, %v225_v43  ;;  %v148_v23 = vmul.f32 %v593_v15, %v871_v38  ;;  %v149_v27 = vmul.f32 %v593_v15, %v876_v39  ;;  %v218_v57 = vmul.f32 %v595_v16, %v27_v25  ;;  %v30_v38 = vld [vmem:[%s979_s0 + $0x98] sm:$0x3] }
  0x50   :  { %v111_v13 = vrot.slane %v71_v50, 1  ;;  %v112_v56 = vrot.slane %v72_v53, 1  ;;  %v245_v59 = vmul.f32 %v597_v17, %v27_v25  ;;  %v246_v0 = vmul.f32 %v597_v17, %v28_v26 }
  0x51   :  { %v377_v14 = vadd.f32 %v359_v46, %v301_v54  ;;  %v188_v61 = vrot.slane %v148_v23, 2  ;;  %v189_v63 = vrot.slane %v149_v27, 2  ;;  %v321_v16 = vmul.f32 %v599_v18, %v27_v25 }
  0x52   :  { %v113_v15 = vsel %vm89_vm0, %v111_v13, %v112_v56  ;;  %v284_v39 = vrot.slane %v245_v59, 1  ;;  %v322_v35 = vmul.f32 %v599_v18, %v28_v26  ;;  %v285_v3 = vrot.slane %v246_v0, 1 }
  0x53   :  { %v397_v45 = vadd.f32 %v389_v37, %v377_v14  ;;  %v129_v1 = vadd.f32 %v113_v15, %v44_v49  ;;  %v190_v2 = vsel %vm166_vm1, %v188_v61, %v189_v63  ;;  %v531_v4 = vsel %vm166_vm1, %v529_v47, %v530_v55 }
  0x54   :  { %v360_v6 = vrot.slane %v321_v16, 2  ;;  %v361_v17 = vrot.slane %v322_v35, 2  ;;  %v417_v7 = vmul.f32 %v603_v20, %v29_v60  ;;  %v418_v10 = vmul.f32 %v603_v20, %v30_v38 }
  0x55   :  { %v473_v8 = vadd.f32 %v455_v48, %v397_v45  ;;  %v206_v9 = vadd.f32 %v190_v2, %v129_v1  ;;  %v286_v51 = vsel %vm89_vm0, %v284_v39, %v285_v3  ;;  %v493_v12 = vmul.f32 %v628_v36, %v29_v60 }
  0x56   :  { %v494_v18 = vmul.f32 %v628_v36, %v30_v38  ;;  %v362_v22 = vsel %vm166_vm1, %v360_v6, %v361_v17  ;;  %v456_v24 = vrot.slane %v417_v7, 1  ;;  %v457_v25 = vrot.slane %v418_v10, 1 }
  0x57   :  { %v549_v21 = vadd.f32 %v531_v4, %v473_v8  ;;  %v226_v52 = vadd.f32 %v218_v57, %v206_v9  ;;  %v390_v20 = vmul.f32 %v601_v19, %v29_v60  ;;  %v532_v28 = vrot.slane %v493_v12, 2 }
  0x58   :  { %v533_v29 = vrot.slane %v494_v18, 2  ;;  %v458_v31 = vsel %vm89_vm0, %v456_v24, %v457_v25 }
  0x59   :  { %558 = vst.msk [vmem:[%s980_s2 + $0x30] sm:$0xff] %vm551_vm2, %v549_v21  ;;  %v302_v26 = vadd.f32 %v286_v51, %v226_v52 }
  0x5a   :  { %v534_v58 = vsel %vm166_vm1, %v532_v28, %v533_v29 }
  0x5b   :  { %v378_v30 = vadd.f32 %v362_v22, %v302_v26 }
  0x5d   :  { %v398_v36 = vadd.f32 %v390_v20, %v378_v30 }
  0x5f   :  { %v474_v32 = vadd.f32 %v458_v31, %v398_v36 }
  0x61   :  { %v550_v33 = vadd.f32 %v534_v58, %v474_v32 }
  0x63   :  { %559 = vst.msk [vmem:[%s980_s2 + $0x38] sm:$0xff] %vm551_vm2, %v550_v33 }

// kernel: _lambda_.61
= control target key start
LH: loop header
LB: loop body
LE: loop exit
PB: predicated region body
PF: predicated region fallthrough
CT: control target
= control target key end

     0   :  { %s436_s9 = smov 0   ;;  %s535_s0 = inlined_call_operand.vmem [shape: f32[2,6,6,32], index: 0, kind: input, shape index: {}]   ;;  %s536_s1 = inlined_call_operand.vmem [shape: f32[9,32], index: 1, kind: input, shape index: {}]   ;;  %s537_s2 = inlined_call_operand.vmem [shape: f32[2,4,4,32], index: 2, kind: output, shape index: {}]  }
   0x1 LB: > { %s392_s10 = sadd.s32 4294967295, %s419_s9   ;;  %p396_p0 = scmp.ge.s32.totalorder %s419_s9, 1  ;;  %s419_s9 = sphi %s436_s9, %s12_s9  }
   0x2   : > { %p112_p1 = scmp.lt.s32.totalorder %s419_s9, 3 }
   0x4   : > { %p113_p2 = pnand %p396_p0, %p112_p1 }
   0x5   : > { %p134_p3 = scmp.lt.s32.totalorder (!%p113_p2), %s392_s10, 1  ;;  %v152_v0 = vlaneseq (!%p113_p2)  ;;  %v150_v2 = vld [vmem:[%s536_s1] sm:$0xff] (!%p113_p2)  ;;  %v478_v24 = vld [vmem:[%s536_s1 + $0x8] ss:$0 sm:$0xff] (!%p113_p2)  ;;  %vm332_vm0 = vcmask (!%p113_p2), 257024  }
   0x6   : > { %116 = sbr.rel (%p113_p2) target bundleno = 51 (0x33), region = 28 }
   0x7   : > { %v153_v1 = vshrl.u32 (!%p113_p2), %v152_v0, 7 }
   0x9   : > { %v154_v3 = vsub.s32 (!%p113_p2), 0, %v153_v1  ;;  %v166_v4 = vsub.s32 (!%p113_p2), 1, %v153_v1  ;;  %v190_v5 = vsub.s32 (!%p113_p2), 2, %v153_v1  ;;  %v214_v6 = vsub.s32 (!%p113_p2), 3, %v153_v1 }
   0xa   : > { %v226_v7 = vsub.s32 (!%p113_p2), 4, %v153_v1  ;;  %v250_v8 = vsub.s32 (!%p113_p2), 5, %v153_v1  ;;  %v274_v9 = vsub.s32 (!%p113_p2), 6, %v153_v1  ;;  %v286_v10 = vsub.s32 (!%p113_p2), 7, %v153_v1 }
   0xb   : > { %v455_v11 = vrot.slane (!%p113_p2), %v150_v2, %v154_v3  ;;  %v457_v12 = vrot.slane (!%p113_p2), %v150_v2, %v166_v4  ;;  %v459_v13 = vrot.slane (!%p113_p2), %v150_v2, %v190_v5  ;;  %v472_v22 = vrot.slane (!%p113_p2), %v150_v2, %v214_v6 }
   0xc   : > { %v462_v15 = vrot.slane (!%p113_p2), %v150_v2, %v226_v7  ;;  %v464_v16 = vrot.slane (!%p113_p2), %v150_v2, %v250_v8  ;;  %v466_v17 = vrot.slane (!%p113_p2), %v150_v2, %v286_v10  ;;  %v481_v26 = vrot.slane (!%p113_p2), %v150_v2, %v274_v9 }
   0xd   : > { %s539_s10 = smov (!%p134_p3, %s392_s10), 1 }
   0xe   : > { %s404_s13 = smul.u32 48, %s539_s10  ;;  %s403_s19 = sshll.u32 %s539_s10, 4 }
   0xf   : > { %s514_s22 = scalar_lea.vmem %s537_s2, %s403_s19 }
  0x10   : > { %s453_s16 = scalar_lea.vmem %s535_s0, %s404_s13 }
  0x11   : > { %v144_v14 = vld [vmem:[%s453_s16] sm:$0x3f]  ;;  %v145_v18 = vld [vmem:[%s453_s16 + $0x8] sm:$0x3f]  ;;  %v146_v23 = vld [vmem:[%s453_s16 + $0x10] sm:$0x3f] }
  0x12   : > { %v156_v19 = vmul.f32 %v455_v11, %v144_v14  ;;  %v168_v20 = vmul.f32 %v457_v12, %v144_v14  ;;  %v192_v21 = vmul.f32 %v459_v13, %v144_v14  ;;  %v228_v25 = vmul.f32 %v462_v15, %v145_v18  ;;  %v147_v41 = vld [vmem:[%s453_s16 + $0x18] sm:$0x3f]  ;;  %v148_v3 = vld [vmem:[%s453_s16 + $0x20] sm:$0x3f] }
  0x13   : > { %v252_v29 = vmul.f32 %v464_v16, %v145_v18  ;;  %v288_v30 = vmul.f32 %v466_v17, %v146_v23  ;;  %v157_v31 = vmul.f32 %v455_v11, %v145_v18  ;;  %v169_v32 = vmul.f32 %v457_v12, %v145_v18 }
  0x14   : > { %v176_v27 = vrot.slane %v168_v20, 1  ;;  %v200_v28 = vrot.slane %v192_v21, 2  ;;  %v216_v34 = vmul.f32 %v472_v22, %v145_v18  ;;  %v312_v35 = vmul.f32 %v478_v24, %v146_v23 }
  0x15   : > { %v193_v36 = vmul.f32 %v459_v13, %v145_v18  ;;  %v236_v37 = vrot.slane %v228_v25, 1  ;;  %v276_v38 = vmul.f32 %v481_v26, %v146_v23  ;;  %v177_v39 = vrot.slane %v169_v32, 1 }
  0x16   : > { %v184_v33 = vadd.f32 %v176_v27, %v156_v19  ;;  %v229_v40 = vmul.f32 %v462_v15, %v146_v23  ;;  %v260_v43 = vrot.slane %v252_v29, 2  ;;  %v296_v44 = vrot.slane %v288_v30, 1 }
  0x17   : > { %v201_v45 = vrot.slane %v193_v36, 2  ;;  %v185_v46 = vadd.f32 %v177_v39, %v157_v31  ;;  %v217_v47 = vmul.f32 %v472_v22, %v146_v23  ;;  %v253_v48 = vmul.f32 %v464_v16, %v146_v23  ;;  %v149_v36 = vld [vmem:[%s453_s16 + $0x28] sm:$0x3f] }
  0x18   : > { %v208_v42 = vadd.f32 %v200_v28, %v184_v33  ;;  %v289_v49 = vmul.f32 %v466_v17, %v147_v41  ;;  %v320_v51 = vrot.slane %v312_v35, 2  ;;  %v158_v52 = vmul.f32 %v455_v11, %v146_v23 }
  0x19   : > { %v170_v53 = vmul.f32 %v457_v12, %v146_v23  ;;  %v209_v54 = vadd.f32 %v201_v45, %v185_v46  ;;  %v237_v55 = vrot.slane %v229_v40, 1  ;;  %v313_v56 = vmul.f32 %v478_v24, %v147_v41 }
  0x1a   : > { %v220_v50 = vadd.f32 %v216_v34, %v208_v42  ;;  %v194_v57 = vmul.f32 %v459_v13, %v146_v23  ;;  %v277_v59 = vmul.f32 %v481_v26, %v147_v41  ;;  %v230_v61 = vmul.f32 %v462_v15, %v147_v41 }
  0x1b   : > { %v178_v60 = vrot.slane %v170_v53, 1  ;;  %v221_v62 = vadd.f32 %v217_v47, %v209_v54  ;;  %v261_v63 = vrot.slane %v253_v48, 2  ;;  %v297_v0 = vrot.slane %v289_v49, 1 }
  0x1c   : > { %v244_v58 = vadd.f32 %v236_v37, %v220_v50  ;;  %v202_v1 = vrot.slane %v194_v57, 2  ;;  %v218_v5 = vmul.f32 %v472_v22, %v147_v41  ;;  %v254_v6 = vmul.f32 %v464_v16, %v147_v41 }
  0x1d   : > { %v186_v4 = vadd.f32 %v178_v60, %v158_v52  ;;  %v245_v7 = vadd.f32 %v237_v55, %v221_v62  ;;  %v321_v8 = vrot.slane %v313_v56, 2  ;;  %v159_v9 = vmul.f32 %v455_v11, %v147_v41 }
  0x1e   : > { %v268_v2 = vadd.f32 %v260_v43, %v244_v58  ;;  %v171_v10 = vmul.f32 %v457_v12, %v147_v41  ;;  %v238_v19 = vrot.slane %v230_v61, 1  ;;  %v195_v20 = vmul.f32 %v459_v13, %v147_v41 }
  0x1f   : > { %v210_v18 = vadd.f32 %v202_v1, %v186_v4  ;;  %v269_v21 = vadd.f32 %v261_v63, %v245_v7  ;;  %v290_v23 = vmul.f32 %v466_v17, %v148_v3  ;;  %v231_v27 = vmul.f32 %v462_v15, %v148_v3 }
  0x20   : > { %v280_v14 = vadd.f32 %v276_v38, %v268_v2  ;;  %v179_v25 = vrot.slane %v171_v10, 1  ;;  %v262_v30 = vrot.slane %v254_v6, 2  ;;  %v203_v31 = vrot.slane %v195_v20, 2 }
  0x21   : > { %v222_v29 = vadd.f32 %v218_v5, %v210_v18  ;;  %v281_v11 = vadd.f32 %v277_v59, %v269_v21  ;;  %v219_v13 = vmul.f32 %v472_v22, %v148_v3  ;;  %v255_v32 = vmul.f32 %v464_v16, %v148_v3 }
  0x22   : > { %v304_v28 = vadd.f32 %v296_v44, %v280_v14  ;;  %v187_v12 = vadd.f32 %v179_v25, %v159_v9  ;;  %v278_v15 = vmul.f32 %v481_v26, %v148_v3  ;;  %v314_v35 = vmul.f32 %v478_v24, %v148_v3 }
  0x23   : > { %v246_v34 = vadd.f32 %v238_v19, %v222_v29  ;;  %v305_v37 = vadd.f32 %v297_v0, %v281_v11  ;;  %v239_v39 = vrot.slane %v231_v27, 1  ;;  %v298_v41 = vrot.slane %v290_v23, 1 }
  0x24   : > { %v328_v33 = vadd.f32 %v320_v51, %v304_v28  ;;  %v211_v38 = vadd.f32 %v203_v31, %v187_v12  ;;  %v263_v43 = vrot.slane %v255_v32, 2  ;;  %v291_v16 = vmul.f32 %v466_v17, %v149_v36 }
  0x25   : > { %v270_v40 = vadd.f32 %v262_v30, %v246_v34  ;;  %v329_v42 = vadd.f32 %v321_v8, %v305_v37  ;;  %v322_v45 = vrot.slane %v314_v35, 2  ;;  %v279_v47 = vmul.f32 %v481_v26, %v149_v36 }
  0x26   : > { %333 = vst.msk [vmem:[%s514_s22] sm:$0xf] %vm332_vm0, %v328_v33  ;;  %v223_v22 = vadd.f32 %v219_v13, %v211_v38  ;;  %v315_v48 = vmul.f32 %v478_v24, %v149_v36  ;;  %v299_v51 = vrot.slane %v291_v16, 1 }
  0x27   : > { %v282_v44 = vadd.f32 %v278_v15, %v270_v40  ;;  %334 = vst.msk [vmem:[%s514_s22 + $0x4] sm:$0xf] %vm332_vm0, %v329_v42 }
  0x28   : > { %v247_v46 = vadd.f32 %v239_v39, %v223_v22  ;;  %v323_v54 = vrot.slane %v315_v48, 2 }
  0x29   : > { %v306_v49 = vadd.f32 %v298_v41, %v282_v44 }
  0x2a   : > { %v271_v50 = vadd.f32 %v263_v43, %v247_v46 }
  0x2b   : > { %v330_v52 = vadd.f32 %v322_v45, %v306_v49 }
  0x2c   : > { %v283_v53 = vadd.f32 %v279_v47, %v271_v50 }
  0x2d   : > { %335 = vst.msk [vmem:[%s514_s22 + $0x8] sm:$0xf] %vm332_vm0, %v330_v52 }
  0x2e   : > { %v307_v55 = vadd.f32 %v299_v51, %v283_v53 }
  0x30   : > { %v331_v17 = vadd.f32 %v323_v54, %v307_v55 }
  0x32   : > { %336 = vst.msk [vmem:[%s514_s22 + $0xc] sm:$0xf] %vm332_vm0, %v331_v17 }
  0x33 PF: > { %s12_s9 = sadd.s32 1, %s419_s9  }
  0x34   : > { %p9_p4 = scmp.ge.s32.totalorder %s12_s9, 4  }
  0x36   :  { %11 = sbr.rel (!%p9_p4) target bundleno = 1 (0x1), region = 58 }

// kernel: _lambda_.62
= control target key start
LH: loop header
LB: loop body
LE: loop exit
PB: predicated region body
PF: predicated region fallthrough
CT: control target
= control target key end

     0   :  { %vm31_vm0 = vcmask 261120   ;;  %s71_s0 = inlined_call_operand.vmem [shape: f32[8,32], index: 0, kind: input, shape index: {}]   ;;  %s72_s1 = inlined_call_operand.vmem [shape: f32[1,32], index: 1, kind: input, shape index: {}]   ;;  %s73_s2 = inlined_call_operand.vmem [shape: f32[1,32], index: 2, kind: input, shape index: {}]   ;;  %s74_s3 = inlined_call_operand.vmem [shape: f32[8,32], index: 3, kind: output, shape index: {}]  }
   0x1   :  { %v14_v0 = vld [vmem:[%s71_s0] sm:$0xff] }
   0x2   :  { %v37_v1 = vld [vmem:[%s72_s1] ss:$0 sm:$0xff] }
   0x3   :  { %v38_v2 = vld [vmem:[%s73_s2] ss:$0 sm:$0xff]  ;;  %v22_v3 = vmul.f32 %v37_v1, %v14_v0 }
   0x5   :  { %v30_v4 = vadd.f32 %v38_v2, %v22_v3 }
   0x7   :  { %32 = vst.msk [vmem:[%s74_s3] sm:$0xff] %vm31_vm0, %v30_v4 }

// kernel: _lambda_.67
= control target key start
LH: loop header
LB: loop body
LE: loop exit
PB: predicated region body
PF: predicated region fallthrough
CT: control target
= control target key end

     0   :  { %v166_v0 = vmov 0.0|0.0   ;;  %vm167_vm0 = vmmov 0   ;;  %v168_v6 = vmov 0.0   ;;  %vm28_vm1 = vcmask 261120   ;;  %s231_s1 = inlined_call_operand.vmem [shape: f32[32,32], index: 1, kind: input, shape index: {}]   ;;  %s232_s0 = inlined_call_operand.vmem [shape: f32[24,32], index: 0, kind: input, shape index: {}]   ;;  %s233_s2 = inlined_call_operand.vmem [shape: f32[1,32], index: 2, kind: input, shape index: {}]   ;;  %s234_s3 = inlined_call_operand.vmem [shape: f32[24,32], index: 3, kind: output, shape index: {}]  }
   0x1   :  { %159 = vmatprep.subr.bf16.mxu1 %v166_v0  ;;  %v17_v1 = vld [vmem:[%s231_s1] sm:$0xff]  ;;  %v18_v2 = vld [vmem:[%s231_s1 + $0x8] sm:$0xff]  ;;  %153 = vmatprep.subr.bf16.mxu0 %v166_v0  ;;  %v19_v3 = vld [vmem:[%s231_s1 + $0x10] sm:$0xff] }
   0x2   :  { %v154_v4 = vpack.c.bf16 %v18_v2, %v17_v1  ;;  %v20_v5 = vld [vmem:[%s231_s1 + $0x18] sm:$0xff]  ;;  %147 = vmatprep.mubr.msk.f32.mxu1 %vm167_vm0, %v168_v6  ;;  %144 = vmatprep.mubr.msk.f32.mxu0 %vm167_vm0, %v168_v6  ;;  %v15_v8 = vld [vmem:[%s232_s0 + $0x8] sm:$0xff]  ;;  %v14_v9 = vld [vmem:[%s232_s0] sm:$0xff] }
   0x3   :  { %v157_v7 = vpack.c.bf16 %v20_v5, %v19_v3  ;;  %v16_v10 = vld [vmem:[%s232_s0 + $0x10] sm:$0xff]  ;;  %v125_v11 = vld [vmem:[%s233_s2] ss:$0 sm:$0xff] }
   0x4   :  { %161 = vmatpush3.bf16.msra.mxu1 %v154_v4  ;;  %155 = vmatpush3.bf16.msra.mxu0 %v154_v4 }
   0x5   :  { %160 = vmatprep.subr.bf16.mxu1 %v166_v0  ;;  %156 = vmatprep.subr.bf16.mxu0 %v166_v0 }
   0x8   :  { %162 = vmatpush3.bf16.msra.mxu1 %v157_v7  ;;  %158 = vmatpush3.bf16.msra.mxu0 %v157_v7 }
   0xb   :  { %148 = vmatmul.mubr.msk.f32.vlgmr.msra.gmra.mrb[0].mxu1 %vm28_vm1, %v15_v8  ;;  %145 = vmatmul.mubr.msk.f32.vlgmr.msra.gmra.mrb[0].mxu0 %vm28_vm1, %v14_v9 }
   0xc   :  { %150 = vmatprep.mubr.msk.f32.mxu1 %vm167_vm0, %v168_v6 }
   0xf   :  { %151 = vmatmul.mubr.msk.f32.gmra.mrb[2].mxu1 %vm28_vm1, %v16_v10 }
  0xde   :  { %v109_v12 = vpop.f32.mrb[0].mxu1  ;;  %v104_v13 = vpop.f32.mrb[0].mxu0 }
  0xdf   :  { %v110_v14 = vadd.f32 %v125_v11, %v109_v12  ;;  %v149_v15 = vpop.f32.mrb[1].mxu1  ;;  %v105_v16 = vadd.f32 %v125_v11, %v104_v13  ;;  %v146_v17 = vpop.f32.mrb[1].mxu0 }
  0xe1   :  { %119 = vst.msk [vmem:[%s234_s3 + $0x8] sm:$0xff] %vm28_vm1, %v110_v14  ;;  %118 = vst.msk [vmem:[%s234_s3] sm:$0xff] %vm28_vm1, %v105_v16 }
  0xe2   :  { %v114_v18 = vpop.f32.mrb[2].mxu1 }
  0xe3   :  { %v115_v19 = vadd.f32 %v125_v11, %v114_v18  ;;  %v152_v20 = vpop.f32.mrb[3].mxu1 }
  0xe5   :  { %120 = vst.msk [vmem:[%s234_s3 + $0x10] sm:$0xff] %vm28_vm1, %v115_v19 }

// kernel: _lambda_.56
= control target key start
LH: loop header
LB: loop body
LE: loop exit
PB: predicated region body
PF: predicated region fallthrough
CT: control target
= control target key end

     0   :  { %vm52_vm0 = vcmask 261120   ;;  %s149_s0 = inlined_call_operand.vmem [shape: f32[64,32], index: 0, kind: input, shape index: {}]   ;;  %s150_s1 = inlined_call_operand.vmem [shape: f32[1,32], index: 1, kind: input, shape index: {}]   ;;  %s151_s2 = inlined_call_operand.vmem [shape: f32[1,32], index: 2, kind: input, shape index: {}]   ;;  %s152_s3 = inlined_call_operand.vmem [shape: f32[64,32], index: 3, kind: output, shape index: {}]  }
   0x1   :  { %v14_v0 = vld [vmem:[%s149_s0] sm:$0xff]  ;;  %v15_v4 = vld [vmem:[%s149_s0 + $0x8] sm:$0xff]  ;;  %v16_v5 = vld [vmem:[%s149_s0 + $0x10] sm:$0xff] }
   0x2   :  { %v65_v1 = vld [vmem:[%s150_s1] ss:$0 sm:$0xff]  ;;  %v17_v6 = vld [vmem:[%s149_s0 + $0x18] sm:$0xff]  ;;  %v19_v11 = vld [vmem:[%s149_s0 + $0x28] sm:$0xff] }
   0x3   :  { %v66_v2 = vld [vmem:[%s151_s2] ss:$0 sm:$0xff]  ;;  %v29_v3 = vmul.f32 %v65_v1, %v14_v0  ;;  %v30_v7 = vmul.f32 %v65_v1, %v15_v4  ;;  %v31_v8 = vmul.f32 %v65_v1, %v16_v5  ;;  %v32_v9 = vmul.f32 %v65_v1, %v17_v6  ;;  %v20_v12 = vld [vmem:[%s149_s0 + $0x30] sm:$0xff]  ;;  %v21_v17 = vld [vmem:[%s149_s0 + $0x38] sm:$0xff] }
   0x4   :  { %v18_v10 = vld [vmem:[%s149_s0 + $0x20] sm:$0xff]  ;;  %v34_v15 = vmul.f32 %v65_v1, %v19_v11  ;;  %v35_v16 = vmul.f32 %v65_v1, %v20_v12  ;;  %v36_v21 = vmul.f32 %v65_v1, %v21_v17 }
   0x5   :  { %v44_v13 = vadd.f32 %v66_v2, %v29_v3  ;;  %v33_v14 = vmul.f32 %v65_v1, %v18_v10  ;;  %v45_v18 = vadd.f32 %v66_v2, %v30_v7  ;;  %v46_v19 = vadd.f32 %v66_v2, %v31_v8 }
   0x6   :  { %v47_v20 = vadd.f32 %v66_v2, %v32_v9  ;;  %v49_v23 = vadd.f32 %v66_v2, %v34_v15  ;;  %v50_v24 = vadd.f32 %v66_v2, %v35_v16  ;;  %v51_v25 = vadd.f32 %v66_v2, %v36_v21 }
   0x7   :  { %53 = vst.msk [vmem:[%s152_s3] sm:$0xff] %vm52_vm0, %v44_v13  ;;  %v48_v22 = vadd.f32 %v66_v2, %v33_v14  ;;  %54 = vst.msk [vmem:[%s152_s3 + $0x8] sm:$0xff] %vm52_vm0, %v45_v18 }
   0x8   :  { %55 = vst.msk [vmem:[%s152_s3 + $0x10] sm:$0xff] %vm52_vm0, %v46_v19  ;;  %56 = vst.msk [vmem:[%s152_s3 + $0x18] sm:$0xff] %vm52_vm0, %v47_v20 }
   0x9   :  { %57 = vst.msk [vmem:[%s152_s3 + $0x20] sm:$0xff] %vm52_vm0, %v48_v22  ;;  %58 = vst.msk [vmem:[%s152_s3 + $0x28] sm:$0xff] %vm52_vm0, %v49_v23 }
   0xa   :  { %59 = vst.msk [vmem:[%s152_s3 + $0x30] sm:$0xff] %vm52_vm0, %v50_v24  ;;  %60 = vst.msk [vmem:[%s152_s3 + $0x38] sm:$0xff] %vm52_vm0, %v51_v25 }

// kernel: _lambda_.54
= control target key start
LH: loop header
LB: loop body
LE: loop exit
PB: predicated region body
PF: predicated region fallthrough
CT: control target
= control target key end

     0   :  { %vm40_vm0 = vcmask 261120   ;;  %s101_s0 = inlined_call_operand.vmem [shape: f32[32,32], index: 0, kind: input, shape index: {}]   ;;  %s102_s1 = inlined_call_operand.vmem [shape: f32[1,32], index: 1, kind: input, shape index: {}]   ;;  %s103_s2 = inlined_call_operand.vmem [shape: f32[1,32], index: 2, kind: input, shape index: {}]   ;;  %s104_s3 = inlined_call_operand.vmem [shape: f32[32,32], index: 3, kind: output, shape index: {}]  }
   0x1   :  { %v14_v0 = vld [vmem:[%s101_s0] sm:$0xff]  ;;  %v15_v4 = vld [vmem:[%s101_s0 + $0x8] sm:$0xff]  ;;  %v16_v5 = vld [vmem:[%s101_s0 + $0x10] sm:$0xff] }
   0x2   :  { %v49_v1 = vld [vmem:[%s102_s1] ss:$0 sm:$0xff]  ;;  %v17_v6 = vld [vmem:[%s101_s0 + $0x18] sm:$0xff] }
   0x3   :  { %v50_v2 = vld [vmem:[%s103_s2] ss:$0 sm:$0xff]  ;;  %v25_v3 = vmul.f32 %v49_v1, %v14_v0  ;;  %v26_v7 = vmul.f32 %v49_v1, %v15_v4  ;;  %v27_v8 = vmul.f32 %v49_v1, %v16_v5  ;;  %v28_v9 = vmul.f32 %v49_v1, %v17_v6 }
   0x5   :  { %v36_v10 = vadd.f32 %v50_v2, %v25_v3  ;;  %v37_v11 = vadd.f32 %v50_v2, %v26_v7  ;;  %v38_v12 = vadd.f32 %v50_v2, %v27_v8  ;;  %v39_v13 = vadd.f32 %v50_v2, %v28_v9 }
   0x7   :  { %41 = vst.msk [vmem:[%s104_s3] sm:$0xff] %vm40_vm0, %v36_v10  ;;  %42 = vst.msk [vmem:[%s104_s3 + $0x8] sm:$0xff] %vm40_vm0, %v37_v11 }
   0x8   :  { %43 = vst.msk [vmem:[%s104_s3 + $0x10] sm:$0xff] %vm40_vm0, %v38_v12  ;;  %44 = vst.msk [vmem:[%s104_s3 + $0x18] sm:$0xff] %vm40_vm0, %v39_v13 }

// kernel: _lambda_.65
= control target key start
LH: loop header
LB: loop body
LE: loop exit
PB: predicated region body
PF: predicated region fallthrough
CT: control target
= control target key end

     0   :  { %vm37_vm0 = vcmask 261120   ;;  %s413_s1 = inlined_call_operand.vmem [shape: f32[32,32], index: 1, kind: input, shape index: {}]   ;;  %s414_s0 = inlined_call_operand.vmem [shape: f32[96,32], index: 0, kind: input, shape index: {}]   ;;  %s415_s2 = inlined_call_operand.vmem [shape: f32[1,32], index: 2, kind: input, shape index: {}]   ;;  %s416_s3 = inlined_call_operand.vmem [shape: f32[96,32], index: 3, kind: output, shape index: {}]  }
   0x1   :  { %v26_v0 = vld [vmem:[%s413_s1] sm:$0xff]  ;;  %v27_v1 = vld [vmem:[%s413_s1 + $0x8] sm:$0xff]  ;;  %v28_v2 = vld [vmem:[%s413_s1 + $0x10] sm:$0xff] }
   0x2   :  { %v270_v3 = vpack.c.bf16 %v27_v1, %v26_v0  ;;  %v29_v4 = vld [vmem:[%s413_s1 + $0x18] sm:$0xff]  ;;  %v14_v5 = vld [vmem:[%s414_s0] sm:$0xff]  ;;  %v20_v6 = vld [vmem:[%s414_s0 + $0x30] sm:$0xff] }
   0x3   :  { %v274_v7 = vpack.c.bf16 %v29_v4, %v28_v2  ;;  %252 = vmatprep.mubr.msk.f32.mxu0 %vm37_vm0, %v14_v5  ;;  %261 = vmatprep.mubr.msk.f32.mxu1 %vm37_vm0, %v20_v6  ;;  %v15_v8 = vld [vmem:[%s414_s0 + $0x8] sm:$0xff]  ;;  %v21_v9 = vld [vmem:[%s414_s0 + $0x38] sm:$0xff]  ;;  %v16_v10 = vld [vmem:[%s414_s0 + $0x10] sm:$0xff] }
   0x4   :  { %271 = vmatprep.subr.bf16.mxu0 %v270_v3  ;;  %278 = vmatprep.subr.bf16.mxu1 %v270_v3  ;;  %v22_v11 = vld [vmem:[%s414_s0 + $0x40] sm:$0xff]  ;;  %v17_v12 = vld [vmem:[%s414_s0 + $0x18] sm:$0xff]  ;;  %v23_v13 = vld [vmem:[%s414_s0 + $0x48] sm:$0xff] }
   0x5   :  { %273 = vmatpush3.bf16.msra.mxu0 %v270_v3  ;;  %280 = vmatpush3.bf16.msra.mxu1 %v270_v3  ;;  %v18_v14 = vld [vmem:[%s414_s0 + $0x20] sm:$0xff]  ;;  %v24_v15 = vld [vmem:[%s414_s0 + $0x50] sm:$0xff]  ;;  %v19_v16 = vld [vmem:[%s414_s0 + $0x28] sm:$0xff] }
   0x6   :  { %275 = vmatprep.subr.bf16.mxu0 %v274_v7  ;;  %279 = vmatprep.subr.bf16.mxu1 %v274_v7  ;;  %v25_v17 = vld [vmem:[%s414_s0 + $0x58] sm:$0xff]  ;;  %v215_v18 = vld [vmem:[%s415_s2] ss:$0 sm:$0xff] }
   0x9   :  { %277 = vmatpush3.bf16.msra.mxu0 %v274_v7  ;;  %281 = vmatpush3.bf16.msra.mxu1 %v274_v7 }
   0xc   :  { %253 = vmatmul.mubr.msk.f32.vlgmr.msra.gmra.mrb[0].mxu0 %vm37_vm0, %v15_v8  ;;  %262 = vmatmul.mubr.msk.f32.vlgmr.msra.gmra.mrb[0].mxu1 %vm37_vm0, %v21_v9 }
   0xd   :  { %255 = vmatprep.mubr.msk.f32.mxu0 %vm37_vm0, %v16_v10  ;;  %264 = vmatprep.mubr.msk.f32.mxu1 %vm37_vm0, %v22_v11 }
  0x10   :  { %256 = vmatmul.mubr.msk.f32.gmra.mrb[2].mxu0 %vm37_vm0, %v17_v12  ;;  %265 = vmatmul.mubr.msk.f32.gmra.mrb[2].mxu1 %vm37_vm0, %v23_v13 }
  0x11   :  { %258 = vmatprep.mubr.msk.f32.mxu0 %vm37_vm0, %v18_v14  ;;  %267 = vmatprep.mubr.msk.f32.mxu1 %vm37_vm0, %v24_v15 }
  0x14   :  { %259 = vmatmul.mubr.msk.f32.gmra.mrb[4].mxu0 %vm37_vm0, %v19_v16  ;;  %268 = vmatmul.mubr.msk.f32.gmra.mrb[4].mxu1 %vm37_vm0, %v25_v17 }
  0xdf   :  { %v254_v19 = vpop.f32.mrb[0].mxu0  ;;  %v263_v20 = vpop.f32.mrb[0].mxu1 }
  0xe0   :  { %v146_v21 = vadd.f32 %v254_v19, %v215_v18  ;;  %v176_v22 = vadd.f32 %v263_v20, %v215_v18  ;;  %v140_v23 = vpop.f32.mrb[1].mxu0  ;;  %v170_v24 = vpop.f32.mrb[1].mxu1 }
  0xe1   :  { %v141_v25 = vadd.f32 %v215_v18, %v140_v23  ;;  %v171_v26 = vadd.f32 %v215_v18, %v170_v24 }
  0xe2   :  { %200 = vst.msk [vmem:[%s416_s3 + $0x8] sm:$0xff] %vm37_vm0, %v146_v21  ;;  %206 = vst.msk [vmem:[%s416_s3 + $0x38] sm:$0xff] %vm37_vm0, %v176_v22 }
  0xe3   :  { %199 = vst.msk [vmem:[%s416_s3] sm:$0xff] %vm37_vm0, %v141_v25  ;;  %205 = vst.msk [vmem:[%s416_s3 + $0x30] sm:$0xff] %vm37_vm0, %v171_v26  ;;  %v257_v27 = vpop.f32.mrb[2].mxu0  ;;  %v266_v28 = vpop.f32.mrb[2].mxu1 }
  0xe4   :  { %v156_v29 = vadd.f32 %v257_v27, %v215_v18  ;;  %v186_v30 = vadd.f32 %v266_v28, %v215_v18  ;;  %v150_v31 = vpop.f32.mrb[3].mxu0  ;;  %v180_v32 = vpop.f32.mrb[3].mxu1 }
  0xe5   :  { %v151_v33 = vadd.f32 %v215_v18, %v150_v31  ;;  %v181_v34 = vadd.f32 %v215_v18, %v180_v32 }
  0xe6   :  { %202 = vst.msk [vmem:[%s416_s3 + $0x18] sm:$0xff] %vm37_vm0, %v156_v29  ;;  %208 = vst.msk [vmem:[%s416_s3 + $0x48] sm:$0xff] %vm37_vm0, %v186_v30 }
  0xe7   :  { %201 = vst.msk [vmem:[%s416_s3 + $0x10] sm:$0xff] %vm37_vm0, %v151_v33  ;;  %207 = vst.msk [vmem:[%s416_s3 + $0x40] sm:$0xff] %vm37_vm0, %v181_v34  ;;  %v260_v35 = vpop.f32.mrb[4].mxu0  ;;  %v269_v36 = vpop.f32.mrb[4].mxu1 }
  0xe8   :  { %v166_v37 = vadd.f32 %v260_v35, %v215_v18  ;;  %v196_v38 = vadd.f32 %v269_v36, %v215_v18  ;;  %v160_v39 = vpop.f32.mrb[5].mxu0  ;;  %v190_v40 = vpop.f32.mrb[5].mxu1 }
  0xe9   :  { %v161_v41 = vadd.f32 %v215_v18, %v160_v39  ;;  %v191_v42 = vadd.f32 %v215_v18, %v190_v40 }
  0xea   :  { %204 = vst.msk [vmem:[%s416_s3 + $0x28] sm:$0xff] %vm37_vm0, %v166_v37  ;;  %210 = vst.msk [vmem:[%s416_s3 + $0x58] sm:$0xff] %vm37_vm0, %v196_v38 }
  0xeb   :  { %203 = vst.msk [vmem:[%s416_s3 + $0x20] sm:$0xff] %vm37_vm0, %v161_v41  ;;  %209 = vst.msk [vmem:[%s416_s3 + $0x50] sm:$0xff] %vm37_vm0, %v191_v42 }

// kernel: _lambda_.69
= control target key start
LH: loop header
LB: loop body
LE: loop exit
PB: predicated region body
PF: predicated region fallthrough
CT: control target
= control target key end

     0   :  { %s848_s12 = smov 0   ;;  %s927_s0 = inlined_call_operand.vmem [shape: f32[2,64,16], index: 0, kind: input, shape index: {}]   ;;  %s928_s1 = inlined_call_operand.vmem [shape: f32[2,24,16], index: 1, kind: input, shape index: {}]   ;;  %s929_s2 = inlined_call_operand.vmem [shape: f32[2,24,16], index: 2, kind: input, shape index: {}]   ;;  %s930_s3 = inlined_call_operand.vmem [shape: f32[2,64,16], index: 3, kind: output, shape index: {}]  }
   0x1 LB: > { %s677_s13 = sadd.s32 4294967295, %s826_s12   ;;  %p681_p0 = scmp.ge.s32.totalorder %s826_s12, 1  ;;  %s826_s12 = sphi %s848_s12, %s13_s12  }
   0x2   : > { %p157_p1 = scmp.lt.s32.totalorder %s826_s12, 3 }
   0x4   : > { %p158_p2 = pnand %p681_p0, %p157_p1 }
   0x5   : > { %p191_p3 = scmp.lt.s32.totalorder (!%p158_p2), %s677_s13, 1  ;;  %vm225_vm0 = vcmask (!%p158_p2), 130048   ;;  %vm372_vm2 = vcmask (!%p158_p2), 195584  }
   0x6   : > { %161 = sbr.rel (%p158_p2) target bundleno = 791 (0x317), region = 32  ;;  %vm770_vm1 = vmpackc.low (!%p158_p2), %vm225_vm0, %vm225_vm0 }
   0xd   : > { %s932_s13 = smov (!%p191_p3, %s677_s13), 1 }
   0xe   : > { %s709_s14 = sshll.u32 %s932_s13, 6  ;;  %s779_s15 = smul.u32 24, %s932_s13 }
   0xf   : > { %s195_s18 = scalar_lea.vmem %s927_s0, %s709_s14  ;;  %s210_s27 = scalar_lea.vmem %s930_s3, %s709_s14 }
  0x10   : > { %s200_s21 = scalar_lea.vmem %s928_s1, %s779_s15  ;;  %v211_v0 = vld [vmem:[%s195_s18] sm:$0xff]  ;;  %v212_v5 = vld [vmem:[%s195_s18 + $0x8] sm:$0xff]  ;;  %v213_v6 = vld [vmem:[%s195_s18 + $0x10] sm:$0xff]  ;;  %s205_s24 = scalar_lea.vmem %s929_s2, %s779_s15 }
  0x11   : > { %v219_v1 = vld [vmem:[%s200_s21] sm:$0xff]  ;;  %v220_v2 = vld [vmem:[%s200_s21 + $0x8] sm:$0xff]  ;;  %739 = vmatprep.mubr.msk.f32.mxu0 %vm225_vm0, %v211_v0  ;;  %v221_v4 = vld [vmem:[%s200_s21 + $0x10] sm:$0xff] }
  0x12   : > { %v769_v3 = vpack.c.bf16 %v220_v2, %v219_v1  ;;  %v214_v7 = vld [vmem:[%s195_s18 + $0x18] sm:$0xff]  ;;  %v215_v8 = vld [vmem:[%s195_s18 + $0x20] sm:$0xff]  ;;  %v216_v9 = vld [vmem:[%s195_s18 + $0x28] sm:$0xff] }
  0x13   : > { %v217_v10 = vld [vmem:[%s195_s18 + $0x30] sm:$0xff]  ;;  %v218_v11 = vld [vmem:[%s195_s18 + $0x38] sm:$0xff] }
  0x14   : > { %771 = vmatprep.subr.msk.bf16.mxu0 %vm770_vm1, %v769_v3 }
  0x15   : > { %774 = vmatpush3.bf16.xpose.msk.msra.mxu0 %vm770_vm1, %v769_v3 }
  0x16   : > { %737 = vmatprep.subr.msk.mxu0 %vm225_vm0, %v221_v4 }
  0x1d   : > { %738 = vmatpush3.xpose.msk.msra.mxu0 %vm225_vm0, %v221_v4 }
  0x20   : > { %740 = vmatmul.mubr.msk.f32.vlgmr.msra.gmra.mrb[0].mxu0 %vm225_vm0, %v212_v5 }
  0x21   : > { %742 = vmatprep.mubr.msk.f32.mxu0 %vm225_vm0, %v213_v6 }
  0x24   : > { %743 = vmatmul.mubr.msk.f32.gmra.mrb[2].mxu0 %vm225_vm0, %v214_v7 }
  0x25   : > { %745 = vmatprep.mubr.msk.f32.mxu0 %vm225_vm0, %v215_v8 }
  0x28   : > { %746 = vmatmul.mubr.msk.f32.gmra.mrb[4].mxu0 %vm225_vm0, %v216_v9 }
  0x29   : > { %748 = vmatprep.mubr.msk.f32.mxu0 %vm225_vm0, %v217_v10 }
  0x2c   : > { %749 = vmatmul.mubr.msk.f32.gmra.mrb[6].mxu0 %vm225_vm0, %v218_v11 }
  0xf3   : > { %v741_v12 = vpop.f32.mrb[0].mxu0 }
  0xf4   : > { %v325_v13 = vpop.f32.mrb[1].mxu0  ;;  %v365_v15 = vmul.f32 0.17677669, %v741_v12  ;;  %v222_v12 = vld [vmem:[%s205_s24] sm:$0xff] }
  0xf5   : > { %v364_v14 = vmul.f32 0.17677669, %v325_v13  ;;  %v223_v13 = vld [vmem:[%s205_s24 + $0x8] sm:$0xff] }
  0xf6   : > { %v376_v22 = vsel %vm372_vm2, %v365_v15, -inf }
  0xf7   : > { %v744_v16 = vpop.f32.mrb[2].mxu0  ;;  %v373_v17 = vsel %vm372_vm2, %v364_v14, -inf }
  0xf8   : > { %374 = vmax.xlane.f32.xlu0 %v373_v17  ;;  %v335_v18 = vpop.f32.mrb[3].mxu0  ;;  %v367_v20 = vmul.f32 0.17677669, %v744_v16 }
  0xf9   : > { %v366_v19 = vmul.f32 0.17677669, %v335_v18 }
  0xfa   : > { %v382_v28 = vsel %vm372_vm2, %v367_v20, -inf }
  0xfb   : > { %v747_v21 = vpop.f32.mrb[4].mxu0  ;;  %v379_v23 = vsel %vm372_vm2, %v366_v19, -inf }
  0xfc   : > { %377 = vmax.xlane.f32.xlu0 %v376_v22  ;;  %380 = vmax.xlane.f32.xlu1 %v379_v23  ;;  %v345_v24 = vpop.f32.mrb[5].mxu0  ;;  %v369_v26 = vmul.f32 0.17677669, %v747_v21 }
  0xfd   : > { %v368_v25 = vmul.f32 0.17677669, %v345_v24 }
  0xfe   : > { %v388_v33 = vsel %vm372_vm2, %v369_v26, -inf }
  0xff   : > { %v750_v27 = vpop.f32.mrb[6].mxu0  ;;  %v385_v29 = vsel %vm372_vm2, %v368_v25, -inf }
 0x100   : > { %383 = vmax.xlane.f32.xlu1 %v382_v28  ;;  %386 = vmax.xlane.f32.xlu0 %v385_v29  ;;  %v355_v30 = vpop.f32.mrb[7].mxu0  ;;  %v371_v32 = vmul.f32 0.17677669, %v750_v27 }
 0x101   : > { %v370_v31 = vmul.f32 0.17677669, %v355_v30 }
 0x102   : > { %v394_v35 = vsel %vm372_vm2, %v371_v32, -inf }
 0x103   : > { %v391_v34 = vsel %vm372_vm2, %v370_v31, -inf }
 0x104   : > { %389 = vmax.xlane.f32.xlu1 %v388_v33  ;;  %392 = vmax.xlane.f32.xlu0 %v391_v34 }
 0x108   : > { %395 = vmax.xlane.f32.xlu1 %v394_v35 }
 0x185   : > { %v375_v36 = vpop.xlane.xlu0 %374 }
 0x186   : > { %v397_v37 = vsub.f32 %v364_v14, %v375_v36  ;;  %v775_v14 = vpack.c.bf16 %v223_v13, %v222_v12 }
 0x188   : > { %v405_v38 = vmul.f32 1.442695, %v397_v37  ;;  %776 = vmatprep.subr.bf16.mxu1 %v775_v14 }
 0x189   : > { %v378_v39 = vpop.xlane.xlu0 %377  ;;  %v381_v40 = vpop.xlane.xlu1 %380  ;;  %778 = vmatpush3.bf16.msra.mxu1 %v775_v14 }
 0x18a   : > { %788 = vpow2.f32 %v405_v38  ;;  %v398_v41 = vsub.f32 %v365_v15, %v378_v39  ;;  %v399_v42 = vsub.f32 %v366_v19, %v381_v40  ;;  %v224_v15 = vld [vmem:[%s205_s24 + $0x10] sm:$0xff] }
 0x18b   : > { %755 = vmatprep.subr.mxu1 %v224_v15 }
 0x18c   : > { %v407_v43 = vmul.f32 1.442695, %v398_v41  ;;  %v409_v44 = vmul.f32 1.442695, %v399_v42 }
 0x18d   : > { %v384_v45 = vpop.xlane.xlu1 %383  ;;  %v387_v46 = vpop.xlane.xlu0 %386  ;;  %756 = vmatpush3.msra.mxu1 %v224_v15 }
 0x18e   : > { %790 = vpow2.f32 %v407_v43  ;;  %v400_v47 = vsub.f32 %v367_v20, %v384_v45  ;;  %v401_v48 = vsub.f32 %v368_v25, %v387_v46 }
 0x18f   : > { %792 = vpow2.f32 %v409_v44 }
 0x190   : > { %v411_v49 = vmul.f32 1.442695, %v400_v47  ;;  %v413_v50 = vmul.f32 1.442695, %v401_v48 }
 0x191   : > { %v390_v51 = vpop.xlane.xlu1 %389  ;;  %v393_v52 = vpop.xlane.xlu0 %392 }
 0x192   : > { %794 = vpow2.f32 %v411_v49  ;;  %v402_v53 = vsub.f32 %v369_v26, %v390_v51  ;;  %v403_v54 = vsub.f32 %v370_v31, %v393_v52 }
 0x193   : > { %796 = vpow2.f32 %v413_v50 }
 0x194   : > { %v789_v55 = vpop.eup %788  ;;  %v415_v56 = vmul.f32 1.442695, %v402_v53  ;;  %v417_v57 = vmul.f32 1.442695, %v403_v54 }
 0x195   : > { %v396_v58 = vpop.xlane.xlu1 %395  ;;  %v421_v59 = vsel %vm372_vm2, %v789_v55, 0.0 }
 0x196   : > { %798 = vpow2.f32 %v415_v56  ;;  %v404_v60 = vsub.f32 %v371_v32, %v396_v58  ;;  %422 = vadd.xlane.f32.xlu0 %v421_v59 }
 0x197   : > { %800 = vpow2.f32 %v417_v57 }
 0x198   : > { %v791_v61 = vpop.eup %790  ;;  %v419_v62 = vmul.f32 1.442695, %v404_v60 }
 0x199   : > { %v793_v63 = vpop.eup %792  ;;  %v424_v0 = vsel %vm372_vm2, %v791_v61, 0.0 }
 0x19a   : > { %802 = vpow2.f32 %v419_v62  ;;  %425 = vadd.xlane.f32.xlu1 %v424_v0  ;;  %v427_v1 = vsel %vm372_vm2, %v793_v63, 0.0 }
 0x19b   : > { %428 = vadd.xlane.f32.xlu0 %v427_v1 }
 0x19c   : > { %v795_v2 = vpop.eup %794 }
 0x19d   : > { %v797_v3 = vpop.eup %796  ;;  %v430_v4 = vsel %vm372_vm2, %v795_v2, 0.0 }
 0x19e   : > { %431 = vadd.xlane.f32.xlu1 %v430_v4  ;;  %v433_v5 = vsel %vm372_vm2, %v797_v3, 0.0 }
 0x19f   : > { %434 = vadd.xlane.f32.xlu0 %v433_v5 }
 0x1a0   : > { %v799_v6 = vpop.eup %798 }
 0x1a1   : > { %v801_v7 = vpop.eup %800  ;;  %v436_v8 = vsel %vm372_vm2, %v799_v6, 0.0 }
 0x1a2   : > { %437 = vadd.xlane.f32.xlu1 %v436_v8  ;;  %v439_v9 = vsel %vm372_vm2, %v801_v7, 0.0 }
 0x1a3   : > { %440 = vadd.xlane.f32.xlu0 %v439_v9 }
 0x1a4   : > { %v803_v10 = vpop.eup %802 }
 0x1a5   : > { %v442_v11 = vsel %vm372_vm2, %v803_v10, 0.0 }
 0x1a6   : > { %443 = vadd.xlane.f32.xlu1 %v442_v11 }
 0x223   : > { %v423_v16 = vpop.xlane.xlu0 %422 }
 0x224   : > { %804 = vrcp.f32 %v423_v16 }
 0x227   : > { %v426_v17 = vpop.xlane.xlu1 %425 }
 0x228   : > { %806 = vrcp.f32 %v426_v17  ;;  %v429_v18 = vpop.xlane.xlu0 %428 }
 0x229   : > { %808 = vrcp.f32 %v429_v18 }
 0x22b   : > { %v432_v19 = vpop.xlane.xlu1 %431 }
 0x22c   : > { %810 = vrcp.f32 %v432_v19  ;;  %v435_v20 = vpop.xlane.xlu0 %434 }
 0x22d   : > { %812 = vrcp.f32 %v435_v20 }
 0x22e   : > { %v805_v21 = vpop.eup %804 }
 0x22f   : > { %v438_v22 = vpop.xlane.xlu1 %437  ;;  %v446_v23 = vmul.f32 %v805_v21, %v789_v55 }
 0x230   : > { %814 = vrcp.f32 %v438_v22  ;;  %v441_v24 = vpop.xlane.xlu0 %440 }
 0x231   : > { %816 = vrcp.f32 %v441_v24  ;;  %757 = vmatprep.mubr.msk.f32.mxu1 %vm372_vm2, %v446_v23 }
 0x232   : > { %v807_v25 = vpop.eup %806 }
 0x233   : > { %v809_v26 = vpop.eup %808  ;;  %v444_v27 = vpop.xlane.xlu1 %443  ;;  %v448_v28 = vmul.f32 %v807_v25, %v791_v61 }
 0x234   : > { %818 = vrcp.f32 %v444_v27  ;;  %v450_v29 = vmul.f32 %v809_v26, %v793_v63 }
 0x235   : > { %758 = vmatmul.mubr.msk.f32.vlgmr.msra.gmra.mrb[0].mxu1 %vm372_vm2, %v448_v28 }
 0x236   : > { %v811_v30 = vpop.eup %810  ;;  %760 = vmatprep.mubr.msk.f32.mxu1 %vm372_vm2, %v450_v29 }
 0x237   : > { %v813_v31 = vpop.eup %812  ;;  %v452_v32 = vmul.f32 %v811_v30, %v795_v2 }
 0x238   : > { %v454_v33 = vmul.f32 %v813_v31, %v797_v3 }
 0x239   : > { %761 = vmatmul.mubr.msk.f32.gmra.mrb[2].mxu1 %vm372_vm2, %v452_v32 }
 0x23a   : > { %v815_v34 = vpop.eup %814  ;;  %763 = vmatprep.mubr.msk.f32.mxu1 %vm372_vm2, %v454_v33 }
 0x23b   : > { %v817_v35 = vpop.eup %816  ;;  %v456_v36 = vmul.f32 %v815_v34, %v799_v6 }
 0x23c   : > { %v458_v37 = vmul.f32 %v817_v35, %v801_v7 }
 0x23d   : > { %764 = vmatmul.mubr.msk.f32.gmra.mrb[4].mxu1 %vm372_vm2, %v456_v36 }
 0x23e   : > { %v819_v38 = vpop.eup %818  ;;  %766 = vmatprep.mubr.msk.f32.mxu1 %vm372_vm2, %v458_v37 }
 0x23f   : > { %v460_v39 = vmul.f32 %v819_v38, %v803_v10 }
 0x241   : > { %767 = vmatmul.mubr.msk.f32.gmra.mrb[6].mxu1 %vm372_vm2, %v460_v39 }
 0x308   : > { %v759_v40 = vpop.f32.mrb[0].mxu1 }
 0x309   : > { %591 = vst.msk [vmem:[%s210_s27 + $0x8] sm:$0xff] %vm225_vm0, %v759_v40  ;;  %v551_v41 = vpop.f32.mrb[1].mxu1 }
 0x30a   : > { %590 = vst.msk [vmem:[%s210_s27] sm:$0xff] %vm225_vm0, %v551_v41 }
 0x30c   : > { %v762_v42 = vpop.f32.mrb[2].mxu1 }
 0x30d   : > { %593 = vst.msk [vmem:[%s210_s27 + $0x18] sm:$0xff] %vm225_vm0, %v762_v42  ;;  %v561_v43 = vpop.f32.mrb[3].mxu1 }
 0x30e   : > { %592 = vst.msk [vmem:[%s210_s27 + $0x10] sm:$0xff] %vm225_vm0, %v561_v43 }
 0x310   : > { %v765_v44 = vpop.f32.mrb[4].mxu1 }
 0x311   : > { %595 = vst.msk [vmem:[%s210_s27 + $0x28] sm:$0xff] %vm225_vm0, %v765_v44  ;;  %v571_v45 = vpop.f32.mrb[5].mxu1 }
 0x312   : > { %594 = vst.msk [vmem:[%s210_s27 + $0x20] sm:$0xff] %vm225_vm0, %v571_v45 }
 0x314   : > { %v768_v46 = vpop.f32.mrb[6].mxu1 }
 0x315   : > { %597 = vst.msk [vmem:[%s210_s27 + $0x38] sm:$0xff] %vm225_vm0, %v768_v46  ;;  %v581_v47 = vpop.f32.mrb[7].mxu1 }
 0x316   : > { %596 = vst.msk [vmem:[%s210_s27 + $0x30] sm:$0xff] %vm225_vm0, %v581_v47 }
 0x317 PF: > { %s13_s12 = sadd.s32 1, %s826_s12  }
 0x318   : > { %p10_p4 = scmp.ge.s32.totalorder %s13_s12, 4  }
 0x31a   :  { %12 = sbr.rel (!%p10_p4) target bundleno = 1 (0x1), region = 68 }

// kernel: _lambda_.68
= control target key start
LH: loop header
LB: loop body
LE: loop exit
PB: predicated region body
PF: predicated region fallthrough
CT: control target
= control target key end

     0   :  { %s643_s12 = smov 0   ;;  %s700_s0 = inlined_call_operand.vmem [shape: f32[2,32,16], index: 0, kind: input, shape index: {}]   ;;  %s701_s1 = inlined_call_operand.vmem [shape: f32[2,8,16], index: 1, kind: input, shape index: {}]   ;;  %s702_s2 = inlined_call_operand.vmem [shape: f32[2,8,16], index: 2, kind: input, shape index: {}]   ;;  %s703_s3 = inlined_call_operand.vmem [shape: f32[2,32,16], index: 3, kind: output, shape index: {}]  }
   0x1 LB: > { %s541_s13 = sadd.s32 4294967295, %s621_s12   ;;  %p545_p0 = scmp.ge.s32.totalorder %s621_s12, 1  ;;  %s621_s12 = sphi %s643_s12, %s13_s12  }
   0x2   : > { %p155_p1 = scmp.lt.s32.totalorder %s621_s12, 3 }
   0x4   : > { %p156_p2 = pnand %p545_p0, %p155_p1 }
   0x5   : > { %p187_p3 = scmp.lt.s32.totalorder (!%p156_p2), %s541_s13, 1  ;;  %vm211_vm0 = vcmask (!%p156_p2), 130048   ;;  %vm316_vm1 = vcmask (!%p156_p2), 64512  }
   0x6   : > { %159 = sbr.rel (%p156_p2) target bundleno = 772 (0x304), region = 32 }
   0xd   : > { %s705_s13 = smov (!%p187_p3, %s541_s13), 1 }
   0xe   : > { %s548_s14 = sshll.u32 %s705_s13, 3  ;;  %s563_s15 = sshll.u32 %s705_s13, 5 }
   0xf   : > { %s195_s18 = scalar_lea.vmem %s701_s1, %s548_s14  ;;  %s191_s21 = scalar_lea.vmem %s700_s0, %s563_s15 }
  0x10   : > { %v209_v0 = vld [vmem:[%s195_s18] sm:$0xff]  ;;  %v206_v2 = vld [vmem:[%s191_s21 + $0x8] sm:$0xff]  ;;  %v207_v3 = vld [vmem:[%s191_s21 + $0x10] sm:$0xff]  ;;  %s199_s24 = scalar_lea.vmem %s702_s2, %s548_s14  ;;  %s204_s27 = scalar_lea.vmem %s703_s3, %s563_s15 }
  0x11   : > { %v205_v1 = vld [vmem:[%s191_s21] sm:$0xff]  ;;  %575 = vmatprep.subr.msk.mxu0 %vm211_vm0, %v209_v0  ;;  %v208_v4 = vld [vmem:[%s191_s21 + $0x18] sm:$0xff] }
  0x12   : > { %577 = vmatprep.mubr.msk.f32.mxu0 %vm211_vm0, %v205_v1  ;;  %576 = vmatpush3.xpose.msk.msra.mxu0 %vm211_vm0, %v209_v0  ;;  %v210_v37 = vld [vmem:[%s199_s24] sm:$0xff] }
  0x13   : > { %583 = vmatprep.subr.mxu1 %v210_v37 }
  0x14   : > { %584 = vmatpush3.msra.mxu1 %v210_v37 }
  0x15   : > { %578 = vmatmul.mubr.msk.f32.vlgmr.msra.gmra.mrb[0].mxu0 %vm211_vm0, %v206_v2 }
  0x16   : > { %580 = vmatprep.mubr.msk.f32.mxu0 %vm211_vm0, %v207_v3 }
  0x19   : > { %581 = vmatmul.mubr.msk.f32.gmra.mrb[2].mxu0 %vm211_vm0, %v208_v4 }
  0xe8   : > { %v579_v5 = vpop.f32.mrb[0].mxu0 }
  0xe9   : > { %v293_v6 = vpop.f32.mrb[1].mxu0  ;;  %v313_v8 = vmul.f32 0.17677669, %v579_v5 }
  0xea   : > { %v312_v7 = vmul.f32 0.17677669, %v293_v6 }
  0xeb   : > { %v320_v14 = vsel %vm316_vm1, %v313_v8, -inf }
  0xec   : > { %v582_v9 = vpop.f32.mrb[2].mxu0  ;;  %v317_v10 = vsel %vm316_vm1, %v312_v7, -inf }
  0xed   : > { %318 = vmax.xlane.f32.xlu0 %v317_v10  ;;  %v303_v11 = vpop.f32.mrb[3].mxu0  ;;  %v315_v13 = vmul.f32 0.17677669, %v582_v9 }
  0xee   : > { %v314_v12 = vmul.f32 0.17677669, %v303_v11 }
  0xef   : > { %v326_v16 = vsel %vm316_vm1, %v315_v13, -inf }
  0xf0   : > { %v323_v15 = vsel %vm316_vm1, %v314_v12, -inf }
  0xf1   : > { %321 = vmax.xlane.f32.xlu0 %v320_v14  ;;  %324 = vmax.xlane.f32.xlu1 %v323_v15 }
  0xf5   : > { %327 = vmax.xlane.f32.xlu1 %v326_v16 }
 0x17a   : > { %v319_v17 = vpop.xlane.xlu0 %318 }
 0x17b   : > { %v329_v18 = vsub.f32 %v312_v7, %v319_v17 }
 0x17d   : > { %v333_v19 = vmul.f32 1.442695, %v329_v18 }
 0x17e   : > { %v322_v20 = vpop.xlane.xlu0 %321  ;;  %v325_v21 = vpop.xlane.xlu1 %324 }
 0x17f   : > { %599 = vpow2.f32 %v333_v19  ;;  %v330_v22 = vsub.f32 %v313_v8, %v322_v20  ;;  %v331_v23 = vsub.f32 %v314_v12, %v325_v21 }
 0x181   : > { %v335_v24 = vmul.f32 1.442695, %v330_v22  ;;  %v337_v25 = vmul.f32 1.442695, %v331_v23 }
 0x182   : > { %v328_v26 = vpop.xlane.xlu1 %327 }
 0x183   : > { %601 = vpow2.f32 %v335_v24  ;;  %v332_v27 = vsub.f32 %v315_v13, %v328_v26 }
 0x184   : > { %603 = vpow2.f32 %v337_v25 }
 0x185   : > { %v339_v28 = vmul.f32 1.442695, %v332_v27 }
 0x187   : > { %605 = vpow2.f32 %v339_v28 }
 0x189   : > { %v600_v29 = vpop.eup %599 }
 0x18a   : > { %v341_v30 = vsel %vm316_vm1, %v600_v29, 0.0 }
 0x18b   : > { %342 = vadd.xlane.f32.xlu0 %v341_v30 }
 0x18d   : > { %v602_v31 = vpop.eup %601 }
 0x18e   : > { %v604_v32 = vpop.eup %603  ;;  %v344_v33 = vsel %vm316_vm1, %v602_v31, 0.0 }
 0x18f   : > { %345 = vadd.xlane.f32.xlu1 %v344_v33  ;;  %v347_v34 = vsel %vm316_vm1, %v604_v32, 0.0 }
 0x190   : > { %348 = vadd.xlane.f32.xlu0 %v347_v34 }
 0x191   : > { %v606_v35 = vpop.eup %605 }
 0x192   : > { %v350_v36 = vsel %vm316_vm1, %v606_v35, 0.0 }
 0x193   : > { %351 = vadd.xlane.f32.xlu1 %v350_v36 }
 0x218   : > { %v343_v38 = vpop.xlane.xlu0 %342 }
 0x219   : > { %607 = vrcp.f32 %v343_v38 }
 0x21c   : > { %v346_v39 = vpop.xlane.xlu1 %345 }
 0x21d   : > { %v349_v40 = vpop.xlane.xlu0 %348  ;;  %609 = vrcp.f32 %v346_v39 }
 0x21e   : > { %611 = vrcp.f32 %v349_v40 }
 0x220   : > { %v352_v41 = vpop.xlane.xlu1 %351 }
 0x221   : > { %613 = vrcp.f32 %v352_v41 }
 0x223   : > { %v608_v42 = vpop.eup %607 }
 0x224   : > { %v354_v43 = vmul.f32 %v608_v42, %v600_v29 }
 0x226   : > { %585 = vmatprep.mubr.msk.f32.mxu1 %vm316_vm1, %v354_v43 }
 0x227   : > { %v610_v44 = vpop.eup %609 }
 0x228   : > { %v612_v45 = vpop.eup %611  ;;  %v356_v46 = vmul.f32 %v610_v44, %v602_v31 }
 0x229   : > { %v358_v47 = vmul.f32 %v612_v45, %v604_v32 }
 0x22a   : > { %586 = vmatmul.mubr.msk.f32.vlgmr.msra.gmra.mrb[0].mxu1 %vm316_vm1, %v356_v46 }
 0x22b   : > { %v614_v48 = vpop.eup %613  ;;  %588 = vmatprep.mubr.msk.f32.mxu1 %vm316_vm1, %v358_v47 }
 0x22c   : > { %v360_v49 = vmul.f32 %v614_v48, %v606_v35 }
 0x22e   : > { %589 = vmatmul.mubr.msk.f32.gmra.mrb[2].mxu1 %vm316_vm1, %v360_v49 }
 0x2fd   : > { %v587_v50 = vpop.f32.mrb[0].mxu1 }
 0x2fe   : > { %459 = vst.msk [vmem:[%s204_s27 + $0x8] sm:$0xff] %vm211_vm0, %v587_v50  ;;  %v439_v51 = vpop.f32.mrb[1].mxu1 }
 0x2ff   : > { %458 = vst.msk [vmem:[%s204_s27] sm:$0xff] %vm211_vm0, %v439_v51 }
 0x301   : > { %v590_v52 = vpop.f32.mrb[2].mxu1 }
 0x302   : > { %461 = vst.msk [vmem:[%s204_s27 + $0x18] sm:$0xff] %vm211_vm0, %v590_v52  ;;  %v449_v53 = vpop.f32.mrb[3].mxu1 }
 0x303   : > { %460 = vst.msk [vmem:[%s204_s27 + $0x10] sm:$0xff] %vm211_vm0, %v449_v53 }
 0x304 PF: > { %s13_s12 = sadd.s32 1, %s621_s12  }
 0x305   : > { %p10_p4 = scmp.ge.s32.totalorder %s13_s12, 4  }
 0x307   :  { %12 = sbr.rel (!%p10_p4) target bundleno = 1 (0x1), region = 68 }

// kernel: _lambda_.72
= control target key start
LH: loop header
LB: loop body
LE: loop exit
PB: predicated region body
PF: predicated region fallthrough
CT: control target
= control target key end

     0   :  { %vm37_vm0 = vcmask 261120   ;;  %vm199_vm1 = vcmask 523264   ;;  %s414_s1 = inlined_call_operand.vmem [shape: f32[32,64], index: 1, kind: input, shape index: {}]   ;;  %s415_s0 = inlined_call_operand.vmem [shape: f32[96,32], index: 0, kind: input, shape index: {}]   ;;  %s416_s2 = inlined_call_operand.vmem [shape: f32[1,64], index: 2, kind: input, shape index: {}]   ;;  %s417_s3 = inlined_call_operand.vmem [shape: f32[96,64], index: 3, kind: output, shape index: {}]  }
   0x1   :  { %v26_v0 = vld [vmem:[%s414_s1] sm:$0xff]  ;;  %v27_v1 = vld [vmem:[%s414_s1 + $0x8] sm:$0xff]  ;;  %v28_v2 = vld [vmem:[%s414_s1 + $0x10] sm:$0xff] }
   0x2   :  { %v271_v3 = vpack.c.bf16 %v27_v1, %v26_v0  ;;  %v29_v4 = vld [vmem:[%s414_s1 + $0x18] sm:$0xff]  ;;  %v14_v5 = vld [vmem:[%s415_s0] sm:$0xff]  ;;  %v20_v6 = vld [vmem:[%s415_s0 + $0x30] sm:$0xff] }
   0x3   :  { %v275_v7 = vpack.c.bf16 %v29_v4, %v28_v2  ;;  %253 = vmatprep.mubr.msk.f32.mxu0 %vm37_vm0, %v14_v5  ;;  %262 = vmatprep.mubr.msk.f32.mxu1 %vm37_vm0, %v20_v6  ;;  %v15_v8 = vld [vmem:[%s415_s0 + $0x8] sm:$0xff]  ;;  %v21_v9 = vld [vmem:[%s415_s0 + $0x38] sm:$0xff]  ;;  %v16_v10 = vld [vmem:[%s415_s0 + $0x10] sm:$0xff] }
   0x4   :  { %272 = vmatprep.subr.bf16.mxu0 %v271_v3  ;;  %279 = vmatprep.subr.bf16.mxu1 %v271_v3  ;;  %v22_v11 = vld [vmem:[%s415_s0 + $0x40] sm:$0xff]  ;;  %v17_v12 = vld [vmem:[%s415_s0 + $0x18] sm:$0xff]  ;;  %v23_v13 = vld [vmem:[%s415_s0 + $0x48] sm:$0xff] }
   0x5   :  { %274 = vmatpush3.bf16.msra.mxu0 %v271_v3  ;;  %281 = vmatpush3.bf16.msra.mxu1 %v271_v3  ;;  %v18_v14 = vld [vmem:[%s415_s0 + $0x20] sm:$0xff]  ;;  %v24_v15 = vld [vmem:[%s415_s0 + $0x50] sm:$0xff]  ;;  %v19_v16 = vld [vmem:[%s415_s0 + $0x28] sm:$0xff] }
   0x6   :  { %276 = vmatprep.subr.bf16.mxu0 %v275_v7  ;;  %280 = vmatprep.subr.bf16.mxu1 %v275_v7  ;;  %v25_v17 = vld [vmem:[%s415_s0 + $0x58] sm:$0xff]  ;;  %v216_v18 = vld [vmem:[%s416_s2] ss:$0 sm:$0xff] }
   0x9   :  { %278 = vmatpush3.bf16.msra.mxu0 %v275_v7  ;;  %282 = vmatpush3.bf16.msra.mxu1 %v275_v7 }
   0xc   :  { %254 = vmatmul.mubr.msk.f32.vlgmr.msra.gmra.mrb[0].mxu0 %vm37_vm0, %v15_v8  ;;  %263 = vmatmul.mubr.msk.f32.vlgmr.msra.gmra.mrb[0].mxu1 %vm37_vm0, %v21_v9 }
   0xd   :  { %256 = vmatprep.mubr.msk.f32.mxu0 %vm37_vm0, %v16_v10  ;;  %265 = vmatprep.mubr.msk.f32.mxu1 %vm37_vm0, %v22_v11 }
  0x10   :  { %257 = vmatmul.mubr.msk.f32.gmra.mrb[2].mxu0 %vm37_vm0, %v17_v12  ;;  %266 = vmatmul.mubr.msk.f32.gmra.mrb[2].mxu1 %vm37_vm0, %v23_v13 }
  0x11   :  { %259 = vmatprep.mubr.msk.f32.mxu0 %vm37_vm0, %v18_v14  ;;  %268 = vmatprep.mubr.msk.f32.mxu1 %vm37_vm0, %v24_v15 }
  0x14   :  { %260 = vmatmul.mubr.msk.f32.gmra.mrb[4].mxu0 %vm37_vm0, %v19_v16  ;;  %269 = vmatmul.mubr.msk.f32.gmra.mrb[4].mxu1 %vm37_vm0, %v25_v17 }
  0xdf   :  { %v255_v19 = vpop.f32.mrb[0].mxu0  ;;  %v264_v20 = vpop.f32.mrb[0].mxu1 }
  0xe0   :  { %v146_v21 = vadd.f32 %v255_v19, %v216_v18  ;;  %v176_v22 = vadd.f32 %v264_v20, %v216_v18  ;;  %v140_v23 = vpop.f32.mrb[1].mxu0  ;;  %v170_v24 = vpop.f32.mrb[1].mxu1 }
  0xe1   :  { %v141_v25 = vadd.f32 %v216_v18, %v140_v23  ;;  %v171_v26 = vadd.f32 %v216_v18, %v170_v24 }
  0xe2   :  { %201 = vst.msk [vmem:[%s417_s3 + $0x8] sm:$0xff] %vm199_vm1, %v146_v21  ;;  %207 = vst.msk [vmem:[%s417_s3 + $0x38] sm:$0xff] %vm199_vm1, %v176_v22 }
  0xe3   :  { %200 = vst.msk [vmem:[%s417_s3] sm:$0xff] %vm199_vm1, %v141_v25  ;;  %206 = vst.msk [vmem:[%s417_s3 + $0x30] sm:$0xff] %vm199_vm1, %v171_v26  ;;  %v258_v27 = vpop.f32.mrb[2].mxu0  ;;  %v267_v28 = vpop.f32.mrb[2].mxu1 }
  0xe4   :  { %v156_v29 = vadd.f32 %v258_v27, %v216_v18  ;;  %v186_v30 = vadd.f32 %v267_v28, %v216_v18  ;;  %v150_v31 = vpop.f32.mrb[3].mxu0  ;;  %v180_v32 = vpop.f32.mrb[3].mxu1 }
  0xe5   :  { %v151_v33 = vadd.f32 %v216_v18, %v150_v31  ;;  %v181_v34 = vadd.f32 %v216_v18, %v180_v32 }
  0xe6   :  { %203 = vst.msk [vmem:[%s417_s3 + $0x18] sm:$0xff] %vm199_vm1, %v156_v29  ;;  %209 = vst.msk [vmem:[%s417_s3 + $0x48] sm:$0xff] %vm199_vm1, %v186_v30 }
  0xe7   :  { %202 = vst.msk [vmem:[%s417_s3 + $0x10] sm:$0xff] %vm199_vm1, %v151_v33  ;;  %208 = vst.msk [vmem:[%s417_s3 + $0x40] sm:$0xff] %vm199_vm1, %v181_v34  ;;  %v261_v35 = vpop.f32.mrb[4].mxu0  ;;  %v270_v36 = vpop.f32.mrb[4].mxu1 }
  0xe8   :  { %v166_v37 = vadd.f32 %v261_v35, %v216_v18  ;;  %v196_v38 = vadd.f32 %v270_v36, %v216_v18  ;;  %v160_v39 = vpop.f32.mrb[5].mxu0  ;;  %v190_v40 = vpop.f32.mrb[5].mxu1 }
  0xe9   :  { %v161_v41 = vadd.f32 %v216_v18, %v160_v39  ;;  %v191_v42 = vadd.f32 %v216_v18, %v190_v40 }
  0xea   :  { %205 = vst.msk [vmem:[%s417_s3 + $0x28] sm:$0xff] %vm199_vm1, %v166_v37  ;;  %211 = vst.msk [vmem:[%s417_s3 + $0x58] sm:$0xff] %vm199_vm1, %v196_v38 }
  0xeb   :  { %204 = vst.msk [vmem:[%s417_s3 + $0x20] sm:$0xff] %vm199_vm1, %v161_v41  ;;  %210 = vst.msk [vmem:[%s417_s3 + $0x50] sm:$0xff] %vm199_vm1, %v191_v42 }

// kernel: _lambda_.73
= control target key start
LH: loop header
LB: loop body
LE: loop exit
PB: predicated region body
PF: predicated region fallthrough
CT: control target
= control target key end

     0   :  { %vm41_vm0 = vcmask 523264   ;;  %vm203_vm1 = vcmask 261120   ;;  %s454_s1 = inlined_call_operand.vmem [shape: f32[64,32], index: 1, kind: input, shape index: {}]   ;;  %s455_s0 = inlined_call_operand.vmem [shape: f32[96,64], index: 0, kind: input, shape index: {}]   ;;  %s456_s2 = inlined_call_operand.vmem [shape: f32[1,32], index: 2, kind: input, shape index: {}]   ;;  %s457_s3 = inlined_call_operand.vmem [shape: f32[96,32], index: 3, kind: output, shape index: {}]  }
   0x1   :  { %v26_v0 = vld [vmem:[%s454_s1] sm:$0xff]  ;;  %v27_v1 = vld [vmem:[%s454_s1 + $0x8] sm:$0xff]  ;;  %v28_v2 = vld [vmem:[%s454_s1 + $0x10] sm:$0xff] }
   0x2   :  { %v287_v3 = vpack.c.bf16 %v27_v1, %v26_v0  ;;  %v29_v4 = vld [vmem:[%s454_s1 + $0x18] sm:$0xff]  ;;  %v30_v6 = vld [vmem:[%s454_s1 + $0x20] sm:$0xff]  ;;  %v31_v7 = vld [vmem:[%s454_s1 + $0x28] sm:$0xff] }
   0x3   :  { %v291_v5 = vpack.c.bf16 %v29_v4, %v28_v2  ;;  %v14_v8 = vld [vmem:[%s455_s0] sm:$0xff]  ;;  %v20_v9 = vld [vmem:[%s455_s0 + $0x30] sm:$0xff]  ;;  %v295_v10 = vpack.c.bf16 %v31_v7, %v30_v6  ;;  %v33_v12 = vld [vmem:[%s454_s1 + $0x38] sm:$0xff] }
   0x4   :  { %288 = vmatprep.subr.bf16.mxu0 %v287_v3  ;;  %303 = vmatprep.subr.bf16.mxu1 %v287_v3  ;;  %v32_v11 = vld [vmem:[%s454_s1 + $0x30] sm:$0xff]  ;;  %v15_v14 = vld [vmem:[%s455_s0 + $0x8] sm:$0xff]  ;;  %v21_v15 = vld [vmem:[%s455_s0 + $0x38] sm:$0xff] }
   0x5   :  { %290 = vmatpush3.bf16.msra.mxu0 %v287_v3  ;;  %307 = vmatpush3.bf16.msra.mxu1 %v287_v3  ;;  %v299_v13 = vpack.c.bf16 %v33_v12, %v32_v11  ;;  %v16_v16 = vld [vmem:[%s455_s0 + $0x10] sm:$0xff]  ;;  %v22_v17 = vld [vmem:[%s455_s0 + $0x40] sm:$0xff]  ;;  %v17_v18 = vld [vmem:[%s455_s0 + $0x18] sm:$0xff] }
   0x6   :  { %292 = vmatprep.subr.bf16.mxu0 %v291_v5  ;;  %304 = vmatprep.subr.bf16.mxu1 %v291_v5  ;;  %v23_v19 = vld [vmem:[%s455_s0 + $0x48] sm:$0xff]  ;;  %v18_v20 = vld [vmem:[%s455_s0 + $0x20] sm:$0xff]  ;;  %v24_v21 = vld [vmem:[%s455_s0 + $0x50] sm:$0xff] }
   0x7   :  { %269 = vmatprep.mubr.msk.f32.mxu0 %vm41_vm0, %v14_v8  ;;  %278 = vmatprep.mubr.msk.f32.mxu1 %vm41_vm0, %v20_v9  ;;  %v19_v22 = vld [vmem:[%s455_s0 + $0x28] sm:$0xff]  ;;  %v25_v23 = vld [vmem:[%s455_s0 + $0x58] sm:$0xff]  ;;  %v220_v24 = vld [vmem:[%s456_s2] ss:$0 sm:$0xff] }
   0x9   :  { %294 = vmatpush3.bf16.msra.mxu0 %v291_v5  ;;  %308 = vmatpush3.bf16.msra.mxu1 %v291_v5 }
   0xa   :  { %296 = vmatprep.subr.bf16.mxu0 %v295_v10  ;;  %305 = vmatprep.subr.bf16.mxu1 %v295_v10 }
   0xd   :  { %298 = vmatpush3.bf16.msra.mxu0 %v295_v10  ;;  %309 = vmatpush3.bf16.msra.mxu1 %v295_v10 }
   0xe   :  { %300 = vmatprep.subr.bf16.mxu0 %v299_v13  ;;  %306 = vmatprep.subr.bf16.mxu1 %v299_v13 }
  0x11   :  { %302 = vmatpush3.bf16.msra.mxu0 %v299_v13  ;;  %310 = vmatpush3.bf16.msra.mxu1 %v299_v13 }
  0x14   :  { %270 = vmatmul.mubr.msk.f32.vlgmr.msra.gmra.mrb[0].mxu0 %vm41_vm0, %v15_v14  ;;  %279 = vmatmul.mubr.msk.f32.vlgmr.msra.gmra.mrb[0].mxu1 %vm41_vm0, %v21_v15 }
  0x15   :  { %272 = vmatprep.mubr.msk.f32.mxu0 %vm41_vm0, %v16_v16  ;;  %281 = vmatprep.mubr.msk.f32.mxu1 %vm41_vm0, %v22_v17 }
  0x18   :  { %273 = vmatmul.mubr.msk.f32.gmra.mrb[2].mxu0 %vm41_vm0, %v17_v18  ;;  %282 = vmatmul.mubr.msk.f32.gmra.mrb[2].mxu1 %vm41_vm0, %v23_v19 }
  0x19   :  { %275 = vmatprep.mubr.msk.f32.mxu0 %vm41_vm0, %v18_v20  ;;  %284 = vmatprep.mubr.msk.f32.mxu1 %vm41_vm0, %v24_v21 }
  0x1c   :  { %276 = vmatmul.mubr.msk.f32.gmra.mrb[4].mxu0 %vm41_vm0, %v19_v22  ;;  %285 = vmatmul.mubr.msk.f32.gmra.mrb[4].mxu1 %vm41_vm0, %v25_v23 }
  0xe7   :  { %v271_v25 = vpop.f32.mrb[0].mxu0  ;;  %v280_v26 = vpop.f32.mrb[0].mxu1 }
  0xe8   :  { %v150_v27 = vadd.f32 %v271_v25, %v220_v24  ;;  %v180_v28 = vadd.f32 %v280_v26, %v220_v24  ;;  %v144_v29 = vpop.f32.mrb[1].mxu0  ;;  %v174_v30 = vpop.f32.mrb[1].mxu1 }
  0xe9   :  { %v145_v31 = vadd.f32 %v220_v24, %v144_v29  ;;  %v175_v32 = vadd.f32 %v220_v24, %v174_v30 }
  0xea   :  { %205 = vst.msk [vmem:[%s457_s3 + $0x8] sm:$0xff] %vm203_vm1, %v150_v27  ;;  %211 = vst.msk [vmem:[%s457_s3 + $0x38] sm:$0xff] %vm203_vm1, %v180_v28 }
  0xeb   :  { %204 = vst.msk [vmem:[%s457_s3] sm:$0xff] %vm203_vm1, %v145_v31  ;;  %210 = vst.msk [vmem:[%s457_s3 + $0x30] sm:$0xff] %vm203_vm1, %v175_v32  ;;  %v274_v33 = vpop.f32.mrb[2].mxu0  ;;  %v283_v34 = vpop.f32.mrb[2].mxu1 }
  0xec   :  { %v160_v35 = vadd.f32 %v274_v33, %v220_v24  ;;  %v190_v36 = vadd.f32 %v283_v34, %v220_v24  ;;  %v154_v37 = vpop.f32.mrb[3].mxu0  ;;  %v184_v38 = vpop.f32.mrb[3].mxu1 }
  0xed   :  { %v155_v39 = vadd.f32 %v220_v24, %v154_v37  ;;  %v185_v40 = vadd.f32 %v220_v24, %v184_v38 }
  0xee   :  { %207 = vst.msk [vmem:[%s457_s3 + $0x18] sm:$0xff] %vm203_vm1, %v160_v35  ;;  %213 = vst.msk [vmem:[%s457_s3 + $0x48] sm:$0xff] %vm203_vm1, %v190_v36 }
  0xef   :  { %206 = vst.msk [vmem:[%s457_s3 + $0x10] sm:$0xff] %vm203_vm1, %v155_v39  ;;  %212 = vst.msk [vmem:[%s457_s3 + $0x40] sm:$0xff] %vm203_vm1, %v185_v40  ;;  %v277_v41 = vpop.f32.mrb[4].mxu0  ;;  %v286_v42 = vpop.f32.mrb[4].mxu1 }
  0xf0   :  { %v170_v43 = vadd.f32 %v277_v41, %v220_v24  ;;  %v200_v44 = vadd.f32 %v286_v42, %v220_v24  ;;  %v164_v45 = vpop.f32.mrb[5].mxu0  ;;  %v194_v46 = vpop.f32.mrb[5].mxu1 }
  0xf1   :  { %v165_v47 = vadd.f32 %v220_v24, %v164_v45  ;;  %v195_v48 = vadd.f32 %v220_v24, %v194_v46 }
  0xf2   :  { %209 = vst.msk [vmem:[%s457_s3 + $0x28] sm:$0xff] %vm203_vm1, %v170_v43  ;;  %215 = vst.msk [vmem:[%s457_s3 + $0x58] sm:$0xff] %vm203_vm1, %v200_v44 }
  0xf3   :  { %208 = vst.msk [vmem:[%s457_s3 + $0x20] sm:$0xff] %vm203_vm1, %v165_v47  ;;  %214 = vst.msk [vmem:[%s457_s3 + $0x50] sm:$0xff] %vm203_vm1, %v195_v48 }

</bundles_post_ra>
